<compile_context>
chip_gen: v7x
topology: tpu7x:2x2x1
jax: 0.10.0
libtpu: 0.0.40
codegen_flags: <defaults>
</compile_context>

<pallas_src>
import functools

import jax
import jax.numpy as jnp
from jax.experimental import pallas as pl
from jax.experimental.pallas import tpu as pltpu


def _round_up(x, m):
    return (x + m - 1) // m * m


# --------------------------------------------------------------------------
# Kernel: one batch tile of  out = silu(x @ Wx + t*wt + b1) @ W2 + b2
# --------------------------------------------------------------------------
def _flow_mlp_kernel(x_ref, t_ref, wx_ref, wt_ref, b1_ref, w2_ref, b2_ref,
                     o_ref):
    # In-kernel cast of the activation tile to bf16 (free VPU slot; avoids a
    # wrapper-side bf16 materialization / extra HBM pass).
    x = x_ref[...].astype(wx_ref.dtype)

    # Layer 1 on the MXU with f32 accumulation.
    h = jnp.dot(x, wx_ref[...], preferred_element_type=jnp.float32)

    # Time conditioning + bias: rank-1 broadcast add in f32 on the VPU.
    h = h + t_ref[...] * wt_ref[...] + b1_ref[...]

    # SiLU in f32: sigmoid on EUP, multiply on VPU (required on v5e).
    h = h * jax.nn.sigmoid(h)

    # Layer 2 (bf16 operands, f32 accumulation) + output bias.
    out = jnp.dot(h.astype(w2_ref.dtype), w2_ref[...],
                  preferred_element_type=jnp.float32)
    o_ref[...] = (out + b2_ref[...]).astype(o_ref.dtype)


# --------------------------------------------------------------------------
# Parameter construction / packing
# --------------------------------------------------------------------------
def init_params(key, d_in, d_hidden):
    k1, k2, k3 = jax.random.split(key, 3)
    wx = jax.random.normal(k1, (d_in, d_hidden), jnp.float32) / jnp.sqrt(d_in)
    wt = jax.random.normal(k2, (1, d_hidden), jnp.float32) * 0.1
    b1 = jnp.zeros((1, d_hidden), jnp.float32)
    w2 = jax.random.normal(k3, (d_hidden, d_in), jnp.float32) / jnp.sqrt(d_hidden)
    b2 = jnp.zeros((1, d_in), jnp.float32)
    return wx, wt, b1, w2, b2


def pack_params(params, compute_dtype=jnp.bfloat16):
    """Matmul weights in compute_dtype; biases / time row kept in f32."""
    wx, wt, b1, w2, b2 = params
    return (wx.astype(compute_dtype),
            wt.astype(jnp.float32),
            b1.astype(jnp.float32),
            w2.astype(compute_dtype),
            b2.astype(jnp.float32))


def _vmem_capacity_bytes():
    # Generation-aware physical VMEM; conservative fallback = v7x's 64 MiB.
    try:
        return int(pltpu.get_tpu_info().vmem_capacity_bytes)
    except Exception:
        return 64 * 1024 * 1024


# --------------------------------------------------------------------------
# Forward wrapper (equivalent of Model_(model).forward(t, x_0))
# --------------------------------------------------------------------------
def model_forward(t, x_0, packed_params, *, block_b=512, out_dtype=None):
    wx, wt, b1, w2, b2 = packed_params
    B, D = x_0.shape
    H = wx.shape[1]
    out_dtype = x_0.dtype if out_dtype is None else out_dtype

    # Normalize t to a (B, 1) f32 column (scalar / (B,) / (B,1) all accepted).
    t = jnp.asarray(t, jnp.float32)
    if t.ndim == 0:
        t = jnp.full((B, 1), t, jnp.float32)
    else:
        t = t.reshape(B, 1)

    # Batch tile: multiple of 8 sublanes, large (default 512) for HBM
    # roofline, but clamped so the grid keeps >= 2 steps when B allows it ->
    # the "parallel" batch axis can shard across v7x's two TensorCores.
    tb = min(block_b, _round_up(B, 8))
    if B >= 16:
        tb = min(tb, _round_up(pl.cdiv(B, 2), 8))
    bp = _round_up(B, tb)
    if bp != B:
        x_0 = jnp.pad(x_0, ((0, bp - B), (0, 0)))
        t = jnp.pad(t, ((0, bp - B), (0, 0)))
    grid = (bp // tb,)

    # VMEM budget: count 2x every input (Pallas double-buffers even the
    # constant-index weight specs) + double-buffered output + f32 hidden tile.
    w_itm = jnp.dtype(wx.dtype).itemsize
    x_itm = jnp.dtype(x_0.dtype).itemsize
    o_itm = jnp.dtype(out_dtype).itemsize
    weight_bytes = (D * H + H * D) * w_itm + (2 * H + D) * 4
    act_in_bytes = tb * D * x_itm + tb * 4
    act_out_bytes = tb * D * o_itm
    hidden_bytes = tb * H * 4
    vmem_needed = 2 * (weight_bytes + act_in_bytes + act_out_bytes) + 2 * hidden_bytes
    vmem_cap = _vmem_capacity_bytes() * 3 // 4        # headroom on every gen
    vmem_limit = int(min(vmem_cap, max(16 * 1024 * 1024, 2 * vmem_needed)))

    # Advisory cost estimate so XLA can schedule producers/consumers around
    # this custom call.
    cost = pl.CostEstimate(
        flops=4 * bp * D * H,                        # two (bp,D,H) matmuls
        transcendentals=bp * H,                      # sigmoid
        bytes_accessed=int(bp * D * x_itm + bp * 4 + weight_bytes
                           + bp * D * o_itm),
    )

    out = pl.pallas_call(
        _flow_mlp_kernel,
        out_shape=jax.ShapeDtypeStruct((bp, D), out_dtype),
        grid=grid,
        in_specs=[
            pl.BlockSpec((tb, D), lambda i: (i, 0)),   # x tile (f32, pipelined)
            pl.BlockSpec((tb, 1), lambda i: (i, 0)),   # t tile (f32, pipelined)
            pl.BlockSpec((D, H), lambda i: (0, 0)),    # Wx (bf16, resident)
            pl.BlockSpec((1, H), lambda i: (0, 0)),    # wt (f32, resident)
            pl.BlockSpec((1, H), lambda i: (0, 0)),    # b1 (f32, resident)
            pl.BlockSpec((H, D), lambda i: (0, 0)),    # W2 (bf16, resident)
            pl.BlockSpec((1, D), lambda i: (0, 0)),    # b2 (f32, resident)
        ],
        out_specs=pl.BlockSpec((tb, D), lambda i: (i, 0)),
        compiler_params=pltpu.CompilerParams(
            dimension_semantics=("parallel",),
            vmem_limit_bytes=vmem_limit),
        cost_estimate=cost,
    )(x_0, t, wx, wt, b1, w2, b2)

    return out[:B] if bp != B else out


# --------------------------------------------------------------------------
# Pure-JAX reference (f32, original un-packed parameters)
# --------------------------------------------------------------------------
def _reference(t, x_0, params):
    wx, wt, b1, w2, b2 = params
    h = x_0 @ wx + t * wt + b1
    h = h * jax.nn.sigmoid(h)
    return h @ w2 + b2


if __name__ == "__main__":
    # Tile-friendly demo shapes (grid splits into 2 batch tiles of 256 rows).
    B, D, H = 512, 256, 512

    key = jax.random.PRNGKey(0)
    kx, kt, kp = jax.random.split(key, 3)

    x_0 = jax.random.normal(kx, (B, D), jnp.float32)
    t = jax.random.uniform(kt, (B, 1), jnp.float32)

    params = init_params(kp, D, H)
    packed = pack_params(params)                     # bf16 matmul weights

    fwd = jax.jit(functools.partial(model_forward, block_b=512))
    out = jax.block_until_ready(fwd(t, x_0, packed))

    ref = _reference(t, x_0, params)
    assert out.shape == (B, D)
    max_err = float(jnp.max(jnp.abs(out - ref)))
    # bf16 matmul operands with f32 accumulation -> loosened tolerance.
    assert jnp.allclose(out, ref, atol=5e-2, rtol=5e-2), f"max abs err {max_err}"

    print("KERNEL_OK")
</pallas_src>

<mosaic_0001>
module attributes {stable_mosaic.version = 11 : i64} {
  func.func @_flow_mlp_kernel(%arg0: i32, %arg1: memref<256x256xf32, #tpu.memory_space<vmem>>, %arg2: memref<256x1xf32, #tpu.memory_space<vmem>>, %arg3: memref<256x512xbf16, #tpu.memory_space<vmem>>, %arg4: memref<1x512xf32, #tpu.memory_space<vmem>>, %arg5: memref<1x512xf32, #tpu.memory_space<vmem>>, %arg6: memref<512x256xbf16, #tpu.memory_space<vmem>>, %arg7: memref<1x256xf32, #tpu.memory_space<vmem>>, %arg8: memref<256x256xf32, #tpu.memory_space<vmem>>) attributes {dimension_semantics = [#tpu.dimension_semantics<parallel>], iteration_bounds = array<i64: 2>, scalar_prefetch = 0 : i64, scratch_operands = 0 : i64, tpu.core_type = #tpu.core_type<tc>, window_params = [{transform_indices = @transform_0, window_bounds = array<i64: 256, 256>}, {transform_indices = @transform_1, window_bounds = array<i64: 256, 1>}, {pipeline_mode = #tpu.pipeline_mode<synchronous>, transform_indices = @transform_2, window_bounds = array<i64: 256, 512>}, {pipeline_mode = #tpu.pipeline_mode<synchronous>, transform_indices = @transform_3, window_bounds = array<i64: 1, 512>}, {pipeline_mode = #tpu.pipeline_mode<synchronous>, transform_indices = @transform_4, window_bounds = array<i64: 1, 512>}, {pipeline_mode = #tpu.pipeline_mode<synchronous>, transform_indices = @transform_5, window_bounds = array<i64: 512, 256>}, {pipeline_mode = #tpu.pipeline_mode<synchronous>, transform_indices = @transform_6, window_bounds = array<i64: 1, 256>}, {transform_indices = @transform_7, window_bounds = array<i64: 256, 256>}]} {
    %c0 = arith.constant 0 : index
    %c0_0 = arith.constant 0 : index
    %0 = vector.load %arg1[%c0, %c0_0] : memref<256x256xf32, #tpu.memory_space<vmem>>, vector<256x256xf32>
    %1 = arith.truncf %0 : vector<256x256xf32> to vector<256x256xbf16>
    %c0_1 = arith.constant 0 : index
    %c0_2 = arith.constant 0 : index
    %2 = vector.load %arg3[%c0_1, %c0_2] : memref<256x512xbf16, #tpu.memory_space<vmem>>, vector<256x512xbf16>
    %cst = arith.constant dense<0.000000e+00> : vector<256x512xf32>
    %3 = tpu.matmul %1, %2, %cst {dimension_numbers = #tpu.dot_dimension_numbers<[1], [0], [0], [1], [0, 0, 1, 1], [], []>} : vector<256x256xbf16>, vector<256x512xbf16>, vector<256x512xf32> -> vector<256x512xf32>
    %c0_3 = arith.constant 0 : index
    %c0_4 = arith.constant 0 : index
    %4 = vector.load %arg2[%c0_3, %c0_4] : memref<256x1xf32, #tpu.memory_space<vmem>>, vector<256x1xf32>
    %c0_5 = arith.constant 0 : index
    %c0_6 = arith.constant 0 : index
    %5 = vector.load %arg4[%c0_5, %c0_6] : memref<1x512xf32, #tpu.memory_space<vmem>>, vector<1x512xf32>
    %6 = vector.broadcast %4 : vector<256x1xf32> to vector<256x512xf32>
    %7 = vector.broadcast %5 : vector<1x512xf32> to vector<256x512xf32>
    %8 = arith.mulf %6, %7 : vector<256x512xf32>
    %9 = arith.addf %3, %8 : vector<256x512xf32>
    %c0_7 = arith.constant 0 : index
    %c0_8 = arith.constant 0 : index
    %10 = vector.load %arg5[%c0_7, %c0_8] : memref<1x512xf32, #tpu.memory_space<vmem>>, vector<1x512xf32>
    %11 = vector.broadcast %10 : vector<1x512xf32> to vector<256x512xf32>
    %12 = arith.addf %9, %11 : vector<256x512xf32>
    %13 = arith.negf %12 : vector<256x512xf32>
    %14 = math.exp %13 : vector<256x512xf32>
    %cst_9 = arith.constant 1.000000e+00 : f32
    %15 = vector.broadcast %cst_9 : f32 to vector<256x512xf32>
    %16 = arith.addf %15, %14 : vector<256x512xf32>
    %17 = arith.divf %15, %16 : vector<256x512xf32>
    %18 = arith.mulf %12, %17 : vector<256x512xf32>
    %19 = arith.truncf %18 : vector<256x512xf32> to vector<256x512xbf16>
    %c0_10 = arith.constant 0 : index
    %c0_11 = arith.constant 0 : index
    %20 = vector.load %arg6[%c0_10, %c0_11] : memref<512x256xbf16, #tpu.memory_space<vmem>>, vector<512x256xbf16>
    %cst_12 = arith.constant dense<0.000000e+00> : vector<256x256xf32>
    %21 = tpu.matmul %19, %20, %cst_12 {dimension_numbers = #tpu.dot_dimension_numbers<[1], [0], [0], [1], [0, 0, 1, 1], [], []>} : vector<256x512xbf16>, vector<512x256xbf16>, vector<256x256xf32> -> vector<256x256xf32>
    %c0_13 = arith.constant 0 : index
    %c0_14 = arith.constant 0 : index
    %22 = vector.load %arg7[%c0_13, %c0_14] : memref<1x256xf32, #tpu.memory_space<vmem>>, vector<1x256xf32>
    %23 = vector.broadcast %22 : vector<1x256xf32> to vector<256x256xf32>
    %24 = arith.addf %21, %23 : vector<256x256xf32>
    %c0_15 = arith.constant 0 : index
    %c0_16 = arith.constant 0 : index
    %25 = vector.load %arg8[%c0_15, %c0_16] : memref<256x256xf32, #tpu.memory_space<vmem>>, vector<256x256xf32>
    tpu.vector_store %arg8[%c0_15, %c0_16], %24 {strides = array<i32>} : memref<256x256xf32, #tpu.memory_space<vmem>>, vector<256x256xf32>,
    return
  }
  func.func @transform_0(%arg0: i32) -> (i32, i32) {
    %c0_i32 = arith.constant 0 : i32
    %c0_i32_0 = arith.constant 0 : i32
    return %arg0, %c0_i32 : i32, i32
  }
  func.func @transform_1(%arg0: i32) -> (i32, i32) {
    %c0_i32 = arith.constant 0 : i32
    %c0_i32_0 = arith.constant 0 : i32
    return %arg0, %c0_i32 : i32, i32
  }
  func.func @transform_2(%arg0: i32) -> (i32, i32) {
    %c0_i32 = arith.constant 0 : i32
    %c0_i32_0 = arith.constant 0 : i32
    %c0_i32_1 = arith.constant 0 : i32
    return %c0_i32, %c0_i32_0 : i32, i32
  }
  func.func @transform_3(%arg0: i32) -> (i32, i32) {
    %c0_i32 = arith.constant 0 : i32
    %c0_i32_0 = arith.constant 0 : i32
    %c0_i32_1 = arith.constant 0 : i32
    return %c0_i32, %c0_i32_0 : i32, i32
  }
  func.func @transform_4(%arg0: i32) -> (i32, i32) {
    %c0_i32 = arith.constant 0 : i32
    %c0_i32_0 = arith.constant 0 : i32
    %c0_i32_1 = arith.constant 0 : i32
    return %c0_i32, %c0_i32_0 : i32, i32
  }
  func.func @transform_5(%arg0: i32) -> (i32, i32) {
    %c0_i32 = arith.constant 0 : i32
    %c0_i32_0 = arith.constant 0 : i32
    %c0_i32_1 = arith.constant 0 : i32
    return %c0_i32, %c0_i32_0 : i32, i32
  }
  func.func @transform_6(%arg0: i32) -> (i32, i32) {
    %c0_i32 = arith.constant 0 : i32
    %c0_i32_0 = arith.constant 0 : i32
    %c0_i32_1 = arith.constant 0 : i32
    return %c0_i32, %c0_i32_0 : i32, i32
  }
  func.func @transform_7(%arg0: i32) -> (i32, i32) {
    %c0_i32 = arith.constant 0 : i32
    %c0_i32_0 = arith.constant 0 : i32
    return %arg0, %c0_i32 : i32, i32
  }
}

</mosaic_0001>

<bundles_post_ra>
// kernel: model_forward.1
= control target key start
LH: loop header
LB: loop body
LE: loop exit
PB: predicated region body
PF: predicated region fallthrough
CT: control target
= control target key end

     0   :  { %12 = vsyncpa [#allocation3], 0  ;;  %s7088_s0 = inlined_call_operand.hbm [shape: f32[512,256], index: 0, kind: input, shape index: {}]   ;;  %s7089_s1 = inlined_call_operand.vmem [shape: f32[512,1], index: 1, kind: input, shape index: {}]   ;;  %s7090_s2 = inlined_call_operand.vmem [shape: bf16[256,512], index: 2, kind: input, shape index: {}]   ;;  %s7091_s3 = inlined_call_operand.vmem [shape: f32[1,512], index: 3, kind: input, shape index: {}]   ;;  %s7092_s4 = inlined_call_operand.vmem [shape: f32[1,512], index: 4, kind: input, shape index: {}]   ;;  %s7093_s5 = inlined_call_operand.hbm [shape: bf16[512,256], index: 5, kind: input, shape index: {}]   ;;  %s7094_s6 = inlined_call_operand.vmem [shape: f32[1,256], index: 6, kind: input, shape index: {}]   ;;  %s7095_s7 = inlined_call_operand.hbm [shape: f32[512,256], index: 7, kind: output, shape index: {}]  }
   0x1   :  { %14 = vsyncpa [#allocation3 + $0x1], 0 }
   0x2   :  { %15 = vsyncpa [#allocation6], 0 }
   0x3   :  { %16 = vsyncpa [#allocation4], 0 }
   0x4   :  { %18 = vsyncpa [#allocation4 + $0x1], 0  ;;  %s4970_s24 = smov 0   ;;  %s4972_s25 = smov 0  }
   0x5   :  { %s4974_s26 = smov 0   ;;  %s4976_s27 = smov 0  }
   0x6 LB: > { %s4991_s28 = sadd.s32 4294967295, %s4918_s27   ;;  %s3611_s29 = sadd.s32 4294967294, %s4918_s27   ;;  %s4918_s27 = sphi %s4976_s27, %s7293_s27   ;;  %s4914_s26 = sphi %s4974_s26, %s7292_s26   ;;  %s4910_s25 = sphi %s4972_s25, %s7291_s25   ;;  %s4906_s24 = sphi %s4970_s24, %s7290_s24  }
   0x7   : > { %p44_p0 = scmp.ne.s32.totalorder %s4910_s25, %s4906_s24  ;;  %p7096_p1 = scmp.eq.s32.totalorder %s4991_s28, 0 }
   0x8   : > { %p205_p3 = scmp.eq.s32.totalorder %s3611_s29, 1  ;;  %p3612_p5 = scmp.ge.s32.totalorder %s4918_s27, 1 }
   0x9   : > { %p5000_p4 = por %p7096_p1, %p44_p0  ;;  %p212_p7 = scmp.lt.s32.totalorder %s4918_s27, 3 }
   0xa   : > { %p5005_p6 = por %p205_p3, %p44_p0  ;;  %s4920_s10 = smov [#allocation5]  }
   0xb   : > { %s7121_s30 = scalar_select %p5000_p4, 1, 0 }
   0xc   : > { %s7122_s8 = scalar_select %p5005_p6, 1, 0 }
   0xd   : > { %p5010_p8 = pnand %p3612_p5, %p212_p7  ;;  %s233_s11 = sshll.u32 %s4920_s10, 4  ;;  %s5014_s11 = int_to_ptr.vmem [resolvable:$true] %s233_s11 }
   0xe   : > { %s5026_s13 = sadd.s32 1, %s4918_s27   ;;  %s31_s14 = sadd.s32 1, %s4914_s26 }
   0xf   : > { %s7123_s9 = scalar_select %p5010_p8, 1, 0 }
  0x10   : > { %p4027_p9 = pneg %p5010_p8  ;;  %s28_s15 = ssub.s32 %s4918_s27, %s5026_s13 }
  0x11   : > { %s4790_s18 = scalar_lea.hbm %s7093_s5, 8192 }
  0x12   : > { %p5021_p11 = pnand %p4027_p9, %p7096_p1  ;;  %p4791_p12 = scmp.ne.s32.totalorder %s7093_s5, %s4790_s18 }
  0x13   : > { %p4797_p5 = scmp.lt.u32.totalorder %s4790_s18, %s7093_s5 }
  0x14   : > { %p4792_p13 = pneg %p5021_p11 }
  0x16   : > { %p4793_p0 = pnand %p4792_p13, %p4791_p12 }
  0x18   : > { %p4794_p3 = pneg %p4793_p0 }
  0x1a   : > { %p4799_p7 = pnand %p4797_p5, %p4794_p3 }
  0x1c   : > { %4802 = shalt.err (!%p4799_p7)
}
  0x1d   : > { %s4803_s23 = scalar_lea.vmem %s5014_s11, 8192  ;;  %p4811_p2 = scmp.lt.s32.totalorder %s5014_s11, %s5014_s11 }
  0x1e   : > { %p4804_p9 = scmp.ne.s32.totalorder %s5014_s11, %s4803_s23  ;;  %p4812_p6 = scmp.lt.s32.totalorder %s4803_s23, %s4803_s23 }
  0x20   : > { %p4806_p10 = pnand %p4804_p9, %p4792_p13  ;;  %p4813_p4 = por %p4812_p6, %p4811_p2 }
  0x22   : > { %p4807_p1 = pneg %p4806_p10 }
  0x24   : > { %p4814_p8 = pnand %p4813_p4, %p4807_p1 }
  0x26   : > { %4817 = shalt.err (!%p4814_p8)
}
  0x27   : > { %s4921_s29 = smov 128   ;;  %s4922_s10 = smov 8  }
  0x28   : > { %4030 = dma.hbm_to_vmem [thread:$0]  (!%p5021_p11), %s7093_s5, 8192, %s5014_s11, [#allocation6], %s4921_s29, %s4921_s29, %s4922_s10  }
  0x29   : > { %p29_p2 = scmp.eq.s32.totalorder %s28_s15, 0  ;;  %p38_p1 = scmp.ne.s32.totalorder %s4914_s26, %s4910_s25 }
  0x2a   : > { %p39_p4 = scmp.eq.s32.totalorder %s4918_s27, 0  ;;  %p4040_p6 = scmp.lt.s32.totalorder %s4918_s27, 2 }
  0x2b   : > { %s5057_s18 = scalar_select %p29_p2, %s4914_s26, %s31_s14  }
  0x2c   : > { %p40_p8 = por %p39_p4, %p38_p1  ;;  %p7125_p10 = scmp.eq.s32.totalorder %s4991_s28, 1 }
  0x2d   : > { %s250_s20 = sand.u32 1, %s4914_s26   ;;  %s3888_s21 = sshll.u32 %s4918_s27, 13 }
  0x2e   : > { %p5061_p12 = por %p7125_p10, %p38_p1  ;;  %s3615_s22 = sshll.u32 %s250_s20, 9 }
  0x2f   : > { %s5070_s16 = scalar_lea.hbm %s7088_s0, %s3888_s21  ;;  %s254_s11 = scalar_lea.vmem [#allocation2], %s3615_s22 }
  0x30   : > { %s262_s14 = sshll.u32 %s254_s11, 4  ;;  %p5072_p11 = pnand %p4040_p6, %p40_p8  ;;  %s5076_s14 = int_to_ptr.vmem [resolvable:$true] %s262_s14 }
  0x31   : > { %s5078_s29 = scalar_lea.sflag [#allocation3], %s250_s20  ;;  %s4818_s10 = scalar_lea.hbm %s5070_s16, 8192 }
  0x32   : > { %p4819_p13 = scmp.ne.s32.totalorder %s5070_s16, %s4818_s10  ;;  %p4820_p0 = pneg %p5072_p11 }
  0x33   : > { %s4823_s22 = scalar_lea.hbm %s7088_s0, 16384  ;;  %p4824_p7 = scmp.lt.u32.totalorder %s5070_s16, %s7088_s0 }
  0x34   : > { %p4821_p3 = pnand %p4820_p0, %p4819_p13  ;;  %p4825_p9 = scmp.lt.u32.totalorder %s4823_s22, %s4818_s10 }
  0x35   : > { %p4827_p1 = scmp.lt.u32.totalorder %s4818_s10, %s5070_s16 }
  0x36   : > { %p4822_p5 = pneg %p4821_p3  ;;  %p4826_p2 = por %p4825_p9, %p4824_p7 }
  0x38   : > { %p4828_p4 = por %p4827_p1, %p4826_p2 }
  0x3a   : > { %p4829_p6 = pnand %p4828_p4, %p4822_p5 }
  0x3c   : > { %4832 = shalt.err (!%p4829_p6)
}
  0x3d   : > { %s4833_s20 = scalar_lea.vmem %s5076_s14, 8192  ;;  %s4923_s11 = smov [#allocation2]  }
  0x3e   : > { %p4834_p8 = scmp.ne.s32.totalorder %s5076_s14, %s4833_s20  ;;  %s4838_s17 = sshll.u32 %s4923_s11, 4  ;;  %s4839_s17 = int_to_ptr.vmem [resolvable:$false] %s4838_s17 }
  0x3f   : > { %s4840_s21 = scalar_lea.vmem %s4839_s17, 16384  ;;  %p4841_p3 = scmp.lt.s32.totalorder %s5076_s14, %s4839_s17 }
  0x40   : > { %p4836_p10 = pnand %p4834_p8, %p4820_p0  ;;  %p4842_p7 = scmp.lt.s32.totalorder %s4840_s21, %s4833_s20 }
  0x42   : > { %p4837_p13 = pneg %p4836_p10  ;;  %p4843_p9 = por %p4842_p7, %p4841_p3 }
  0x44   : > { %p4844_p2 = pnand %p4843_p9, %p4837_p13 }
  0x46   : > { %4847 = shalt.err (!%p4844_p2)
}
  0x47   : > { %s4924_s10 = smov 256   ;;  %s4925_s22 = smov 16  }
  0x48   : > { %4034 = dma.hbm_to_vmem [thread:$0]  (!%p5072_p11), %s5070_s16, 8192, %s5076_s14, %s5078_s29, %s4924_s10, %s4924_s10, %s4925_s22  }
  0x49   : > { %p7128_p0 = scmp.ne.s32.totalorder %s7123_s9, 0 }
  0x4b   : > { %283 = sbr.rel (%p7128_p0) target bundleno = 893 (0x37d), region = 48 }
  0x52   : > { %s5109_s12 = sand.u32 1, %s4910_s25   ;;  %p7129_p5 = scmp.ne.s32.totalorder %s7121_s30, 0 }
  0x53   : > { %s3620_s23 = sshll.u32 %s5109_s12, 9  ;;  %s286_s20 = scalar_lea.sflag [#allocation3], %s5109_s12 }
  0x54   : > { %s5115_s11 = scalar_lea.vmem [#allocation2], %s3620_s23 }
  0x55   : > { %4893 = dma.done.wait (%p7129_p5), %s286_s20, 8192  }
  0x56   : > { %4895 = vsyncadd (%p7129_p5), %s286_s20, 4294959104  ;;  %p7130_p11 = scmp.eq.s32.totalorder %s4991_s28, 0 }
  0x58   : > { %4897 = dma.done.wait (%p7130_p11), [#allocation6], 8192   ;;  %p7131_p1 = pmov %p7130_p11 }
  0x59   : > { %v4926_v0 = vmov 0   ;;  %v4085_v1 = vld [vmem:[%s7090_s2 + $0x4] ss:$16 sps:$4 sm:$0xff]   ;;  %v4087_v2 = vld [vmem:[%s7090_s2] ss:$16 sps:$4 sm:$0xff]   ;;  %s3623_s21 = sshll.u32 %s4991_s28, 5 }
  0x5a   : > { %4899 = vsyncadd (%p7131_p1), [#allocation6], 4294959104  ;;  %4083 = vset.pattern.permute.xlu0 %v4926_v0  ;;  %4084 = vset.pattern.permute.xlu1 %v4926_v0  ;;  %v4088_v3 = vld [vmem:[%s7090_s2 + $0x24] ss:$16 sps:$4 sm:$0xff]   ;;  %v4090_v4 = vld [vmem:[%s7090_s2 + $0x20] ss:$16 sps:$4 sm:$0xff]  }
  0x5b   : > { %1159 = vmatprep.subr.bf16.mxu1 %v4085_v1  ;;  %v4091_v5 = vld [vmem:[%s7090_s2 + $0x44] ss:$16 sps:$4 sm:$0xff]   ;;  %v4093_v6 = vld [vmem:[%s7090_s2 + $0x40] ss:$16 sps:$4 sm:$0xff]   ;;  %p331_p4 = scmp.lt.s32.totalorder %s3623_s21, 63  ;;  %v338_v14 = vld [vmem:[%s5115_s11 + $0x8] sm:$0xff] }
  0x5c   : > { %1160 = vmatpush1.bf16.msra.mxu1 %v4087_v2  ;;  %v4094_v7 = vld [vmem:[%s7090_s2 + $0x64] ss:$16 sps:$4 sm:$0xff]   ;;  %v4096_v8 = vld [vmem:[%s7090_s2 + $0x60] ss:$16 sps:$4 sm:$0xff]   ;;  %v340_v15 = vld [vmem:[%s5115_s11 + $0x18] sm:$0xff]  ;;  %s6909_s30 = scalar_lea.vmem [#allocation7], %s3620_s23 }
  0x5d   : > { %1161 = vmatprep.subr.bf16.mxu1 %v4088_v3  ;;  %v4097_v9 = vld [vmem:[%s7090_s2 + $0x84] ss:$16 sps:$4 sm:$0xff]   ;;  %v4099_v10 = vld [vmem:[%s7090_s2 + $0x80] ss:$16 sps:$4 sm:$0xff]   ;;  %s7295_s21 = smov (!%p331_p4, %s3623_s21), 63  ;;  %v5167_v16 = vpack.c.bf16 %v340_v15, %v338_v14  ;;  %v342_v56 = vld [vmem:[%s5115_s11 + $0x28] sm:$0xff] }
  0x5e   : > { %v4100_v11 = vld [vmem:[%s7090_s2 + $0xa4] ss:$16 sps:$4 sm:$0xff]   ;;  %v4102_v12 = vld [vmem:[%s7090_s2 + $0xa0] ss:$16 sps:$4 sm:$0xff]   ;;  %s3624_s10 = sshll.u32 %s7295_s21, 3  ;;  %v344_v57 = vld [vmem:[%s5115_s11 + $0x38] sm:$0xff] }
  0x5f   : > { %v4103_v13 = vld [vmem:[%s7090_s2 + $0xc4] ss:$16 sps:$4 sm:$0xff]   ;;  %v4105_v17 = vld [vmem:[%s7090_s2 + $0xc0] ss:$16 sps:$4 sm:$0xff]   ;;  %1191 = vmatprep.mubr.bf16.mxu1 %v5167_v16  ;;  %s5179_s14 = scalar_lea.vmem %s7089_s1, %s3624_s10  ;;  %v4135_v55 = vld [vmem:[%s7090_s2 + $0xc] ss:$16 sps:$4 sm:$0xff]   ;;  %v5262_v61 = vpack.c.bf16 %v344_v57, %v342_v56 }
  0x60   : > { %1162 = vmatpush1.bf16.msra.mxu1 %v4090_v4  ;;  %v4106_v18 = vld [vmem:[%s7090_s2 + $0xe4] ss:$16 sps:$4 sm:$0xff]   ;;  %v4108_v19 = vld [vmem:[%s7090_s2 + $0xe0] ss:$16 sps:$4 sm:$0xff]   ;;  %v498_v24 = vld [vmem:[%s5179_s14 + $0x8] sm:$0xff]  ;;  %s3890_s23 = sshll.u32 %s4991_s28, 13 }
  0x61   : > { %1163 = vmatprep.subr.bf16.mxu1 %v4091_v5  ;;  %v4109_v20 = vld [vmem:[%s7090_s2 + $0x104] ss:$16 sps:$4 sm:$0xff]   ;;  %v4111_v22 = vld [vmem:[%s7090_s2 + $0x100] ss:$16 sps:$4 sm:$0xff]   ;;  %v500_v29 = vld [vmem:[%s5179_s14 + $0x18] sm:$0xff]  ;;  %s3516_s21 = sshll.u32 %s6909_s30, 4  ;;  %s7038_s10 = scalar_lea.hbm %s7095_s7, %s3890_s23  ;;  %s7040_s21 = int_to_ptr.vmem [resolvable:$true] %s3516_s21 }
  0x62   : > { %v497_v21 = vld [vmem:[%s5179_s14] sm:$0xff]  ;;  %v499_v25 = vld [vmem:[%s5179_s14 + $0x10] sm:$0xff]  ;;  %v502_v30 = vld [vmem:[%s5179_s14 + $0x28] sm:$0xff]  ;;  %s3502_s28 = scalar_lea.sflag [#allocation4], %s5109_s12  ;;  %s4848_s22 = scalar_lea.vmem %s7040_s21, 8192 }
  0x63   : > { %532 = vperm.xlu0 %4083, %v497_v21   ;;  %v4112_v23 = vld [vmem:[%s7090_s2 + $0x124] ss:$16 sps:$4 sm:$0xff]   ;;  %542 = vperm.xlu1 %4084, %v499_v25   ;;  %v4114_v26 = vld [vmem:[%s7090_s2 + $0x120] ss:$16 sps:$4 sm:$0xff]   ;;  %v504_v34 = vld [vmem:[%s5179_s14 + $0x38] sm:$0xff]  ;;  %p4849_p6 = scmp.ne.s32.totalorder %s7040_s21, %s4848_s22 }
  0x64   : > { %1164 = vmatpush1.bf16.msra.mxu1 %v4093_v6  ;;  %v501_v27 = vld [vmem:[%s5179_s14 + $0x20] sm:$0xff]  ;;  %v503_v32 = vld [vmem:[%s5179_s14 + $0x30] sm:$0xff]  ;;  %v506_v38 = vld [vmem:[%s5179_s14 + $0x48] sm:$0xff] }
  0x65   : > { %1165 = vmatprep.subr.bf16.mxu1 %v4094_v7  ;;  %v4115_v28 = vld [vmem:[%s7090_s2 + $0x144] ss:$16 sps:$4 sm:$0xff]   ;;  %v4117_v31 = vld [vmem:[%s7090_s2 + $0x140] ss:$16 sps:$4 sm:$0xff]   ;;  %v508_v42 = vld [vmem:[%s5179_s14 + $0x58] sm:$0xff]  ;;  %p4850_p8 = pnand %p4849_p6, %p5061_p12 }
  0x66   : > { %v4118_v33 = vld [vmem:[%s7090_s2 + $0x164] ss:$16 sps:$4 sm:$0xff]   ;;  %v4120_v35 = vld [vmem:[%s7090_s2 + $0x160] ss:$16 sps:$4 sm:$0xff]   ;;  %v510_v46 = vld [vmem:[%s5179_s14 + $0x68] sm:$0xff] }
  0x67   : > { %537 = vperm.xlu0 %4083, %v498_v24   ;;  %547 = vperm.xlu1 %4084, %v500_v29   ;;  %v505_v36 = vld [vmem:[%s5179_s14 + $0x40] sm:$0xff]  ;;  %v507_v40 = vld [vmem:[%s5179_s14 + $0x50] sm:$0xff]  ;;  %v512_v52 = vld [vmem:[%s5179_s14 + $0x78] sm:$0xff]  ;;  %p4851_p10 = pneg %p4850_p8 }
  0x68   : > { %1166 = vmatpush1.bf16.msra.mxu1 %v4096_v8  ;;  %v4121_v37 = vld [vmem:[%s7090_s2 + $0x184] ss:$16 sps:$4 sm:$0xff]   ;;  %v4123_v39 = vld [vmem:[%s7090_s2 + $0x180] ss:$16 sps:$4 sm:$0xff]   ;;  %v514_v59 = vld [vmem:[%s5179_s14 + $0x88] sm:$0xff] }
  0x69   : > { %1167 = vmatprep.subr.bf16.mxu1 %v4097_v9  ;;  %v4124_v41 = vld [vmem:[%s7090_s2 + $0x1a4] ss:$16 sps:$4 sm:$0xff]   ;;  %v4126_v43 = vld [vmem:[%s7090_s2 + $0x1a0] ss:$16 sps:$4 sm:$0xff]   ;;  %v4133_v60 = vld [vmem:[%s7090_s2 + $0x8] ss:$16 sps:$4 sm:$0xff]  }
  0x6a   : > { %v509_v44 = vld [vmem:[%s5179_s14 + $0x60] sm:$0xff]  ;;  %v511_v48 = vld [vmem:[%s5179_s14 + $0x70] sm:$0xff]  ;;  %v4138_v63 = vld [vmem:[%s7090_s2 + $0x2c] ss:$16 sps:$4 sm:$0xff]  }
  0x6b   : > { %552 = vperm.xlu0 %4083, %v501_v27   ;;  %557 = vperm.xlu1 %4084, %v502_v30   ;;  %v4127_v45 = vld [vmem:[%s7090_s2 + $0x1c4] ss:$16 sps:$4 sm:$0xff]   ;;  %v4129_v47 = vld [vmem:[%s7090_s2 + $0x1c0] ss:$16 sps:$4 sm:$0xff]   ;;  %v4136_v2 = vld [vmem:[%s7090_s2 + $0x28] ss:$16 sps:$4 sm:$0xff]  }
  0x6c   : > { %1168 = vmatpush1.bf16.msra.mxu1 %v4099_v10  ;;  %v4130_v49 = vld [vmem:[%s7090_s2 + $0x1e4] ss:$16 sps:$4 sm:$0xff]   ;;  %v4132_v50 = vld [vmem:[%s7090_s2 + $0x1e0] ss:$16 sps:$4 sm:$0xff]   ;;  %v516_v3 = vld [vmem:[%s5179_s14 + $0x98] sm:$0xff] }
  0x6d   : > { %1169 = vmatprep.subr.bf16.mxu1 %v4100_v11  ;;  %v337_v51 = vld [vmem:[%s5115_s11] sm:$0xff]  ;;  %v339_v53 = vld [vmem:[%s5115_s11 + $0x10] sm:$0xff]  ;;  %v346_v4 = vld [vmem:[%s5115_s11 + $0x48] sm:$0xff] }
  0x6e   : > { %v513_v54 = vld [vmem:[%s5179_s14 + $0x80] sm:$0xff]  ;;  %v5256_v58 = vpack.c.bf16 %v339_v53, %v337_v51  ;;  %v515_v62 = vld [vmem:[%s5179_s14 + $0x90] sm:$0xff]  ;;  %v348_v5 = vld [vmem:[%s5115_s11 + $0x58] sm:$0xff] }
  0x6f   : > { %562 = vperm.xlu0 %4083, %v503_v32   ;;  %567 = vperm.xlu1 %4084, %v504_v34   ;;  %v341_v0 = vld [vmem:[%s5115_s11 + $0x20] sm:$0xff]  ;;  %v343_v1 = vld [vmem:[%s5115_s11 + $0x30] sm:$0xff]  ;;  %v4141_v7 = vld [vmem:[%s7090_s2 + $0x4c] ss:$16 sps:$4 sm:$0xff]   ;;  %v5285_v10 = vpack.c.bf16 %v348_v5, %v346_v4 }
  0x70   : > { %1170 = vmatpush1.bf16.msra.mxu1 %v4102_v12  ;;  %v517_v6 = vld [vmem:[%s5179_s14 + $0xa0] sm:$0xff]  ;;  %v5282_v8 = vpack.c.bf16 %v343_v1, %v341_v0  ;;  %v518_v9 = vld [vmem:[%s5179_s14 + $0xa8] sm:$0xff]  ;;  %v519_v12 = vld [vmem:[%s5179_s14 + $0xb0] sm:$0xff] }
  0x71   : > { %1171 = vmatprep.subr.bf16.mxu1 %v4103_v13  ;;  %v4139_v11 = vld [vmem:[%s7090_s2 + $0x48] ss:$16 sps:$4 sm:$0xff]   ;;  %v4144_v13 = vld [vmem:[%s7090_s2 + $0x6c] ss:$16 sps:$4 sm:$0xff]   ;;  %v345_v14 = vld [vmem:[%s5115_s11 + $0x40] sm:$0xff] }
  0x72   : > { %v347_v15 = vld [vmem:[%s5115_s11 + $0x50] sm:$0xff]  ;;  %v521_v21 = vld [vmem:[%s5179_s14 + $0xc0] sm:$0xff]  ;;  %v4145_v24 = vld [vmem:[%s7090_s2 + $0x88] ss:$16 sps:$4 sm:$0xff]  }
  0x73   : > { %572 = vperm.xlu0 %4083, %v505_v36   ;;  %577 = vperm.xlu1 %4084, %v506_v38   ;;  %v523_v25 = vld [vmem:[%s5179_s14 + $0xd0] sm:$0xff]  ;;  %v4150_v27 = vld [vmem:[%s7090_s2 + $0xac] ss:$16 sps:$4 sm:$0xff]   ;;  %v349_v30 = vld [vmem:[%s5115_s11 + $0x60] sm:$0xff] }
  0x74   : > { %1172 = vmatpush1.bf16.msra.mxu1 %v4105_v17  ;;  %v4142_v17 = vld [vmem:[%s7090_s2 + $0x68] ss:$16 sps:$4 sm:$0xff]   ;;  %v4153_v36 = vld [vmem:[%s7090_s2 + $0xcc] ss:$16 sps:$4 sm:$0xff]  }
  0x75   : > { %1173 = vmatprep.subr.bf16.mxu1 %v4106_v18  ;;  %v350_v18 = vld [vmem:[%s5115_s11 + $0x68] sm:$0xff]  ;;  %v524_v29 = vld [vmem:[%s5179_s14 + $0xd8] sm:$0xff] }
  0x76   : > { %v4148_v32 = vld [vmem:[%s7090_s2 + $0xa8] ss:$16 sps:$4 sm:$0xff]   ;;  %v4162_v53 = vld [vmem:[%s7090_s2 + $0x12c] ss:$16 sps:$4 sm:$0xff]  }
  0x77   : > { %582 = vperm.xlu0 %4083, %v507_v40   ;;  %587 = vperm.xlu1 %4084, %v508_v42   ;;  %v354_v34 = vld [vmem:[%s5115_s11 + $0x88] sm:$0xff] }
  0x78   : > { %1174 = vmatpush1.bf16.msra.mxu1 %v4108_v19  ;;  %v352_v19 = vld [vmem:[%s5115_s11 + $0x78] sm:$0xff]  ;;  %v362_v57 = vld [vmem:[%s5115_s11 + $0xc8] sm:$0xff] }
  0x79   : > { %1175 = vmatprep.subr.bf16.mxu1 %v4109_v20  ;;  %v4147_v20 = vld [vmem:[%s7090_s2 + $0x8c] ss:$16 sps:$4 sm:$0xff]   ;;  %v4151_v38 = vld [vmem:[%s7090_s2 + $0xc8] ss:$16 sps:$4 sm:$0xff]  }
  0x7a   : > { %v4160_v56 = vld [vmem:[%s7090_s2 + $0x128] ss:$16 sps:$4 sm:$0xff]   ;;  %v4168_v1 = vld [vmem:[%s7090_s2 + $0x16c] ss:$16 sps:$4 sm:$0xff]  }
  0x7b   : > { %592 = vperm.xlu0 %4083, %v509_v44   ;;  %597 = vperm.xlu1 %4084, %v510_v46   ;;  %v353_v44 = vld [vmem:[%s5115_s11 + $0x80] sm:$0xff]  ;;  %v4154_v46 = vld [vmem:[%s7090_s2 + $0xe8] ss:$16 sps:$4 sm:$0xff]  }
  0x7c   : > { %1176 = vmatpush1.bf16.msra.mxu1 %v4111_v22  ;;  %v520_v22 = vld [vmem:[%s5179_s14 + $0xb8] sm:$0xff]  ;;  %v366_v5 = vld [vmem:[%s5115_s11 + $0xe8] sm:$0xff] }
  0x7d   : > { %1177 = vmatprep.subr.bf16.mxu1 %v4112_v23  ;;  %v522_v23 = vld [vmem:[%s5179_s14 + $0xc8] sm:$0xff] }
  0x7e   : > { %v4163_v0 = vld [vmem:[%s7090_s2 + $0x148] ss:$16 sps:$4 sm:$0xff]  }
  0x7f   : > { %602 = vperm.xlu0 %4083, %v511_v48   ;;  %607 = vperm.xlu1 %4084, %v512_v52   ;;  %v360_v48 = vld [vmem:[%s5115_s11 + $0xb8] sm:$0xff] }
  0x80   : > { %1178 = vmatpush1.bf16.msra.mxu1 %v4114_v26  ;;  %v5313_v26 = vpack.c.bf16 %v347_v15, %v345_v14  ;;  %v4166_v4 = vld [vmem:[%s7090_s2 + $0x168] ss:$16 sps:$4 sm:$0xff]   ;;  %v365_v14 = vld [vmem:[%s5115_s11 + $0xe0] sm:$0xff]  ;;  %v367_v15 = vld [vmem:[%s5115_s11 + $0xf0] sm:$0xff] }
  0x81   : > { %1179 = vmatprep.subr.bf16.mxu1 %v4115_v28  ;;  %v5318_v28 = vpack.c.bf16 %v352_v19, %v350_v18  ;;  %v370_v18 = vld [vmem:[%s5115_s11 + $0x108] sm:$0xff]  ;;  %v372_v19 = vld [vmem:[%s5115_s11 + $0x118] sm:$0xff] }
  0x83   : > { %612 = vperm.xlu0 %4083, %v513_v54   ;;  %617 = vperm.xlu1 %4084, %v514_v59   ;;  %v357_v54 = vld [vmem:[%s5115_s11 + $0xa0] sm:$0xff]  ;;  %v364_v59 = vld [vmem:[%s5115_s11 + $0xd8] sm:$0xff] }
  0x84   : > { %1180 = vmatpush1.bf16.msra.mxu1 %v4117_v31  ;;  %v351_v31 = vld [vmem:[%s5115_s11 + $0x70] sm:$0xff] }
  0x85   : > { %1181 = vmatprep.subr.bf16.mxu1 %v4118_v33  ;;  %v525_v33 = vld [vmem:[%s5179_s14 + $0xe0] sm:$0xff]  ;;  %v5339_v40 = vpack.c.bf16 %v351_v31, %v349_v30  ;;  %v371_v31 = vld [vmem:[%s5115_s11 + $0x110] sm:$0xff] }
  0x86   : > { %v369_v30 = vld [vmem:[%s5115_s11 + $0x100] sm:$0xff] }
  0x87   : > { %622 = vperm.xlu0 %4083, %v515_v62   ;;  %627 = vperm.xlu1 %4084, %v516_v3   ;;  %v363_v3 = vld [vmem:[%s5115_s11 + $0xd0] sm:$0xff] }
  0x88   : > { %1182 = vmatpush1.bf16.msra.mxu1 %v4120_v35  ;;  %v356_v35 = vld [vmem:[%s5115_s11 + $0x98] sm:$0xff] }
  0x89   : > { %1183 = vmatprep.subr.bf16.mxu1 %v4121_v37  ;;  %v526_v37 = vld [vmem:[%s5179_s14 + $0xe8] sm:$0xff]  ;;  %v5344_v42 = vpack.c.bf16 %v356_v35, %v354_v34  ;;  %v376_v34 = vld [vmem:[%s5115_s11 + $0x138] sm:$0xff] }
  0x8a   : > { %v4186_v35 = vld [vmem:[#allocation5 + $0x10] ss:$8 sps:$4 sm:$0xff]  }
  0x8b   : > { %632 = vperm.xlu0 %4083, %v517_v6   ;;  %637 = vperm.xlu1 %4084, %v518_v9   ;;  %v368_v6 = vld [vmem:[%s5115_s11 + $0xf8] sm:$0xff] }
  0x8c   : > { %1184 = vmatpush1.bf16.msra.mxu1 %v4123_v39  ;;  %v527_v39 = vld [vmem:[%s5179_s14 + $0xf0] sm:$0xff] }
  0x8d   : > { %1185 = vmatprep.subr.bf16.mxu1 %v4124_v41  ;;  %v4156_v41 = vld [vmem:[%s7090_s2 + $0xec] ss:$16 sps:$4 sm:$0xff]  }
  0x8f   : > { %642 = vperm.xlu0 %4083, %v519_v12   ;;  %647 = vperm.xlu1 %4084, %v520_v22   ;;  %v4169_v12 = vld [vmem:[%s7090_s2 + $0x188] ss:$16 sps:$4 sm:$0xff]   ;;  %v5427_v22 = vpack.c.bf16 %v372_v19, %v370_v18  ;;  %v4202_v19 = vld [vmem:[#allocation5 + $0x74] ss:$8 sps:$4 sm:$0xff]  }
  0x90   : > { %1186 = vmatpush1.bf16.msra.mxu1 %v4126_v43  ;;  %v528_v43 = vld [vmem:[%s5179_s14 + $0xf8] sm:$0xff] }
  0x91   : > { %1187 = vmatprep.subr.bf16.mxu1 %v4127_v45  ;;  %v355_v45 = vld [vmem:[%s5115_s11 + $0x90] sm:$0xff] }
  0x92   : > { %v5362_v51 = vpack.c.bf16 %v355_v45, %v353_v44  ;;  %v375_v44 = vld [vmem:[%s5115_s11 + $0x130] sm:$0xff]  ;;  %v378_v45 = vld [vmem:[%s5115_s11 + $0x148] sm:$0xff] }
  0x93   : > { %652 = vperm.xlu0 %4083, %v521_v21   ;;  %657 = vperm.xlu1 %4084, %v522_v23   ;;  %v5425_v21 = vpack.c.bf16 %v367_v15, %v365_v14  ;;  %v4175_v23 = vld [vmem:[%s7090_s2 + $0x1c8] ss:$16 sps:$4 sm:$0xff]   ;;  %v5479_v14 = vld [vmem:[%s7091_s3] sm:$0xf] }
  0x94   : > { %1188 = vmatpush1.bf16.msra.mxu1 %v4129_v47  ;;  %v358_v47 = vld [vmem:[%s5115_s11 + $0xa8] sm:$0xff] }
  0x95   : > { %1189 = vmatprep.subr.bf16.mxu1 %v4130_v49  ;;  %v4159_v49 = vld [vmem:[%s7090_s2 + $0x10c] ss:$16 sps:$4 sm:$0xff]   ;;  %v5364_v52 = vpack.c.bf16 %v360_v48, %v358_v47  ;;  %v4192_v47 = vld [vmem:[#allocation5 + $0x30] ss:$8 sps:$4 sm:$0xff]  }
  0x97   : > { %662 = vperm.xlu0 %4083, %v523_v25   ;;  %667 = vperm.xlu1 %4084, %v524_v29   ;;  %v4181_v25 = vld [vmem:[#allocation5 + $0x4] ss:$8 sps:$4 sm:$0xff]   ;;  %v4184_v29 = vld [vmem:[#allocation5 + $0x14] ss:$8 sps:$4 sm:$0xff]  }
  0x98   : > { %1190 = vmatpush1.bf16.msra.mxu1 %v4132_v50  ;;  %v4157_v50 = vld [vmem:[%s7090_s2 + $0x108] ss:$16 sps:$4 sm:$0xff]   ;;  %3051 = vmatprep.subr.bf16.mxu0 %v4181_v25 }
  0x99   : > { %1352 = vmatprep.subr.bf16.mxu1 %v4135_v55  ;;  %v359_v55 = vld [vmem:[%s5115_s11 + $0xb0] sm:$0xff] }
  0x9a   : > { %v5381_v62 = vpack.c.bf16 %v359_v55, %v357_v54  ;;  %v4196_v54 = vld [vmem:[#allocation5 + $0x54] ss:$8 sps:$4 sm:$0xff]   ;;  %v377_v55 = vld [vmem:[%s5115_s11 + $0x140] sm:$0xff] }
  0x9b   : > { %1192 = vmatmul.mubr.bf16.vlgmr.msra.gmra.mrb[0].mxu1 %v5256_v58  ;;  %672 = vperm.xlu0 %4083, %v525_v33   ;;  %v374_v33 = vld [vmem:[%s5115_s11 + $0x128] sm:$0xff] }
  0x9c   : > { %1353 = vmatpush1.bf16.msra.mxu1 %v4133_v60  ;;  %1201 = vmatprep.mubr.bf16.mxu1 %v5262_v61  ;;  %v4165_v60 = vld [vmem:[%s7090_s2 + $0x14c] ss:$16 sps:$4 sm:$0xff]  }
  0x9d   : > { %1354 = vmatprep.subr.bf16.mxu1 %v4138_v63  ;;  %677 = vperm.xlu1 %4084, %v526_v37   ;;  %v5383_v63 = vpack.c.bf16 %v364_v59, %v362_v57  ;;  %v5446_v37 = vpack.c.bf16 %v376_v34, %v374_v33  ;;  %v382_v57 = vld [vmem:[%s5115_s11 + $0x168] sm:$0xff]  ;;  %v384_v59 = vld [vmem:[%s5115_s11 + $0x178] sm:$0xff] }
  0x9e   : > { %v392_v33 = vld [vmem:[%s5115_s11 + $0x1b8] sm:$0xff] }
  0x9f   : > { %682 = vperm.xlu0 %4083, %v527_v39   ;;  %v4189_v39 = vld [vmem:[#allocation5 + $0x20] ss:$8 sps:$4 sm:$0xff]  }
  0xa0   : > { %1355 = vmatpush1.bf16.msra.mxu1 %v4136_v2  ;;  %v361_v2 = vld [vmem:[%s5115_s11 + $0xc0] sm:$0xff] }
  0xa1   : > { %1356 = vmatprep.subr.bf16.mxu1 %v4141_v7  ;;  %687 = vperm.xlu1 %4084, %v528_v43   ;;  %v4171_v7 = vld [vmem:[%s7090_s2 + $0x18c] ss:$16 sps:$4 sm:$0xff]   ;;  %v5403_v9 = vpack.c.bf16 %v363_v3, %v361_v2  ;;  %v373_v43 = vld [vmem:[%s5115_s11 + $0x120] sm:$0xff]  ;;  %v5466_v2 = vpack.c.bf16 %v384_v59, %v382_v57  ;;  %v391_v57 = vld [vmem:[%s5115_s11 + $0x1b0] sm:$0xff] }
  0xa2   : > { %v5454_v48 = vpack.c.bf16 %v375_v44, %v373_v43  ;;  %v4210_v44 = vld [vmem:[#allocation5 + $0x90] ss:$8 sps:$4 sm:$0xff]   ;;  %v394_v59 = vld [vmem:[%s5115_s11 + $0x1c8] sm:$0xff] }
  0xa3   : > { %1202 = vmatmul.mubr.bf16.gmra.mrb[4].mxu1 %v5282_v8 }
  0xa4   : > { %1211 = vmatprep.mubr.bf16.mxu1 %v5285_v10  ;;  %1357 = vmatpush1.bf16.msra.mxu1 %v4139_v11  ;;  %v5405_v11 = vpack.c.bf16 %v368_v6, %v366_v5  ;;  %v381_v5 = vld [vmem:[%s5115_s11 + $0x160] sm:$0xff]  ;;  %v383_v6 = vld [vmem:[%s5115_s11 + $0x170] sm:$0xff] }
  0xa5   : > { %1358 = vmatprep.subr.bf16.mxu1 %v4144_v13  ;;  %v4174_v13 = vld [vmem:[%s7090_s2 + $0x1ac] ss:$16 sps:$4 sm:$0xff]   ;;  %v5483_v18 = vpack.c.bf16 %v383_v6, %v381_v5 }
  0xa8   : > { %1359 = vmatpush1.bf16.msra.mxu1 %v4142_v17  ;;  %v4172_v17 = vld [vmem:[%s7090_s2 + $0x1a8] ss:$16 sps:$4 sm:$0xff]  }
  0xa9   : > { %1360 = vmatprep.subr.bf16.mxu1 %v4147_v20  ;;  %v4177_v20 = vld [vmem:[%s7090_s2 + $0x1cc] ss:$16 sps:$4 sm:$0xff]  }
  0xab   : > { %1212 = vmatmul.mubr.bf16.gmra.mrb[8].mxu1 %v5313_v26 }
  0xac   : > { %1221 = vmatprep.mubr.bf16.mxu1 %v5318_v28  ;;  %1361 = vmatpush1.bf16.msra.mxu1 %v4145_v24  ;;  %v4180_v24 = vld [vmem:[%s7090_s2 + $0x1ec] ss:$16 sps:$4 sm:$0xff]  }
  0xad   : > { %1362 = vmatprep.subr.bf16.mxu1 %v4150_v27  ;;  %v4183_v27 = vld [vmem:[#allocation5] ss:$8 sps:$4 sm:$0xff]  }
  0xae   : > { %3052 = vmatpush1.bf16.msra.mxu0 %v4183_v27  ;;  %v4205_v27 = vld [vmem:[#allocation5 + $0x84] ss:$8 sps:$4 sm:$0xff]  }
  0xaf   : > { %3053 = vmatprep.subr.bf16.mxu0 %v4184_v29  ;;  %v385_v29 = vld [vmem:[%s5115_s11 + $0x180] sm:$0xff] }
  0xb0   : > { %1363 = vmatpush1.bf16.msra.mxu1 %v4148_v32  ;;  %v4178_v32 = vld [vmem:[%s7090_s2 + $0x1e8] ss:$16 sps:$4 sm:$0xff]  }
  0xb1   : > { %1364 = vmatprep.subr.bf16.mxu1 %v4153_v36  ;;  %v5444_v36 = vpack.c.bf16 %v371_v31, %v369_v30  ;;  %v387_v30 = vld [vmem:[%s5115_s11 + $0x190] sm:$0xff]  ;;  %v4207_v31 = vld [vmem:[#allocation5 + $0x80] ss:$8 sps:$4 sm:$0xff]  }
  0xb2   : > { %3054 = vmatpush1.bf16.msra.mxu0 %v4186_v35  ;;  %v5505_v35 = vpack.c.bf16 %v387_v30, %v385_v29  ;;  %v4216_v30 = vld [vmem:[#allocation5 + $0xb0] ss:$8 sps:$4 sm:$0xff]  }
  0xb3   : > { %1222 = vmatmul.mubr.bf16.gmra.mrb[12].mxu1 %v5339_v40 }
  0xb4   : > { %1231 = vmatprep.mubr.bf16.mxu1 %v5344_v42  ;;  %1365 = vmatpush1.bf16.msra.mxu1 %v4151_v38  ;;  %v4187_v38 = vld [vmem:[#allocation5 + $0x24] ss:$8 sps:$4 sm:$0xff]  }
  0xb5   : > { %1366 = vmatprep.subr.bf16.mxu1 %v4156_v41  ;;  %v4190_v41 = vld [vmem:[#allocation5 + $0x34] ss:$8 sps:$4 sm:$0xff]   ;;  %3055 = vmatprep.subr.bf16.mxu0 %v4187_v38 }
  0xb6   : > { %3056 = vmatpush1.bf16.msra.mxu0 %v4189_v39  ;;  %v4208_v38 = vld [vmem:[#allocation5 + $0x94] ss:$8 sps:$4 sm:$0xff]  }
  0xb7   : > { %3057 = vmatprep.subr.bf16.mxu0 %v4190_v41 }
  0xb8   : > { %1367 = vmatpush1.bf16.msra.mxu1 %v4154_v46  ;;  %v380_v46 = vld [vmem:[%s5115_s11 + $0x158] sm:$0xff] }
  0xb9   : > { %1368 = vmatprep.subr.bf16.mxu1 %v4159_v49  ;;  %v5456_v49 = vpack.c.bf16 %v380_v46, %v378_v45 }
  0xba   : > { %3058 = vmatpush1.bf16.msra.mxu0 %v4192_v47 }
  0xbb   : > { %1232 = vmatmul.mubr.bf16.gmra.mrb[16].mxu1 %v5362_v51 }
  0xbc   : > { %1241 = vmatprep.mubr.bf16.mxu1 %v5364_v52  ;;  %1369 = vmatpush1.bf16.msra.mxu1 %v4157_v50  ;;  %v4193_v50 = vld [vmem:[#allocation5 + $0x44] ss:$8 sps:$4 sm:$0xff]  }
  0xbd   : > { %1370 = vmatprep.subr.bf16.mxu1 %v4162_v53  ;;  %v4195_v53 = vld [vmem:[#allocation5 + $0x40] ss:$8 sps:$4 sm:$0xff]   ;;  %3059 = vmatprep.subr.bf16.mxu0 %v4193_v50 }
  0xbe   : > { %3060 = vmatpush1.bf16.msra.mxu0 %v4195_v53  ;;  %v4211_v53 = vld [vmem:[#allocation5 + $0xa4] ss:$8 sps:$4 sm:$0xff]  }
  0xbf   : > { %3061 = vmatprep.subr.bf16.mxu0 %v4196_v54 }
  0xc0   : > { %1371 = vmatpush1.bf16.msra.mxu1 %v4160_v56  ;;  %v379_v56 = vld [vmem:[%s5115_s11 + $0x150] sm:$0xff] }
  0xc1   : > { %1372 = vmatprep.subr.bf16.mxu1 %v4165_v60  ;;  %v4198_v60 = vld [vmem:[#allocation5 + $0x50] ss:$8 sps:$4 sm:$0xff]  }
  0xc2   : > { %3062 = vmatpush1.bf16.msra.mxu0 %v4198_v60  ;;  %v396_v60 = vld [vmem:[%s5115_s11 + $0x1d8] sm:$0xff] }
  0xc3   : > { %1242 = vmatmul.mubr.bf16.gmra.mrb[20].mxu1 %v5381_v62 }
  0xc4   : > { %1251 = vmatprep.mubr.bf16.mxu1 %v5383_v63  ;;  %1373 = vmatpush1.bf16.msra.mxu1 %v4163_v0  ;;  %v691_v0 = vlaneseq }
  0xc5   : > { %1374 = vmatprep.subr.bf16.mxu1 %v4168_v1  ;;  %v5464_v1 = vpack.c.bf16 %v379_v56, %v377_v55  ;;  %v389_v56 = vld [vmem:[%s5115_s11 + $0x1a0] sm:$0xff] }
  0xc6   : > { %v5468_v3 = vshrl.u32 %v691_v0, 7 }
  0xc8   : > { %1375 = vmatpush1.bf16.msra.mxu1 %v4166_v4  ;;  %7132 = vst [vmem:[#allocation11_spill] sm:$0xff] %v5468_v3  ;;  %v4199_v4 = vld [vmem:[#allocation5 + $0x64] ss:$8 sps:$4 sm:$0xff]   ;;  %v7100_v15 = vsub.s32 2, %v5468_v3 }
  0xc9   : > { %1376 = vmatprep.subr.bf16.mxu1 %v4171_v7  ;;  %v4201_v7 = vld [vmem:[#allocation5 + $0x60] ss:$8 sps:$4 sm:$0xff]   ;;  %3063 = vmatprep.subr.bf16.mxu0 %v4199_v4 }
  0xca   : > { %3064 = vmatpush1.bf16.msra.mxu0 %v4201_v7  ;;  %v4213_v4 = vld [vmem:[#allocation5 + $0xa0] ss:$8 sps:$4 sm:$0xff]  }
  0xcb   : > { %1252 = vmatmul.mubr.bf16.gmra.mrb[24].mxu1 %v5403_v9  ;;  %3065 = vmatprep.subr.bf16.mxu0 %v4202_v19 }
  0xcc   : > { %1261 = vmatprep.mubr.bf16.mxu1 %v5405_v11  ;;  %1377 = vmatpush1.bf16.msra.mxu1 %v4169_v12  ;;  %v386_v12 = vld [vmem:[%s5115_s11 + $0x188] sm:$0xff] }
  0xcd   : > { %1378 = vmatprep.subr.bf16.mxu1 %v4174_v13  ;;  %v388_v13 = vld [vmem:[%s5115_s11 + $0x198] sm:$0xff] }
  0xd0   : > { %1379 = vmatpush1.bf16.msra.mxu1 %v4172_v17  ;;  %v7099_v17 = vsub.s32 3, %v5468_v3 }
  0xd1   : > { %1380 = vmatprep.subr.bf16.mxu1 %v4177_v20  ;;  %v5485_v20 = vpack.c.bf16 %v388_v13, %v386_v12  ;;  %v5555_v12 = vpack.c.bf16 %v391_v57, %v389_v56  ;;  %v4217_v56 = vld [vmem:[#allocation5 + $0xc4] ss:$8 sps:$4 sm:$0xff]  }
  0xd2   : > { %v5495_v25 = vrot.slane %v5479_v14, %v7099_v17 }
  0xd3   : > { %1262 = vmatmul.mubr.bf16.gmra.mrb[28].mxu1 %v5425_v21 }
  0xd4   : > { %1271 = vmatprep.mubr.bf16.mxu1 %v5427_v22  ;;  %1381 = vmatpush1.bf16.msra.mxu1 %v4175_v23  ;;  %v4204_v23 = vld [vmem:[#allocation5 + $0x70] ss:$8 sps:$4 sm:$0xff]  }
  0xd5   : > { %1382 = vmatprep.subr.bf16.mxu1 %v4180_v24  ;;  %v5490_v24 = vrot.slane %v5479_v14, %v7100_v15  ;;  %3066 = vmatpush1.bf16.msra.mxu0 %v4204_v23  ;;  %v5565_v23 = vpack.c.bf16 %v396_v60, %v394_v59  ;;  %v398_v59 = vld [vmem:[%s5115_s11 + $0x1e8] sm:$0xff]  ;;  %v400_v60 = vld [vmem:[%s5115_s11 + $0x1f8] sm:$0xff] }
  0xd6   : > { %3067 = vmatprep.subr.bf16.mxu0 %v4205_v27  ;;  %v4214_v27 = vld [vmem:[#allocation5 + $0xb4] ss:$8 sps:$4 sm:$0xff]  }
  0xd8   : > { %1383 = vmatpush1.bf16.msra.mxu1 %v4178_v32  ;;  %v390_v32 = vld [vmem:[%s5115_s11 + $0x1a8] sm:$0xff] }
  0xd9   : > { %3068 = vmatpush1.bf16.msra.mxu0 %v4207_v31  ;;  %v5515_v43 = vpack.c.bf16 %v392_v33, %v390_v32 }
  0xda   : > { %3069 = vmatprep.subr.bf16.mxu0 %v4208_v38 }
  0xdb   : > { %1272 = vmatmul.mubr.bf16.gmra.mrb[32].mxu1 %v5444_v36 }
  0xdc   : > { %1281 = vmatprep.mubr.bf16.mxu1 %v5446_v37 }
  0xdd   : > { %3070 = vmatpush1.bf16.msra.mxu0 %v4210_v44  ;;  %v393_v44 = vld [vmem:[%s5115_s11 + $0x1c0] sm:$0xff] }
  0xde   : > { %3071 = vmatprep.subr.bf16.mxu0 %v4211_v53  ;;  %v395_v53 = vld [vmem:[%s5115_s11 + $0x1d0] sm:$0xff] }
  0xe1   : > { %3072 = vmatpush1.bf16.msra.mxu0 %v4213_v4 }
  0xe2   : > { %v5503_v34 = vpop.permute.xlu0 %532  ;;  %v5517_v45 = vpop.permute.xlu1 %542  ;;  %3073 = vmatprep.subr.bf16.mxu0 %v4214_v27  ;;  %v4219_v27 = vld [vmem:[#allocation5 + $0xc0] ss:$8 sps:$4 sm:$0xff]  }
  0xe3   : > { %1282 = vmatmul.mubr.bf16.gmra.mrb[36].mxu1 %v5454_v48  ;;  %v5509_v39 = vmul.f32 %v5490_v24, %v5503_v34  ;;  %v5513_v41 = vmul.f32 %v5495_v25, %v5503_v34  ;;  %v5523_v47 = vmul.f32 %v5490_v24, %v5517_v45  ;;  %v5527_v50 = vmul.f32 %v5495_v25, %v5517_v45 }
  0xe4   : > { %1291 = vmatprep.mubr.bf16.mxu1 %v5456_v49 }
  0xe5   : > { %7133 = vst [vmem:[#allocation12_spill] sm:$0xff] %v5509_v39  ;;  %7134 = vst [vmem:[#allocation13_spill] sm:$0xff] %v5513_v41  ;;  %3074 = vmatpush1.bf16.msra.mxu0 %v4216_v30 }
  0xe6   : > { %v5519_v46 = vpop.permute.xlu0 %537  ;;  %7135 = vst [vmem:[#allocation14_spill] sm:$0xff] %v5523_v47  ;;  %7136 = vst [vmem:[#allocation15_spill] sm:$0xff] %v5527_v50  ;;  %v5543_v0 = vpop.permute.xlu1 %547  ;;  %3075 = vmatprep.subr.bf16.mxu0 %v4217_v56 }
  0xe7   : > { %v5532_v54 = vmul.f32 %v5490_v24, %v5519_v46  ;;  %v5536_v55 = vmul.f32 %v5495_v25, %v5519_v46  ;;  %v5549_v6 = vmul.f32 %v5490_v24, %v5543_v0  ;;  %v5553_v7 = vmul.f32 %v5495_v25, %v5543_v0 }
  0xe9   : > { %7137 = vst [vmem:[#allocation16_spill] sm:$0xff] %v5532_v54  ;;  %7138 = vst [vmem:[#allocation17_spill] sm:$0xff] %v5536_v55  ;;  %3076 = vmatpush1.bf16.msra.mxu0 %v4219_v27  ;;  %v399_v27 = vld [vmem:[%s5115_s11 + $0x1f0] sm:$0xff] }
  0xea   : > { %v5545_v5 = vpop.permute.xlu0 %552  ;;  %7139 = vst [vmem:[#allocation18_spill] sm:$0xff] %v5549_v6  ;;  %7140 = vst [vmem:[#allocation19_spill] sm:$0xff] %v5553_v7  ;;  %v5567_v29 = vpop.permute.xlu1 %557  ;;  %v4226_v6 = vld [vmem:[#allocation5 + $0xf4] ss:$8 sps:$4 sm:$0xff]  }
  0xeb   : > { %1292 = vmatmul.mubr.bf16.gmra.mrb[40].mxu1 %v5464_v1  ;;  %v5559_v13 = vmul.f32 %v5490_v24, %v5545_v5  ;;  %v5563_v19 = vmul.f32 %v5495_v25, %v5545_v5  ;;  %v5573_v32 = vmul.f32 %v5490_v24, %v5567_v29  ;;  %v5577_v33 = vmul.f32 %v5495_v25, %v5567_v29 }
  0xec   : > { %1301 = vmatprep.mubr.bf16.mxu1 %v5466_v2 }
  0xed   : > { %7141 = vst [vmem:[#allocation20_spill] sm:$0xff] %v5559_v13  ;;  %7142 = vst [vmem:[#allocation21_spill] sm:$0xff] %v5563_v19  ;;  %v4222_v19 = vld [vmem:[#allocation5 + $0xd0] ss:$8 sps:$4 sm:$0xff]  }
  0xee   : > { %v5569_v31 = vpop.permute.xlu0 %562  ;;  %7143 = vst [vmem:[#allocation22_spill] sm:$0xff] %v5573_v32  ;;  %7144 = vst [vmem:[#allocation23_spill] sm:$0xff] %v5577_v33  ;;  %v5593_v4 = vpop.permute.xlu1 %567  ;;  %v5615_v33 = vpack.c.bf16 %v400_v60, %v398_v59  ;;  %v397_v60 = vld [vmem:[%s5115_s11 + $0x1e0] sm:$0xff]  ;;  %s4927_s11 = smov [#allocation7]  }
  0xef   : > { %v5582_v38 = vmul.f32 %v5490_v24, %v5569_v31  ;;  %v5589_v57 = vmul.f32 %v5495_v25, %v5569_v31  ;;  %v5599_v30 = vmul.f32 %v5490_v24, %v5593_v4  ;;  %v5603_v15 = vmul.f32 %v5495_v25, %v5593_v4  ;;  %s4852_s20 = sshll.u32 %s4927_s11, 4  ;;  %s4853_s20 = int_to_ptr.vmem [resolvable:$false] %s4852_s20 }
  0xf0   : > { %v5653_v13 = vpack.c.bf16 %v399_v27, %v397_v60  ;;  %s4854_s14 = scalar_lea.vmem %s4853_s20, 16384  ;;  %p4855_p13 = scmp.lt.s32.totalorder %s7040_s21, %s4853_s20 }
  0xf1   : > { %7145 = vst [vmem:[#allocation24_spill] sm:$0xff] %v5582_v38  ;;  %7146 = vst [vmem:[#allocation25_spill] sm:$0xff] %v5589_v57  ;;  %v5605_v38 = vpack.c.bf16 %v395_v53, %v393_v44  ;;  %p4856_p3 = scmp.lt.s32.totalorder %s4854_s14, %s4848_s22 }
  0xf2   : > { %v5595_v17 = vpop.permute.xlu0 %572  ;;  %7147 = vst [vmem:[#allocation26_spill] sm:$0xff] %v5599_v30  ;;  %7148 = vst [vmem:[#allocation27_spill] sm:$0xff] %v5603_v15  ;;  %v4220_v30 = vld [vmem:[#allocation5 + $0xd4] ss:$8 sps:$4 sm:$0xff]   ;;  %v5617_v32 = vpop.permute.xlu1 %577 }
  0xf3   : > { %1302 = vmatmul.mubr.bf16.gmra.mrb[44].mxu1 %v5483_v18  ;;  %v5609_v57 = vmul.f32 %v5490_v24, %v5595_v17  ;;  %v5613_v56 = vmul.f32 %v5495_v25, %v5595_v17  ;;  %3077 = vmatprep.subr.bf16.mxu0 %v4220_v30  ;;  %v5623_v44 = vmul.f32 %v5490_v24, %v5617_v32  ;;  %v4223_v30 = vld [vmem:[#allocation5 + $0xe4] ss:$8 sps:$4 sm:$0xff]   ;;  %p4857_p7 = por %p4856_p3, %p4855_p13 }
  0xf4   : > { %1311 = vmatprep.mubr.bf16.mxu1 %v5485_v20  ;;  %v5627_v53 = vmul.f32 %v5495_v25, %v5617_v32  ;;  %3078 = vmatpush1.bf16.msra.mxu0 %v4222_v19 }
  0xf5   : > { %7149 = vst [vmem:[#allocation28_spill] sm:$0xff] %v5609_v57  ;;  %7150 = vst [vmem:[#allocation29_spill] sm:$0xff] %v5613_v56  ;;  %3079 = vmatprep.subr.bf16.mxu0 %v4223_v30  ;;  %p4858_p9 = pnand %p4857_p7, %p4851_p10 }
  0xf6   : > { %v5619_v15 = vpop.permute.xlu0 %582  ;;  %7151 = vst [vmem:[#allocation30_spill] sm:$0xff] %v5623_v44  ;;  %7152 = vst [vmem:[#allocation31_spill] sm:$0xff] %v5627_v53  ;;  %v5641_v44 = vpop.permute.xlu1 %587  ;;  %v4225_v53 = vld [vmem:[#allocation5 + $0xe0] ss:$8 sps:$4 sm:$0xff]  }
  0xf7   : > { %v5632_v59 = vmul.f32 %v5490_v24, %v5619_v15  ;;  %v5639_v56 = vmul.f32 %v5495_v25, %v5619_v15  ;;  %v5647_v19 = vmul.f32 %v5490_v24, %v5641_v44 }
  0xf8   : > { %3080 = vmatpush1.bf16.msra.mxu0 %v4225_v53 }
  0xf9   : > { %7153 = vst [vmem:[#allocation32_spill] sm:$0xff] %v5632_v59  ;;  %7154 = vst [vmem:[#allocation33_spill] sm:$0xff] %v5639_v56  ;;  %v5651_v59 = vmul.f32 %v5495_v25, %v5641_v44  ;;  %3081 = vmatprep.subr.bf16.mxu0 %v4226_v6 }
  0xfa   : > { %v5643_v57 = vpop.permute.xlu0 %592  ;;  %7155 = vst [vmem:[#allocation34_spill] sm:$0xff] %v5647_v19  ;;  %v5663_v30 = vpop.permute.xlu1 %597  ;;  %v4228_v19 = vld [vmem:[#allocation5 + $0xf0] ss:$8 sps:$4 sm:$0xff]  }
  0xfb   : > { %1312 = vmatmul.mubr.bf16.gmra.mrb[48].mxu1 %v5505_v35  ;;  %7156 = vst [vmem:[#allocation35_spill] sm:$0xff] %v5651_v59  ;;  %v5657_v7 = vmul.f32 %v5490_v24, %v5643_v57  ;;  %v5661_v56 = vmul.f32 %v5495_v25, %v5643_v57  ;;  %v5669_v59 = vmul.f32 %v5490_v24, %v5663_v30 }
  0xfc   : > { %1321 = vmatprep.mubr.bf16.mxu1 %v5515_v43  ;;  %v5673_v60 = vmul.f32 %v5495_v25, %v5663_v30  ;;  %3082 = vmatpush1.bf16.msra.mxu0 %v4228_v19 }
  0xfd   : > { %7157 = vst [vmem:[#allocation36_spill] sm:$0xff] %v5657_v7  ;;  %7158 = vst [vmem:[#allocation37_spill] sm:$0xff] %v5661_v56 }
  0xfe   : > { %v5665_v50 = vpop.permute.xlu0 %602  ;;  %7159 = vst [vmem:[#allocation38_spill] sm:$0xff] %v5669_v59  ;;  %7160 = vst [vmem:[#allocation39_spill] sm:$0xff] %v5673_v60  ;;  %v5685_v56 = vpop.permute.xlu1 %607 }
  0xff   : > { %v5678_v53 = vmul.f32 %v5490_v24, %v5665_v50  ;;  %v5683_v27 = vmul.f32 %v5495_v25, %v5665_v50  ;;  %v5691_v60 = vmul.f32 %v5490_v24, %v5685_v56  ;;  %v5695_v6 = vmul.f32 %v5495_v25, %v5685_v56 }
 0x101   : > { %7161 = vst [vmem:[#allocation40_spill] sm:$0xff] %v5678_v53  ;;  %7162 = vst [vmem:[#allocation41_spill] sm:$0xff] %v5683_v27 }
 0x102   : > { %v5687_v59 = vpop.permute.xlu0 %612  ;;  %7163 = vst [vmem:[#allocation42_spill] sm:$0xff] %v5691_v60  ;;  %7164 = vst [vmem:[#allocation43_spill] sm:$0xff] %v5695_v6  ;;  %v5705_v27 = vpop.permute.xlu1 %617 }
 0x103   : > { %1322 = vmatmul.mubr.bf16.gmra.mrb[52].mxu1 %v5555_v12  ;;  %v5703_v19 = vmul.f32 %v5495_v25, %v5687_v59  ;;  %v5711_v7 = vmul.f32 %v5490_v24, %v5705_v27  ;;  %v5715_v60 = vmul.f32 %v5495_v25, %v5705_v27 }
 0x104   : > { %1331 = vmatprep.mubr.bf16.mxu1 %v5565_v23 }
 0x105   : > { %7166 = vst [vmem:[#allocation45_spill] sm:$0xff] %v5703_v19  ;;  %7167 = vst [vmem:[#allocation46_spill] sm:$0xff] %v5711_v7 }
 0x106   : > { %v5707_v53 = vpop.permute.xlu0 %622  ;;  %7168 = vst [vmem:[#allocation47_spill] sm:$0xff] %v5715_v60  ;;  %v5727_v6 = vpop.permute.xlu1 %627 }
 0x107   : > { %v5724_v19 = vmul.f32 %v5495_v25, %v5707_v53  ;;  %v5733_v7 = vmul.f32 %v5490_v24, %v5727_v6 }
 0x109   : > { %7170 = vst [vmem:[#allocation49_spill] sm:$0xff] %v5724_v19  ;;  %7171 = vst [vmem:[#allocation50_spill] sm:$0xff] %v5733_v7 }
 0x10a   : > { %v5729_v47 = vpop.permute.xlu0 %632 }
 0x10b   : > { %1332 = vmatmul.mubr.bf16.gmra.mrb[56].mxu1 %v5605_v38  ;;  %v5745_v19 = vmul.f32 %v5495_v25, %v5729_v47 }
 0x10c   : > { %1341 = vmatprep.mubr.bf16.mxu1 %v5615_v33 }
 0x10d   : > { %7174 = vst [vmem:[#allocation53_spill] sm:$0xff] %v5745_v19 }
 0x10e   : > { %v5749_v60 = vpop.permute.xlu0 %642 }
 0x10f   : > { %v5766_v19 = vmul.f32 %v5495_v25, %v5749_v60 }
 0x111   : > { %7178 = vst [vmem:[#allocation57_spill] sm:$0xff] %v5766_v19 }
 0x112   : > { %v5771_v54 = vpop.permute.xlu0 %652 }
 0x113   : > { %1342 = vmatmul.mubr.bf16.gmra.mrb[60].mxu1 %v5653_v13  ;;  %7179 = vst [vmem:[#allocation58_spill] sm:$0xff] %v5771_v54  ;;  %v5787_v19 = vmul.f32 %v5495_v25, %v5771_v54 }
 0x114   : > { %1384 = vmatprep.mubr.bf16.mxu1 %v5167_v16  ;;  %v5699_v16 = vmul.f32 %v5490_v24, %v5687_v59 }
 0x115   : > { %7183 = vst [vmem:[#allocation62_spill] sm:$0xff] %v5787_v19 }
 0x116   : > { %7165 = vst [vmem:[#allocation44_spill] sm:$0xff] %v5699_v16  ;;  %v5720_v16 = vmul.f32 %v5490_v24, %v5707_v53 }
 0x118   : > { %7169 = vst [vmem:[#allocation48_spill] sm:$0xff] %v5720_v16  ;;  %v5741_v16 = vmul.f32 %v5490_v24, %v5729_v47 }
 0x11a   : > { %7173 = vst [vmem:[#allocation52_spill] sm:$0xff] %v5741_v16  ;;  %v5762_v16 = vmul.f32 %v5490_v24, %v5749_v60 }
 0x11b   : > { %1385 = vmatmul.mubr.bf16.vlgmr.msra.gmra.mrb[64].mxu1 %v5256_v58  ;;  %v5737_v58 = vmul.f32 %v5495_v25, %v5727_v6 }
 0x11c   : > { %1394 = vmatprep.mubr.bf16.mxu1 %v5262_v61  ;;  %v5747_v61 = vpop.permute.xlu1 %637  ;;  %7177 = vst [vmem:[#allocation56_spill] sm:$0xff] %v5762_v16  ;;  %v5783_v16 = vmul.f32 %v5490_v24, %v5771_v54 }
 0x11d   : > { %7172 = vst [vmem:[#allocation51_spill] sm:$0xff] %v5737_v58  ;;  %v5753_v55 = vmul.f32 %v5490_v24, %v5747_v61  ;;  %v5757_v7 = vmul.f32 %v5495_v25, %v5747_v61 }
 0x11e   : > { %7182 = vst [vmem:[#allocation61_spill] sm:$0xff] %v5783_v16 }
 0x11f   : > { %7175 = vst [vmem:[#allocation54_spill] sm:$0xff] %v5753_v55  ;;  %7176 = vst [vmem:[#allocation55_spill] sm:$0xff] %v5757_v7  ;;  %v5791_v7 = vpop.permute.xlu0 %662 }
 0x120   : > { %v5769_v58 = vpop.permute.xlu1 %647  ;;  %7185 = vst [vmem:[#allocation64_spill] sm:$0xff] %v5791_v7  ;;  %v5804_v16 = vmul.f32 %v5490_v24, %v5791_v7  ;;  %v5808_v19 = vmul.f32 %v5495_v25, %v5791_v7  ;;  %v4231_v7 = vld [vmem:[#allocation5 + $0x104] ss:$8 sps:$4 sm:$0xff]  }
 0x121   : > { %v5775_v55 = vmul.f32 %v5490_v24, %v5769_v58  ;;  %3244 = vmatprep.subr.bf16.mxu0 %v4231_v7 }
 0x122   : > { %7188 = vst [vmem:[#allocation67_spill] sm:$0xff] %v5804_v16  ;;  %7189 = vst [vmem:[#allocation68_spill] sm:$0xff] %v5808_v19 }
 0x123   : > { %1395 = vmatmul.mubr.bf16.gmra.mrb[68].mxu1 %v5282_v8  ;;  %7180 = vst [vmem:[#allocation59_spill] sm:$0xff] %v5775_v55  ;;  %v5779_v8 = vmul.f32 %v5495_v25, %v5769_v58  ;;  %v5813_v39 = vpop.permute.xlu0 %672 }
 0x124   : > { %1404 = vmatprep.mubr.bf16.mxu1 %v5285_v10  ;;  %v5789_v10 = vpop.permute.xlu1 %657  ;;  %7191 = vst [vmem:[#allocation70_spill] sm:$0xff] %v5813_v39  ;;  %v5825_v16 = vmul.f32 %v5490_v24, %v5813_v39  ;;  %v5829_v19 = vmul.f32 %v5495_v25, %v5813_v39 }
 0x125   : > { %7181 = vst [vmem:[#allocation60_spill] sm:$0xff] %v5779_v8  ;;  %7184 = vst [vmem:[#allocation63_spill] sm:$0xff] %v5789_v10  ;;  %v5795_v41 = vmul.f32 %v5490_v24, %v5789_v10  ;;  %v5799_v55 = vmul.f32 %v5495_v25, %v5789_v10 }
 0x126   : > { %7194 = vst [vmem:[#allocation73_spill] sm:$0xff] %v5825_v16  ;;  %7195 = vst [vmem:[#allocation74_spill] sm:$0xff] %v5829_v19 }
 0x127   : > { %7186 = vst [vmem:[#allocation65_spill] sm:$0xff] %v5795_v41  ;;  %7187 = vst [vmem:[#allocation66_spill] sm:$0xff] %v5799_v55  ;;  %v5833_v55 = vpop.permute.xlu0 %682 }
 0x128   : > { %v5811_v8 = vpop.permute.xlu1 %667  ;;  %7197 = vst [vmem:[#allocation76_spill] sm:$0xff] %v5833_v55  ;;  %v5846_v16 = vmul.f32 %v5490_v24, %v5833_v55  ;;  %v5850_v19 = vmul.f32 %v5495_v25, %v5833_v55 }
 0x129   : > { %7190 = vst [vmem:[#allocation69_spill] sm:$0xff] %v5811_v8  ;;  %v5817_v41 = vmul.f32 %v5490_v24, %v5811_v8 }
 0x12a   : > { %7200 = vst [vmem:[#allocation79_spill] sm:$0xff] %v5846_v16  ;;  %7201 = vst [vmem:[#allocation80_spill] sm:$0xff] %v5850_v19 }
 0x12b   : > { %1405 = vmatmul.mubr.bf16.gmra.mrb[72].mxu1 %v5313_v26  ;;  %7192 = vst [vmem:[#allocation71_spill] sm:$0xff] %v5817_v41  ;;  %v5821_v26 = vmul.f32 %v5495_v25, %v5811_v8 }
 0x12c   : > { %1414 = vmatprep.mubr.bf16.mxu1 %v5318_v28  ;;  %v5831_v28 = vpop.permute.xlu1 %677 }
 0x12d   : > { %7193 = vst [vmem:[#allocation72_spill] sm:$0xff] %v5821_v26  ;;  %7196 = vst [vmem:[#allocation75_spill] sm:$0xff] %v5831_v28  ;;  %v5837_v41 = vmul.f32 %v5490_v24, %v5831_v28  ;;  %v5841_v26 = vmul.f32 %v5495_v25, %v5831_v28 }
 0x12f   : > { %7198 = vst [vmem:[#allocation77_spill] sm:$0xff] %v5837_v41  ;;  %7199 = vst [vmem:[#allocation78_spill] sm:$0xff] %v5841_v26 }
 0x130   : > { %v5853_v39 = vpop.permute.xlu1 %687 }
 0x131   : > { %7202 = vst [vmem:[#allocation81_spill] sm:$0xff] %v5853_v39  ;;  %v5857_v41 = vmul.f32 %v5490_v24, %v5853_v39 }
 0x133   : > { %1415 = vmatmul.mubr.bf16.gmra.mrb[76].mxu1 %v5339_v40  ;;  %7203 = vst [vmem:[#allocation82_spill] sm:$0xff] %v5857_v41  ;;  %v5861_v40 = vmul.f32 %v5495_v25, %v5853_v39 }
 0x134   : > { %1424 = vmatprep.mubr.bf16.mxu1 %v5344_v42  ;;  %v5875_v42 = vsub.s32 0, %v5468_v3 }
 0x135   : > { %7204 = vst [vmem:[#allocation83_spill] sm:$0xff] %v5861_v40 }
 0x136   : > { %7205 = vst [vmem:[#allocation84_spill] sm:$0xff] %v5875_v42 }
 0x13b   : > { %1425 = vmatmul.mubr.bf16.gmra.mrb[80].mxu1 %v5362_v51  ;;  %v5879_v51 = vsub.s32 1, %v5468_v3 }
 0x13c   : > { %1434 = vmatprep.mubr.bf16.mxu1 %v5364_v52  ;;  %v5883_v52 = vrot.slane %v5479_v14, %v5875_v42 }
 0x13d   : > { %7206 = vst [vmem:[#allocation85_spill] sm:$0xff] %v5879_v51 }
 0x143   : > { %1435 = vmatmul.mubr.bf16.gmra.mrb[84].mxu1 %v5381_v62  ;;  %v1545_v62 = vld [vmem:[%s7092_s4] sm:$0xf] }
 0x144   : > { %1444 = vmatprep.mubr.bf16.mxu1 %v5383_v63  ;;  %v5890_v63 = vrot.slane %v5479_v14, %v5879_v51 }
 0x146   : > { %v6044_v39 = vmul.f32 %v5890_v63, %v5665_v50 }
 0x14b   : > { %1445 = vmatmul.mubr.bf16.gmra.mrb[88].mxu1 %v5403_v9  ;;  %v711_v9 = vmul.f32 %v5883_v52, %v5503_v34 }
 0x14c   : > { %1454 = vmatprep.mubr.bf16.mxu1 %v5405_v11  ;;  %v5897_v11 = vrot.slane %v1545_v62, %v5875_v42 }
 0x153   : > { %1455 = vmatmul.mubr.bf16.gmra.mrb[92].mxu1 %v5425_v21 }
 0x154   : > { %1464 = vmatprep.mubr.bf16.mxu1 %v5427_v22  ;;  %v712_v22 = vmul.f32 %v5890_v63, %v5503_v34 }
 0x15b   : > { %1465 = vmatmul.mubr.bf16.gmra.mrb[96].mxu1 %v5444_v36  ;;  %v5902_v36 = vrot.slane %v1545_v62, %v5879_v51 }
 0x15c   : > { %1474 = vmatprep.mubr.bf16.mxu1 %v5446_v37 }
 0x163   : > { %1475 = vmatmul.mubr.bf16.gmra.mrb[100].mxu1 %v5454_v48 }
 0x164   : > { %1484 = vmatprep.mubr.bf16.mxu1 %v5456_v49  ;;  %v715_v49 = vmul.f32 %v5883_v52, %v5519_v46 }
 0x16b   : > { %1485 = vmatmul.mubr.bf16.gmra.mrb[104].mxu1 %v5464_v1 }
 0x16c   : > { %1494 = vmatprep.mubr.bf16.mxu1 %v5466_v2  ;;  %v716_v2 = vmul.f32 %v5890_v63, %v5519_v46 }
 0x16e   : > { %v1193_v21 = vpop.f32.mrb[0].mxu1 }
 0x16f   : > { %v1194_v37 = vadd.f32 %v1193_v21, %v711_v9  ;;  %v1195_v48 = vpop.f32.mrb[1].mxu1 }
 0x170   : > { %v1196_v1 = vadd.f32 %v1195_v48, %v712_v22  ;;  %v1197_v14 = vpop.f32.mrb[2].mxu1  ;;  %v719_v22 = vmul.f32 %v5883_v52, %v5517_v45 }
 0x171   : > { %v5909_v24 = vadd.f32 %v5897_v11, %v1194_v37  ;;  %v1198_v25 = vadd.f32 %v1197_v14, %v715_v49  ;;  %v1199_v7 = vpop.f32.mrb[3].mxu1 }
 0x172   : > { %v5912_v34 = vadd.f32 %v5902_v36, %v1196_v1  ;;  %v1200_v62 = vadd.f32 %v1199_v7, %v716_v2 }
 0x173   : > { %v3689_v9 = vmul.f32 -1.442695, %v5909_v24  ;;  %v5916_v21 = vadd.f32 %v5897_v11, %v1198_v25  ;;  %1495 = vmatmul.mubr.bf16.gmra.mrb[108].mxu1 %v5483_v18  ;;  %v720_v18 = vmul.f32 %v5890_v63, %v5517_v45  ;;  %v723_v25 = vmul.f32 %v5883_v52, %v5543_v0 }
 0x174   : > { %v3690_v46 = vmul.f32 -1.442695, %v5912_v34  ;;  %v5923_v37 = vadd.f32 %v5902_v36, %v1200_v62  ;;  %1504 = vmatprep.mubr.bf16.mxu1 %v5485_v20  ;;  %v724_v20 = vmul.f32 %v5890_v63, %v5543_v0  ;;  %v731_v0 = vmul.f32 %v5883_v52, %v5567_v29 }
 0x175   : > { %4277 = vpow2.f32 %v3689_v9  ;;  %v3693_v48 = vmul.f32 -1.442695, %v5916_v21 }
 0x176   : > { %4279 = vpow2.f32 %v3690_v46  ;;  %v3694_v49 = vmul.f32 -1.442695, %v5923_v37  ;;  %v1203_v1 = vpop.f32.mrb[4].mxu1 }
 0x177   : > { %4281 = vpow2.f32 %v3693_v48  ;;  %v1204_v14 = vadd.f32 %v1203_v1, %v719_v22  ;;  %v1205_v2 = vpop.f32.mrb[5].mxu1  ;;  %v727_v22 = vmul.f32 %v5883_v52, %v5545_v5  ;;  %v728_v48 = vmul.f32 %v5890_v63, %v5545_v5 }
 0x178   : > { %4283 = vpow2.f32 %v3694_v49  ;;  %v1206_v7 = vadd.f32 %v1205_v2, %v720_v18  ;;  %v1207_v62 = vpop.f32.mrb[6].mxu1  ;;  %v732_v18 = vmul.f32 %v5890_v63, %v5567_v29  ;;  %v735_v5 = vmul.f32 %v5883_v52, %v5569_v31 }
 0x179   : > { %v5935_v9 = vadd.f32 %v5897_v11, %v1204_v14  ;;  %v1208_v46 = vadd.f32 %v1207_v62, %v723_v25  ;;  %v1209_v51 = vpop.f32.mrb[7].mxu1  ;;  %v736_v2 = vmul.f32 %v5890_v63, %v5569_v31  ;;  %v5965_v25 = vmul.f32 %v5883_v52, %v5593_v4 }
 0x17a   : > { %v5938_v42 = vadd.f32 %v5902_v36, %v1206_v7  ;;  %v1210_v45 = vadd.f32 %v1209_v51, %v724_v20  ;;  %v5969_v29 = vmul.f32 %v5890_v63, %v5593_v4  ;;  %v5974_v62 = vmul.f32 %v5883_v52, %v5595_v17 }
 0x17b   : > { %v3697_v49 = vmul.f32 -1.442695, %v5935_v9  ;;  %v5946_v1 = vadd.f32 %v5897_v11, %v1208_v46  ;;  %1505 = vmatmul.mubr.bf16.gmra.mrb[112].mxu1 %v5505_v35  ;;  %v5978_v31 = vmul.f32 %v5890_v63, %v5595_v17  ;;  %v5982_v4 = vmul.f32 %v5883_v52, %v5617_v32 }
 0x17c   : > { %v3698_v51 = vmul.f32 -1.442695, %v5938_v42  ;;  %v5955_v14 = vadd.f32 %v5902_v36, %v1210_v45  ;;  %1514 = vmatprep.mubr.bf16.mxu1 %v5515_v43  ;;  %v5990_v17 = vmul.f32 %v5883_v52, %v5619_v15 }
 0x17d   : > { %4285 = vpow2.f32 %v3697_v49  ;;  %v3701_v35 = vmul.f32 -1.442695, %v5946_v1  ;;  %v5986_v49 = vmul.f32 %v5890_v63, %v5617_v32  ;;  %v5997_v32 = vmul.f32 %v5890_v63, %v5619_v15 }
 0x17e   : > { %4287 = vpow2.f32 %v3698_v51  ;;  %v3702_v43 = vmul.f32 -1.442695, %v5955_v14  ;;  %v1213_v7 = vpop.f32.mrb[8].mxu1 }
 0x17f   : > { %v4278_v20 = vpop.eup %4277  ;;  %4289 = vpow2.f32 %v3701_v35  ;;  %v1214_v46 = vadd.f32 %v1213_v7, %v727_v22  ;;  %v1215_v45 = vpop.f32.mrb[9].mxu1 }
 0x180   : > { %v4280_v51 = vpop.eup %4279  ;;  %v2079_v40 = vadd.f32 1.0, %v4278_v20  ;;  %4291 = vpow2.f32 %v3702_v43  ;;  %v1216_v41 = vadd.f32 %v1215_v45, %v728_v48  ;;  %v1217_v19 = vpop.f32.mrb[10].mxu1 }
 0x181   : > { %v4282_v35 = vpop.eup %4281  ;;  %v2080_v22 = vadd.f32 1.0, %v4280_v51  ;;  %v5993_v7 = vadd.f32 %v5897_v11, %v1214_v46  ;;  %v1218_v16 = vadd.f32 %v1217_v19, %v731_v0  ;;  %v1219_v26 = vpop.f32.mrb[11].mxu1  ;;  %v6032_v0 = vmul.f32 %v5883_v52, %v5663_v30 }
 0x182   : > { %v4284_v3 = vpop.eup %4283  ;;  %4293 = vrcp.f32 %v2079_v40  ;;  %v2083_v43 = vadd.f32 1.0, %v4282_v35  ;;  %v6000_v48 = vadd.f32 %v5902_v36, %v1216_v41  ;;  %v1220_v20 = vadd.f32 %v1219_v26, %v732_v18 }
 0x183   : > { %4295 = vrcp.f32 %v2080_v22  ;;  %v2084_v45 = vadd.f32 1.0, %v4284_v3  ;;  %v3705_v51 = vmul.f32 -1.442695, %v5993_v7  ;;  %v6004_v46 = vadd.f32 %v5897_v11, %v1218_v16  ;;  %1515 = vmatmul.mubr.bf16.gmra.mrb[116].mxu1 %v5555_v12 }
 0x184   : > { %4297 = vrcp.f32 %v2083_v43  ;;  %v3706_v15 = vmul.f32 -1.442695, %v6000_v48  ;;  %v6009_v19 = vadd.f32 %v5902_v36, %v1220_v20  ;;  %1524 = vmatprep.mubr.bf16.mxu1 %v5565_v23  ;;  %v6014_v41 = vmul.f32 %v5883_v52, %v5641_v44 }
 0x185   : > { %4299 = vrcp.f32 %v2084_v45  ;;  %v3709_v3 = vmul.f32 -1.442695, %v6004_v46  ;;  %v6019_v16 = vmul.f32 %v5890_v63, %v5641_v44  ;;  %v6023_v12 = vmul.f32 %v5883_v52, %v5643_v57 }
 0x186   : > { %4301 = vpow2.f32 %v3705_v51  ;;  %v3710_v26 = vmul.f32 -1.442695, %v6009_v19  ;;  %v1223_v40 = vpop.f32.mrb[12].mxu1  ;;  %v6028_v23 = vmul.f32 %v5890_v63, %v5643_v57  ;;  %v6036_v22 = vmul.f32 %v5890_v63, %v5663_v30 }
 0x187   : > { %v4286_v18 = vpop.eup %4285  ;;  %4303 = vpow2.f32 %v3706_v15  ;;  %v1224_v44 = vadd.f32 %v1223_v40, %v735_v5  ;;  %v1225_v35 = vpop.f32.mrb[13].mxu1  ;;  %v6040_v43 = vmul.f32 %v5883_v52, %v5665_v50 }
 0x188   : > { %v4288_v20 = vpop.eup %4287  ;;  %v2087_v45 = vadd.f32 1.0, %v4286_v18  ;;  %4305 = vpow2.f32 %v3709_v3  ;;  %v1226_v57 = vadd.f32 %v1225_v35, %v736_v2  ;;  %v1227_v51 = vpop.f32.mrb[14].mxu1 }
 0x189   : > { %v4290_v15 = vpop.eup %4289  ;;  %v2088_v5 = vadd.f32 1.0, %v4288_v20  ;;  %4307 = vpow2.f32 %v3710_v26  ;;  %v6047_v40 = vadd.f32 %v5897_v11, %v1224_v44  ;;  %v1228_v30 = vadd.f32 %v1227_v51, %v5965_v25  ;;  %v1229_v55 = vpop.f32.mrb[15].mxu1 }
 0x18a   : > { %v4292_v28 = vpop.eup %4291  ;;  %4309 = vrcp.f32 %v2087_v45  ;;  %v2091_v8 = vadd.f32 1.0, %v4290_v15  ;;  %v6051_v3 = vadd.f32 %v5902_v36, %v1226_v57  ;;  %v1230_v2 = vadd.f32 %v1229_v55, %v5969_v29 }
 0x18b   : > { %4311 = vrcp.f32 %v2088_v5  ;;  %v2092_v50 = vadd.f32 1.0, %v4292_v28  ;;  %v3713_v18 = vmul.f32 -1.442695, %v6047_v40  ;;  %v6056_v26 = vadd.f32 %v5897_v11, %v1228_v30  ;;  %1525 = vmatmul.mubr.bf16.gmra.mrb[120].mxu1 %v5605_v38 }
 0x18c   : > { %v4294_v44 = vpop.eup %4293  ;;  %4313 = vrcp.f32 %v2091_v8  ;;  %v3714_v25 = vmul.f32 -1.442695, %v6051_v3  ;;  %v6061_v35 = vadd.f32 %v5902_v36, %v1230_v2  ;;  %1534 = vmatprep.mubr.bf16.mxu1 %v5615_v33  ;;  %v6066_v55 = vmul.f32 %v5883_v52, %v5685_v56 }
 0x18d   : > { %v4296_v28 = vpop.eup %4295  ;;  %4315 = vrcp.f32 %v2092_v50  ;;  %v3717_v29 = vmul.f32 -1.442695, %v6056_v26  ;;  %v6071_v38 = vmul.f32 %v5890_v63, %v5685_v56  ;;  %v6075_v8 = vmul.f32 %v5883_v52, %v5687_v59 }
 0x18e   : > { %v4298_v20 = vpop.eup %4297  ;;  %4317 = vpow2.f32 %v3713_v18  ;;  %v3718_v33 = vmul.f32 -1.442695, %v6061_v35  ;;  %v1233_v45 = vpop.f32.mrb[16].mxu1  ;;  %v6080_v57 = vmul.f32 %v5890_v63, %v5687_v59  ;;  %v6084_v51 = vmul.f32 %v5883_v52, %v5705_v27 }
 0x18f   : > { %v4300_v15 = vpop.eup %4299  ;;  %v2463_v56 = vmul.f32 %v4294_v44, %v5909_v24  ;;  %4319 = vpow2.f32 %v3714_v25  ;;  %v1234_v5 = vadd.f32 %v1233_v45, %v5974_v62  ;;  %v1235_v30 = vpop.f32.mrb[17].mxu1  ;;  %v2464_v2 = vmul.f32 %v4296_v28, %v5912_v34 }
 0x190   : > { %7207 = vst [vmem:[#allocation86_spill] sm:$0xff] %v6080_v57  ;;  %7208 = vst [vmem:[#allocation87_spill] sm:$0xff] %v6084_v51  ;;  %v4302_v50 = vpop.eup %4301  ;;  %v2467_v18 = vmul.f32 %v4298_v20, %v5916_v21  ;;  %4321 = vpow2.f32 %v3717_v29  ;;  %v1236_v59 = vadd.f32 %v1235_v30, %v5978_v31  ;;  %v1237_v10 = vpop.f32.mrb[18].mxu1  ;;  %v2468_v54 = vmul.f32 %v4300_v15, %v5923_v37 }
 0x191   : > { %v4304_v57 = vpop.eup %4303  ;;  %v2095_v51 = vadd.f32 1.0, %v4302_v50  ;;  %4323 = vpow2.f32 %v3718_v33  ;;  %v6093_v24 = vadd.f32 %v5897_v11, %v1234_v5  ;;  %v1238_v62 = vadd.f32 %v1237_v10, %v5982_v4  ;;  %v1239_v44 = vpop.f32.mrb[19].mxu1  ;;  %v4234_v5 = vld [vmem:[#allocation5 + $0x114] ss:$8 sps:$4 sm:$0xff]  }
 0x192   : > { %v4306_v25 = vpop.eup %4305  ;;  %v2096_v34 = vadd.f32 1.0, %v4304_v57  ;;  %v6097_v28 = vadd.f32 %v5902_v36, %v1236_v59  ;;  %v1240_v21 = vadd.f32 %v1239_v44, %v5986_v49  ;;  %v2592_v31 = vpack.c.bf16 %v2468_v54, %v2464_v2  ;;  %v4229_v54 = vld [vmem:[#allocation5 + $0x100] ss:$8 sps:$4 sm:$0xff]  }
 0x193   : > { %v4308_v29 = vpop.eup %4307  ;;  %4325 = vrcp.f32 %v2095_v51  ;;  %v2099_v37 = vadd.f32 1.0, %v4306_v25  ;;  %v3721_v20 = vmul.f32 -1.442695, %v6093_v24  ;;  %v6102_v33 = vadd.f32 %v5897_v11, %v1238_v62  ;;  %1535 = vmatmul.mubr.bf16.gmra.mrb[124].mxu1 %v5653_v13 }
 0x194   : > { %v4310_v10 = vpop.eup %4309  ;;  %4327 = vrcp.f32 %v2096_v34  ;;  %v2100_v4 = vadd.f32 1.0, %v4308_v29  ;;  %v3722_v45 = vmul.f32 -1.442695, %v6097_v28  ;;  %v6107_v57 = vadd.f32 %v5902_v36, %v1240_v21  ;;  %3083 = vmatprep.mubr.bf16.mxu0 %v2592_v31 }
 0x195   : > { %v4312_v49 = vpop.eup %4311  ;;  %4329 = vrcp.f32 %v2099_v37  ;;  %v3725_v51 = vmul.f32 -1.442695, %v6102_v33  ;;  %v2591_v15 = vpack.c.bf16 %v2467_v18, %v2463_v56  ;;  %v6112_v30 = vmul.f32 %v5890_v63, %v5705_v27  ;;  %v4232_v37 = vld [vmem:[#allocation5 + $0x110] ss:$8 sps:$4 sm:$0xff]  }
 0x196   : > { %v4314_v13 = vpop.eup %4313  ;;  %4331 = vrcp.f32 %v2100_v4  ;;  %v3726_v2 = vmul.f32 -1.442695, %v6107_v57  ;;  %v1243_v50 = vpop.f32.mrb[20].mxu1  ;;  %v6117_v59 = vmul.f32 %v5883_v52, %v5707_v53  ;;  %v6121_v62 = vmul.f32 %v5890_v63, %v5707_v53 }
 0x197   : > { %v4316_v44 = vpop.eup %4315  ;;  %v2471_v56 = vmul.f32 %v4310_v10, %v5935_v9  ;;  %v2472_v18 = vmul.f32 %v4312_v49, %v5938_v42  ;;  %4333 = vpow2.f32 %v3721_v20  ;;  %3084 = vmatmul.mubr.bf16.vlgmr.msra.gmra.mrb[0].mxu0 %v2591_v15  ;;  %v1244_v27 = vadd.f32 %v1243_v50, %v5990_v17  ;;  %v1245_v25 = vpop.f32.mrb[21].mxu1  ;;  %v4237_v10 = vld [vmem:[#allocation5 + $0x124] ss:$8 sps:$4 sm:$0xff]  }
 0x198   : > { %v4318_v34 = vpop.eup %4317  ;;  %v2475_v21 = vmul.f32 %v4314_v13, %v5946_v1  ;;  %v2476_v31 = vmul.f32 %v4316_v44, %v5955_v14  ;;  %4335 = vpow2.f32 %v3722_v45  ;;  %3245 = vmatpush1.bf16.msra.mxu0 %v4229_v54  ;;  %v1246_v53 = vadd.f32 %v1245_v25, %v5997_v32  ;;  %v1247_v29 = vpop.f32.mrb[22].mxu1 }
 0x199   : > { %v4320_v4 = vpop.eup %4319  ;;  %v2103_v9 = vadd.f32 1.0, %v4318_v34  ;;  %4337 = vpow2.f32 %v3725_v51  ;;  %v6130_v42 = vadd.f32 %v5897_v11, %v1244_v27  ;;  %v1248_v17 = vadd.f32 %v1247_v29, %v6014_v41  ;;  %v1249_v20 = vpop.f32.mrb[23].mxu1  ;;  %3246 = vmatprep.subr.bf16.mxu0 %v4234_v5  ;;  %v4235_v27 = vld [vmem:[#allocation5 + $0x120] ss:$8 sps:$4 sm:$0xff]   ;;  %v4240_v29 = vld [vmem:[#allocation5 + $0x134] ss:$8 sps:$4 sm:$0xff]  }
 0x19a   : > { %v4322_v1 = vpop.eup %4321  ;;  %v2104_v49 = vadd.f32 1.0, %v4320_v4  ;;  %4339 = vpow2.f32 %v3726_v2  ;;  %v6134_v14 = vadd.f32 %v5902_v36, %v1246_v53  ;;  %v1250_v32 = vadd.f32 %v1249_v20, %v6019_v16 }
 0x19b   : > { %v4324_v45 = vpop.eup %4323  ;;  %4341 = vrcp.f32 %v2103_v9  ;;  %v2107_v54 = vadd.f32 1.0, %v4322_v1  ;;  %v3729_v51 = vmul.f32 -1.442695, %v6130_v42  ;;  %v6139_v15 = vadd.f32 %v5897_v11, %v1248_v17 }
 0x19c   : > { %4343 = vrcp.f32 %v2104_v49  ;;  %v2108_v41 = vadd.f32 1.0, %v4324_v45  ;;  %v3730_v5 = vmul.f32 -1.442695, %v6134_v14  ;;  %v6143_v13 = vadd.f32 %v5902_v36, %v1250_v32  ;;  %3247 = vmatpush1.bf16.msra.mxu0 %v4232_v37 }
 0x19d   : > { %v4326_v2 = vpop.eup %4325  ;;  %4345 = vrcp.f32 %v2107_v54  ;;  %v3733_v16 = vmul.f32 -1.442695, %v6139_v15  ;;  %v2596_v50 = vpack.c.bf16 %v2476_v31, %v2472_v18  ;;  %v2595_v44 = vpack.c.bf16 %v2475_v21, %v2471_v56  ;;  %3248 = vmatprep.subr.bf16.mxu0 %v4237_v10  ;;  %v4238_v54 = vld [vmem:[#allocation5 + $0x130] ss:$8 sps:$4 sm:$0xff]  }
 0x19e   : > { %v4328_v25 = vpop.eup %4327  ;;  %4347 = vrcp.f32 %v2108_v41  ;;  %v3734_v34 = vmul.f32 -1.442695, %v6143_v13  ;;  %v1253_v53 = vpop.f32.mrb[24].mxu1  ;;  %v6149_v4 = vmul.f32 %v5883_v52, %v5727_v6  ;;  %v6153_v37 = vmul.f32 %v5890_v63, %v5727_v6  ;;  %v4243_v41 = vld [vmem:[#allocation5 + $0x144] ss:$8 sps:$4 sm:$0xff]  }
 0x19f   : > { %v4330_v9 = vpop.eup %4329  ;;  %4349 = vpow2.f32 %v3729_v51  ;;  %3093 = vmatprep.mubr.bf16.mxu0 %v2596_v50  ;;  %v1254_v56 = vadd.f32 %v1253_v53, %v6023_v12  ;;  %v1255_v18 = vpop.f32.mrb[25].mxu1  ;;  %v6158_v21 = vmul.f32 %v5883_v52, %v5729_v47  ;;  %v6162_v31 = vmul.f32 %v5890_v63, %v5729_v47 }
 0x1a0   : > { %v4332_v17 = vpop.eup %4331  ;;  %v2480_v20 = vmul.f32 %v4328_v25, %v6000_v48  ;;  %v2483_v6 = vmul.f32 %v4330_v9, %v6004_v46  ;;  %4351 = vpow2.f32 %v3730_v5  ;;  %3094 = vmatmul.mubr.bf16.gmra.mrb[4].mxu0 %v2595_v44  ;;  %v1256_v10 = vadd.f32 %v1255_v18, %v6028_v23  ;;  %v1257_v1 = vpop.f32.mrb[26].mxu1 }
 0x1a1   : > { %v4334_v12 = vpop.eup %4333  ;;  %v2484_v49 = vmul.f32 %v4332_v17, %v6009_v19  ;;  %4353 = vpow2.f32 %v3733_v16  ;;  %v6169_v32 = vadd.f32 %v5897_v11, %v1254_v56  ;;  %v1258_v47 = vadd.f32 %v1257_v1, %v6032_v0  ;;  %v1259_v45 = vpop.f32.mrb[27].mxu1  ;;  %3249 = vmatpush1.bf16.msra.mxu0 %v4235_v27  ;;  %v4246_v17 = vld [vmem:[#allocation5 + $0x154] ss:$8 sps:$4 sm:$0xff]  }
 0x1a2   : > { %v4336_v48 = vpop.eup %4335  ;;  %v2111_v51 = vadd.f32 1.0, %v4334_v12  ;;  %4355 = vpow2.f32 %v3734_v34  ;;  %v6173_v46 = vadd.f32 %v5902_v36, %v1256_v10  ;;  %v1260_v23 = vadd.f32 %v1259_v45, %v6036_v22  ;;  %3250 = vmatprep.subr.bf16.mxu0 %v4240_v29 }
 0x1a3   : > { %v4338_v19 = vpop.eup %4337  ;;  %v2479_v5 = vmul.f32 %v4326_v2, %v5993_v7  ;;  %v2112_v16 = vadd.f32 1.0, %v4336_v48  ;;  %v6178_v50 = vadd.f32 %v5897_v11, %v1258_v47  ;;  %v2600_v0 = vpack.c.bf16 %v2484_v49, %v2480_v20  ;;  %v4241_v2 = vld [vmem:[#allocation5 + $0x140] ss:$8 sps:$4 sm:$0xff]  }
 0x1a4   : > { %v4340_v44 = vpop.eup %4339  ;;  %4357 = vrcp.f32 %v2111_v51  ;;  %v2115_v27 = vadd.f32 1.0, %v4338_v19  ;;  %v3737_v25 = vmul.f32 -1.442695, %v6169_v32  ;;  %v6182_v34 = vadd.f32 %v5902_v36, %v1260_v23 }
 0x1a5   : > { %v4342_v53 = vpop.eup %4341  ;;  %4359 = vrcp.f32 %v2112_v16  ;;  %v2116_v22 = vadd.f32 1.0, %v4340_v44  ;;  %v3738_v29 = vmul.f32 -1.442695, %v6173_v46  ;;  %3103 = vmatprep.mubr.bf16.mxu0 %v2600_v0  ;;  %v2599_v7 = vpack.c.bf16 %v2483_v6, %v2479_v5  ;;  %3251 = vmatpush1.bf16.msra.mxu0 %v4238_v54  ;;  %v4244_v16 = vld [vmem:[#allocation5 + $0x150] ss:$8 sps:$4 sm:$0xff]  }
 0x1a6   : > { %v4344_v9 = vpop.eup %4343  ;;  %4361 = vrcp.f32 %v2115_v27  ;;  %v3741_v56 = vmul.f32 -1.442695, %v6178_v50  ;;  %v1263_v18 = vpop.f32.mrb[28].mxu1  ;;  %3252 = vmatprep.subr.bf16.mxu0 %v4243_v41  ;;  %v6188_v20 = vmul.f32 %v5883_v52, %v5747_v61  ;;  %v6192_v10 = vmul.f32 %v5890_v63, %v5747_v61  ;;  %v4249_v44 = vld [vmem:[#allocation5 + $0x164] ss:$8 sps:$4 sm:$0xff]  }
 0x1a7   : > { %v4346_v1 = vpop.eup %4345  ;;  %4363 = vrcp.f32 %v2116_v22  ;;  %v3742_v6 = vmul.f32 -1.442695, %v6182_v34  ;;  %v1264_v12 = vadd.f32 %v1263_v18, %v6040_v43  ;;  %v1265_v49 = vpop.f32.mrb[29].mxu1  ;;  %v6198_v47 = vmul.f32 %v5883_v52, %v5749_v60 }
 0x1a8   : > { %v4348_v45 = vpop.eup %4347  ;;  %v2487_v54 = vmul.f32 %v4342_v53, %v6047_v40  ;;  %v2491_v48 = vmul.f32 %v4346_v1, %v6056_v26  ;;  %4365 = vpow2.f32 %v3737_v25  ;;  %3104 = vmatmul.mubr.bf16.gmra.mrb[8].mxu0 %v2599_v7  ;;  %v1266_v61 = vadd.f32 %v1265_v49, %v6044_v39  ;;  %v1267_v51 = vpop.f32.mrb[30].mxu1 }
 0x1a9   : > { %v4350_v23 = vpop.eup %4349  ;;  %v2492_v41 = vmul.f32 %v4348_v45, %v6061_v35  ;;  %4367 = vpow2.f32 %v3738_v29  ;;  %v6205_v43 = vadd.f32 %v5897_v11, %v1264_v12  ;;  %v1268_v19 = vadd.f32 %v1267_v51, %v6066_v55  ;;  %v1269_v5 = vpop.f32.mrb[31].mxu1  ;;  %3253 = vmatpush1.bf16.msra.mxu0 %v4241_v2  ;;  %v4252_v12 = vld [vmem:[#allocation5 + $0x174] ss:$8 sps:$4 sm:$0xff]  }
 0x1aa   : > { %v4352_v40 = vpop.eup %4351  ;;  %v2119_v0 = vadd.f32 1.0, %v4350_v23  ;;  %4369 = vpow2.f32 %v3741_v56  ;;  %v6209_v26 = vadd.f32 %v5902_v36, %v1266_v61  ;;  %v1270_v39 = vadd.f32 %v1269_v5, %v6071_v38  ;;  %3254 = vmatprep.subr.bf16.mxu0 %v4246_v17 }
 0x1ab   : > { %v4354_v35 = vpop.eup %4353  ;;  %v2488_v27 = vmul.f32 %v4344_v9, %v6051_v3  ;;  %v2120_v25 = vadd.f32 1.0, %v4352_v40  ;;  %4371 = vpow2.f32 %v3742_v6  ;;  %v6214_v55 = vadd.f32 %v5897_v11, %v1268_v19  ;;  %v4247_v3 = vld [vmem:[#allocation5 + $0x160] ss:$8 sps:$4 sm:$0xff]  }
 0x1ac   : > { %v4356_v53 = vpop.eup %4355  ;;  %4373 = vrcp.f32 %v2119_v0  ;;  %v2123_v22 = vadd.f32 1.0, %v4354_v35  ;;  %v3745_v29 = vmul.f32 -1.442695, %v6205_v43  ;;  %v6218_v7 = vadd.f32 %v5902_v36, %v1270_v39  ;;  %v7210_v0 = vld [vmem:[#allocation87_spill] sm:$0xff] }
 0x1ad   : > { %4375 = vrcp.f32 %v2120_v25  ;;  %v2124_v38 = vadd.f32 1.0, %v4356_v53  ;;  %v3746_v2 = vmul.f32 -1.442695, %v6209_v26  ;;  %v2604_v56 = vpack.c.bf16 %v2492_v41, %v2488_v27  ;;  %3255 = vmatpush1.bf16.msra.mxu0 %v4244_v16 }
 0x1ae   : > { %v4358_v9 = vpop.eup %4357  ;;  %4377 = vrcp.f32 %v2123_v22  ;;  %v3749_v18 = vmul.f32 -1.442695, %v6214_v55  ;;  %v2603_v17 = vpack.c.bf16 %v2491_v48, %v2487_v54  ;;  %v1273_v1 = vpop.f32.mrb[32].mxu1  ;;  %3256 = vmatprep.subr.bf16.mxu0 %v4249_v44  ;;  %v6224_v6 = vmul.f32 %v5890_v63, %v5749_v60  ;;  %v7209_v60 = vld [vmem:[#allocation86_spill] sm:$0xff] }
 0x1af   : > { %v4360_v49 = vpop.eup %4359  ;;  %4379 = vrcp.f32 %v2124_v38  ;;  %v3750_v45 = vmul.f32 -1.442695, %v6218_v7  ;;  %3113 = vmatprep.mubr.bf16.mxu0 %v2604_v56  ;;  %v1274_v61 = vadd.f32 %v1273_v1, %v6075_v8  ;;  %v1275_v51 = vpop.f32.mrb[33].mxu1  ;;  %v6230_v23 = vmul.f32 %v5883_v52, %v5769_v58 }
 0x1b0   : > { %v4362_v54 = vpop.eup %4361  ;;  %v2496_v48 = vmul.f32 %v4360_v49, %v6097_v28  ;;  %4381 = vpow2.f32 %v3745_v29  ;;  %3114 = vmatmul.mubr.bf16.gmra.mrb[12].mxu0 %v2603_v17  ;;  %v1276_v41 = vadd.f32 %v1275_v51, %v7209_v60  ;;  %v1277_v19 = vpop.f32.mrb[34].mxu1  ;;  %v6236_v5 = vmul.f32 %v5890_v63, %v5769_v58  ;;  %v4250_v28 = vld [vmem:[#allocation5 + $0x170] ss:$8 sps:$4 sm:$0xff]  }
 0x1b1   : > { %v4364_v16 = vpop.eup %4363  ;;  %v2499_v8 = vmul.f32 %v4362_v54, %v6102_v33  ;;  %4383 = vpow2.f32 %v3746_v2  ;;  %v6240_v40 = vadd.f32 %v5897_v11, %v1274_v61  ;;  %v1278_v39 = vadd.f32 %v1277_v19, %v7210_v0  ;;  %v1279_v44 = vpop.f32.mrb[35].mxu1  ;;  %3257 = vmatpush1.bf16.msra.mxu0 %v4247_v3  ;;  %v4255_v33 = vld [vmem:[#allocation5 + $0x184] ss:$8 sps:$4 sm:$0xff]  }
 0x1b2   : > { %v4366_v35 = vpop.eup %4365  ;;  %v2500_v27 = vmul.f32 %v4364_v16, %v6107_v57  ;;  %4385 = vpow2.f32 %v3749_v18  ;;  %v6245_v25 = vadd.f32 %v5902_v36, %v1276_v41  ;;  %v1280_v58 = vadd.f32 %v1279_v44, %v6112_v30  ;;  %3258 = vmatprep.subr.bf16.mxu0 %v4252_v12  ;;  %v7211_v18 = vld [vmem:[#allocation58_spill] sm:$0xff]  ;;  %v4253_v12 = vld [vmem:[#allocation5 + $0x180] ss:$8 sps:$4 sm:$0xff]  }
 0x1b3   : > { %v4368_v53 = vpop.eup %4367  ;;  %v2495_v22 = vmul.f32 %v4358_v9, %v6093_v24  ;;  %v2127_v29 = vadd.f32 1.0, %v4366_v35  ;;  %4387 = vpow2.f32 %v3750_v45  ;;  %v6250_v38 = vadd.f32 %v5897_v11, %v1278_v39 }
 0x1b4   : > { %v4370_v2 = vpop.eup %4369  ;;  %v2128_v56 = vadd.f32 1.0, %v4368_v53  ;;  %v6253_v57 = vadd.f32 %v5902_v36, %v1280_v58  ;;  %v2608_v3 = vpack.c.bf16 %v2500_v27, %v2496_v48  ;;  %v6257_v17 = vmul.f32 %v5883_v52, %v7211_v18  ;;  %v4258_v48 = vld [vmem:[#allocation5 + $0x194] ss:$8 sps:$4 sm:$0xff]  }
 0x1b5   : > { %v4372_v30 = vpop.eup %4371  ;;  %4389 = vrcp.f32 %v2127_v29  ;;  %v2131_v1 = vadd.f32 1.0, %v4370_v2  ;;  %v3753_v24 = vmul.f32 -1.442695, %v6240_v40  ;;  %v2607_v9 = vpack.c.bf16 %v2499_v8, %v2495_v22  ;;  %3259 = vmatpush1.bf16.msra.mxu0 %v4250_v28  ;;  %v7212_v8 = vld [vmem:[#allocation63_spill] sm:$0xff]  ;;  %v4256_v29 = vld [vmem:[#allocation5 + $0x190] ss:$8 sps:$4 sm:$0xff]  }
 0x1b6   : > { %v4374_v49 = vpop.eup %4373  ;;  %4391 = vrcp.f32 %v2128_v56  ;;  %v2132_v45 = vadd.f32 1.0, %v4372_v30  ;;  %v3754_v61 = vmul.f32 -1.442695, %v6245_v25  ;;  %3123 = vmatprep.mubr.bf16.mxu0 %v2608_v3  ;;  %v1283_v51 = vpop.f32.mrb[36].mxu1  ;;  %v6263_v54 = vmul.f32 %v5890_v63, %v7211_v18  ;;  %3260 = vmatprep.subr.bf16.mxu0 %v4255_v33 }
 0x1b7   : > { %v4376_v60 = vpop.eup %4375  ;;  %4393 = vrcp.f32 %v2131_v1  ;;  %v3757_v41 = vmul.f32 -1.442695, %v6250_v38  ;;  %v1284_v19 = vadd.f32 %v1283_v51, %v6117_v59  ;;  %v1285_v16 = vpop.f32.mrb[37].mxu1  ;;  %v6269_v0 = vmul.f32 %v5883_v52, %v7212_v8 }
 0x1b8   : > { %v4378_v39 = vpop.eup %4377  ;;  %4395 = vrcp.f32 %v2132_v45  ;;  %v3758_v44 = vmul.f32 -1.442695, %v6253_v57  ;;  %3124 = vmatmul.mubr.bf16.gmra.mrb[16].mxu0 %v2607_v9  ;;  %v1286_v28 = vadd.f32 %v1285_v16, %v6121_v62  ;;  %v1287_v35 = vpop.f32.mrb[38].mxu1  ;;  %v6275_v27 = vmul.f32 %v5890_v63, %v7212_v8 }
 0x1b9   : > { %v4380_v58 = vpop.eup %4379  ;;  %v2507_v59 = vmul.f32 %v4378_v39, %v6139_v15  ;;  %4397 = vpow2.f32 %v3753_v24  ;;  %v6279_v33 = vadd.f32 %v5897_v11, %v1284_v19  ;;  %v1288_v53 = vadd.f32 %v1287_v35, %v6149_v4  ;;  %v1289_v22 = vpop.f32.mrb[39].mxu1  ;;  %3261 = vmatpush1.bf16.msra.mxu0 %v4253_v12  ;;  %v4261_v15 = vld [vmem:[#allocation5 + $0x1a4] ss:$8 sps:$4 sm:$0xff]  }
 0x1ba   : > { %v4382_v2 = vpop.eup %4381  ;;  %v2508_v62 = vmul.f32 %v4380_v58, %v6143_v13  ;;  %4399 = vpow2.f32 %v3754_v61  ;;  %v6284_v56 = vadd.f32 %v5902_v36, %v1286_v28  ;;  %v1290_v3 = vadd.f32 %v1289_v22, %v6153_v37  ;;  %3262 = vmatprep.subr.bf16.mxu0 %v4258_v48 }
 0x1bb   : > { %v4384_v18 = vpop.eup %4383  ;;  %v2504_v30 = vmul.f32 %v4376_v60, %v6134_v14  ;;  %v2135_v1 = vadd.f32 1.0, %v4382_v2  ;;  %4401 = vpow2.f32 %v3757_v41  ;;  %v6289_v4 = vadd.f32 %v5897_v11, %v1288_v53  ;;  %v4259_v14 = vld [vmem:[#allocation5 + $0x1a0] ss:$8 sps:$4 sm:$0xff]  }
 0x1bc   : > { %v4386_v24 = vpop.eup %4385  ;;  %v2503_v9 = vmul.f32 %v4374_v49, %v6130_v42  ;;  %v2136_v13 = vadd.f32 1.0, %v4384_v18  ;;  %4403 = vpow2.f32 %v3758_v44  ;;  %v6293_v12 = vadd.f32 %v5902_v36, %v1290_v3  ;;  %v4264_v42 = vld [vmem:[#allocation5 + $0x1b4] ss:$8 sps:$4 sm:$0xff]   ;;  %v7213_v44 = vld [vmem:[#allocation64_spill] sm:$0xff] }
 0x1bd   : > { %v4388_v45 = vpop.eup %4387  ;;  %4405 = vrcp.f32 %v2135_v1  ;;  %v2139_v37 = vadd.f32 1.0, %v4386_v24  ;;  %v3761_v61 = vmul.f32 -1.442695, %v6279_v33  ;;  %v2612_v51 = vpack.c.bf16 %v2508_v62, %v2504_v30  ;;  %3263 = vmatpush1.bf16.msra.mxu0 %v4256_v29 }
 0x1be   : > { %4407 = vrcp.f32 %v2136_v13  ;;  %v2140_v48 = vadd.f32 1.0, %v4388_v45  ;;  %v3762_v60 = vmul.f32 -1.442695, %v6284_v56  ;;  %v2611_v41 = vpack.c.bf16 %v2507_v59, %v2503_v9  ;;  %v1293_v19 = vpop.f32.mrb[40].mxu1  ;;  %3264 = vmatprep.subr.bf16.mxu0 %v4261_v15  ;;  %v4262_v15 = vld [vmem:[#allocation5 + $0x1b0] ss:$8 sps:$4 sm:$0xff]  }
 0x1bf   : > { %v4390_v49 = vpop.eup %4389  ;;  %4409 = vrcp.f32 %v2139_v37  ;;  %v3765_v16 = vmul.f32 -1.442695, %v6289_v4  ;;  %3133 = vmatprep.mubr.bf16.mxu0 %v2612_v51  ;;  %v1294_v8 = vadd.f32 %v1293_v19, %v6158_v21  ;;  %v1295_v39 = vpop.f32.mrb[41].mxu1  ;;  %v6301_v28 = vmul.f32 %v5883_v52, %v7213_v44 }
 0x1c0   : > { %v4392_v35 = vpop.eup %4391  ;;  %4411 = vrcp.f32 %v2140_v48  ;;  %v3766_v58 = vmul.f32 -1.442695, %v6293_v12  ;;  %3134 = vmatmul.mubr.bf16.gmra.mrb[20].mxu0 %v2611_v41  ;;  %v1296_v59 = vadd.f32 %v1295_v39, %v6162_v31  ;;  %v1297_v53 = vpop.f32.mrb[42].mxu1  ;;  %v6307_v22 = vmul.f32 %v5890_v63, %v7213_v44  ;;  %v7214_v48 = vld [vmem:[#allocation69_spill] sm:$0xff] }
 0x1c1   : > { %v4394_v29 = vpop.eup %4393  ;;  %v2512_v21 = vmul.f32 %v4392_v35, %v6173_v46  ;;  %4413 = vpow2.f32 %v3761_v61  ;;  %v6311_v2 = vadd.f32 %v5897_v11, %v1294_v8  ;;  %v1298_v62 = vadd.f32 %v1297_v53, %v6188_v20  ;;  %v1299_v3 = vpop.f32.mrb[43].mxu1  ;;  %3265 = vmatpush1.bf16.msra.mxu0 %v4259_v14  ;;  %v4267_v46 = vld [vmem:[#allocation5 + $0x1c4] ss:$8 sps:$4 sm:$0xff]  }
 0x1c2   : > { %v4396_v18 = vpop.eup %4395  ;;  %v2515_v31 = vmul.f32 %v4394_v29, %v6178_v50  ;;  %4415 = vpow2.f32 %v3762_v60  ;;  %v6316_v30 = vadd.f32 %v5902_v36, %v1296_v59  ;;  %v1300_v1 = vadd.f32 %v1299_v3, %v6192_v10  ;;  %3266 = vmatprep.subr.bf16.mxu0 %v4264_v42  ;;  %v4265_v60 = vld [vmem:[#allocation5 + $0x1c0] ss:$8 sps:$4 sm:$0xff]  }
 0x1c3   : > { %v4398_v24 = vpop.eup %4397  ;;  %v2516_v9 = vmul.f32 %v4396_v18, %v6182_v34  ;;  %4417 = vpow2.f32 %v3765_v16  ;;  %v3769_v20 = vmul.f32 -1.442695, %v6311_v2  ;;  %v6322_v13 = vadd.f32 %v5897_v11, %v1298_v62  ;;  %v4270_v16 = vld [vmem:[#allocation5 + $0x1d4] ss:$8 sps:$4 sm:$0xff]  }
 0x1c4   : > { %v4400_v45 = vpop.eup %4399  ;;  %v2511_v50 = vmul.f32 %v4390_v49, %v6169_v32  ;;  %v2143_v37 = vadd.f32 1.0, %v4398_v24  ;;  %4419 = vpow2.f32 %v3766_v58  ;;  %v6326_v61 = vadd.f32 %v5902_v36, %v1300_v1 }
 0x1c5   : > { %v4402_v10 = vpop.eup %4401  ;;  %v2144_v51 = vadd.f32 1.0, %v4400_v45  ;;  %4421 = vpow2.f32 %v3769_v20  ;;  %v2616_v14 = vpack.c.bf16 %v2516_v9, %v2512_v21  ;;  %v6330_v34 = vmul.f32 %v5883_v52, %v7214_v48  ;;  %3267 = vmatpush1.bf16.msra.mxu0 %v4262_v15  ;;  %v4273_v45 = vld [vmem:[#allocation5 + $0x1e4] ss:$8 sps:$4 sm:$0xff]  }
 0x1c6   : > { %v4404_v41 = vpop.eup %4403  ;;  %4423 = vrcp.f32 %v2143_v37  ;;  %v2147_v19 = vadd.f32 1.0, %v4402_v10  ;;  %v3770_v32 = vmul.f32 -1.442695, %v6316_v30  ;;  %v2615_v42 = vpack.c.bf16 %v2515_v31, %v2511_v50  ;;  %v1303_v49 = vpop.f32.mrb[44].mxu1  ;;  %3268 = vmatprep.subr.bf16.mxu0 %v4267_v46  ;;  %v7215_v31 = vld [vmem:[#allocation70_spill] sm:$0xff] }
 0x1c7   : > { %v4406_v8 = vpop.eup %4405  ;;  %4425 = vrcp.f32 %v2144_v51  ;;  %v2148_v39 = vadd.f32 1.0, %v4404_v41  ;;  %v3773_v44 = vmul.f32 -1.442695, %v6322_v13  ;;  %3143 = vmatprep.mubr.bf16.mxu0 %v2616_v14  ;;  %v1304_v35 = vadd.f32 %v1303_v49, %v6198_v47  ;;  %v1305_v58 = vpop.f32.mrb[45].mxu1  ;;  %v4268_v46 = vld [vmem:[#allocation5 + $0x1d0] ss:$8 sps:$4 sm:$0xff]  }
 0x1c8   : > { %v4408_v59 = vpop.eup %4407  ;;  %4427 = vrcp.f32 %v2147_v19  ;;  %v3774_v53 = vmul.f32 -1.442695, %v6326_v61  ;;  %3144 = vmatmul.mubr.bf16.gmra.mrb[24].mxu0 %v2615_v42  ;;  %v1306_v29 = vadd.f32 %v1305_v58, %v6224_v6  ;;  %v1307_v21 = vpop.f32.mrb[46].mxu1  ;;  %v6339_v62 = vmul.f32 %v5890_v63, %v7214_v48  ;;  %v4271_v41 = vld [vmem:[#allocation5 + $0x1e0] ss:$8 sps:$4 sm:$0xff]  }
 0x1c9   : > { %v4410_v3 = vpop.eup %4409  ;;  %4429 = vrcp.f32 %v2148_v39  ;;  %v6342_v15 = vadd.f32 %v5897_v11, %v1304_v35  ;;  %v1308_v47 = vadd.f32 %v1307_v21, %v6230_v23  ;;  %v1309_v18 = vpop.f32.mrb[47].mxu1  ;;  %v6347_v1 = vmul.f32 %v5883_v52, %v7215_v31  ;;  %3269 = vmatpush1.bf16.msra.mxu0 %v4265_v60 }
 0x1ca   : > { %v4412_v6 = vpop.eup %4411  ;;  %v2520_v24 = vmul.f32 %v4408_v59, %v6209_v26  ;;  %v2523_v9 = vmul.f32 %v4410_v3, %v6214_v55  ;;  %4431 = vpow2.f32 %v3770_v32  ;;  %v1310_v20 = vadd.f32 %v1309_v18, %v6236_v5  ;;  %3270 = vmatprep.subr.bf16.mxu0 %v4270_v16  ;;  %v4276_v16 = vld [vmem:[#allocation5 + $0x1f4] ss:$8 sps:$4 sm:$0xff]  }
 0x1cb   : > { %v4414_v50 = vpop.eup %4413  ;;  %v2524_v23 = vmul.f32 %v4412_v6, %v6218_v7  ;;  %4433 = vpow2.f32 %v3773_v44  ;;  %v3777_v37 = vmul.f32 -1.442695, %v6342_v15  ;;  %v6355_v10 = vadd.f32 %v5902_v36, %v1306_v29  ;;  %v4274_v6 = vld [vmem:[#allocation5 + $0x1f0] ss:$8 sps:$4 sm:$0xff]  }
 0x1cc   : > { %v4416_v51 = vpop.eup %4415  ;;  %v2519_v14 = vmul.f32 %v4406_v8, %v6205_v43  ;;  %v2151_v26 = vadd.f32 1.0, %v4414_v50  ;;  %4435 = vpow2.f32 %v3774_v53  ;;  %v6359_v55 = vadd.f32 %v5897_v11, %v1308_v47 }
 0x1cd   : > { %v4418_v5 = vpop.eup %4417  ;;  %v2152_v48 = vadd.f32 1.0, %v4416_v51  ;;  %4437 = vpow2.f32 %v3777_v37  ;;  %v6362_v60 = vadd.f32 %v5902_v36, %v1310_v20  ;;  %v2620_v7 = vpack.c.bf16 %v2524_v23, %v2520_v24  ;;  %3271 = vmatpush1.bf16.msra.mxu0 %v4268_v46 }
 0x1ce   : > { %v4420_v19 = vpop.eup %4419  ;;  %4439 = vrcp.f32 %v2151_v26  ;;  %v2155_v32 = vadd.f32 1.0, %v4418_v5  ;;  %v2619_v42 = vpack.c.bf16 %v2523_v9, %v2519_v14  ;;  %v1313_v49 = vpop.f32.mrb[48].mxu1  ;;  %v6366_v43 = vmul.f32 %v5890_v63, %v7215_v31  ;;  %3272 = vmatprep.subr.bf16.mxu0 %v4273_v45 }
 0x1cf   : > { %v4422_v8 = vpop.eup %4421  ;;  %4441 = vrcp.f32 %v2152_v48  ;;  %v2156_v39 = vadd.f32 1.0, %v4420_v19  ;;  %v3778_v44 = vmul.f32 -1.442695, %v6355_v10  ;;  %3153 = vmatprep.mubr.bf16.mxu0 %v2620_v7  ;;  %v1314_v35 = vadd.f32 %v1313_v49, %v6257_v17  ;;  %v1315_v58 = vpop.f32.mrb[49].mxu1 }
 0x1d0   : > { %v4424_v59 = vpop.eup %4423  ;;  %4443 = vrcp.f32 %v2155_v32  ;;  %v2159_v53 = vadd.f32 1.0, %v4422_v8  ;;  %v3781_v29 = vmul.f32 -1.442695, %v6359_v55  ;;  %3154 = vmatmul.mubr.bf16.gmra.mrb[28].mxu0 %v2619_v42  ;;  %v1316_v21 = vadd.f32 %v1315_v58, %v6263_v54  ;;  %v1317_v3 = vpop.f32.mrb[50].mxu1 }
 0x1d1   : > { %v4426_v47 = vpop.eup %4425  ;;  %4445 = vrcp.f32 %v2156_v39  ;;  %v3782_v18 = vmul.f32 -1.442695, %v6362_v60  ;;  %v6374_v31 = vadd.f32 %v5897_v11, %v1314_v35  ;;  %v1318_v46 = vadd.f32 %v1317_v3, %v6269_v0  ;;  %v1319_v17 = vpop.f32.mrb[51].mxu1  ;;  %3273 = vmatpush1.bf16.msra.mxu0 %v4271_v41 }
 0x1d2   : > { %v4428_v24 = vpop.eup %4427  ;;  %v2527_v9 = vmul.f32 %v4424_v59, %v6240_v40  ;;  %4447 = vrcp.f32 %v2159_v53  ;;  %v6379_v20 = vadd.f32 %v5902_v36, %v1316_v21  ;;  %v1320_v54 = vadd.f32 %v1319_v17, %v6275_v27  ;;  %3274 = vmatprep.subr.bf16.mxu0 %v4276_v16 }
 0x1d3   : > { %v4430_v45 = vpop.eup %4429  ;;  %v2531_v50 = vmul.f32 %v4428_v24, %v6250_v38  ;;  %4449 = vpow2.f32 %v3778_v44  ;;  %v3785_v23 = vmul.f32 -1.442695, %v6374_v31  ;;  %v6385_v0 = vadd.f32 %v5897_v11, %v1318_v46  ;;  %v7216_v38 = vld [vmem:[#allocation75_spill] sm:$0xff] }
 0x1d4   : > { %v4432_v37 = vpop.eup %4431  ;;  %v2528_v51 = vmul.f32 %v4426_v47, %v6245_v25  ;;  %v2532_v40 = vmul.f32 %v4430_v45, %v6253_v57  ;;  %4451 = vpow2.f32 %v3781_v29  ;;  %v6390_v14 = vadd.f32 %v5902_v36, %v1320_v54 }
 0x1d5   : > { %v4434_v27 = vpop.eup %4433  ;;  %v2160_v26 = vadd.f32 1.0, %v4432_v37  ;;  %4453 = vpow2.f32 %v3782_v18  ;;  %v2623_v5 = vpack.c.bf16 %v2531_v50, %v2527_v9  ;;  %v6394_v48 = vmul.f32 %v5883_v52, %v7216_v38  ;;  %3275 = vmatpush1.bf16.msra.mxu0 %v4274_v6  ;;  %v7217_v50 = vld [vmem:[#allocation76_spill] sm:$0xff] }
 0x1d6   : > { %v4436_v7 = vpop.eup %4435  ;;  %v2163_v41 = vadd.f32 1.0, %v4434_v27  ;;  %4455 = vpow2.f32 %v3785_v23  ;;  %v3786_v25 = vmul.f32 -1.442695, %v6379_v20  ;;  %v2624_v19 = vpack.c.bf16 %v2532_v40, %v2528_v51  ;;  %v1323_v57 = vpop.f32.mrb[52].mxu1 }
 0x1d7   : > { %v4438_v32 = vpop.eup %4437  ;;  %4457 = vrcp.f32 %v2160_v26  ;;  %v2164_v42 = vadd.f32 1.0, %v4436_v7  ;;  %v3789_v49 = vmul.f32 -1.442695, %v6385_v0  ;;  %v1324_v16 = vadd.f32 %v1323_v57, %v6301_v28  ;;  %v1325_v8 = vpop.f32.mrb[53].mxu1 }
 0x1d8   : > { %v4440_v39 = vpop.eup %4439  ;;  %4459 = vrcp.f32 %v2163_v41  ;;  %v2167_v44 = vadd.f32 1.0, %v4438_v32  ;;  %v3790_v35 = vmul.f32 -1.442695, %v6390_v14  ;;  %3163 = vmatprep.mubr.bf16.mxu0 %v2624_v19  ;;  %v1326_v58 = vadd.f32 %v1325_v8, %v6307_v22  ;;  %v1327_v59 = vpop.f32.mrb[54].mxu1 }
 0x1d9   : > { %v4442_v53 = vpop.eup %4441  ;;  %v2535_v29 = vmul.f32 %v4440_v39, %v6279_v33  ;;  %4461 = vrcp.f32 %v2164_v42  ;;  %3164 = vmatmul.mubr.bf16.gmra.mrb[32].mxu0 %v2623_v5  ;;  %v6403_v21 = vadd.f32 %v5897_v11, %v1324_v16  ;;  %v1328_v28 = vadd.f32 %v1327_v59, %v6330_v34  ;;  %v1329_v3 = vpop.f32.mrb[55].mxu1 }
 0x1da   : > { %v4444_v47 = vpop.eup %4443  ;;  %v2536_v18 = vmul.f32 %v4442_v53, %v6284_v56  ;;  %4463 = vrcp.f32 %v2167_v44  ;;  %v6408_v46 = vadd.f32 %v5902_v36, %v1326_v58  ;;  %v1330_v22 = vadd.f32 %v1329_v3, %v6339_v62 }
 0x1db   : > { %v4446_v17 = vpop.eup %4445  ;;  %v2539_v33 = vmul.f32 %v4444_v47, %v6289_v4  ;;  %4465 = vpow2.f32 %v3786_v25  ;;  %v3793_v6 = vmul.f32 -1.442695, %v6403_v21  ;;  %v6414_v24 = vadd.f32 %v5897_v11, %v1328_v28 }
 0x1dc   : > { %v4448_v34 = vpop.eup %4447  ;;  %v2540_v9 = vmul.f32 %v4446_v17, %v6293_v12  ;;  %4467 = vpow2.f32 %v3789_v49  ;;  %v3794_v56 = vmul.f32 -1.442695, %v6408_v46  ;;  %v6419_v54 = vadd.f32 %v5902_v36, %v1330_v22  ;;  %v7218_v22 = vld [vmem:[#allocation81_spill] sm:$0xff] }
 0x1dd   : > { %v4450_v45 = vpop.eup %4449  ;;  %4469 = vpow2.f32 %v3790_v35  ;;  %v2627_v62 = vpack.c.bf16 %v2539_v33, %v2535_v29  ;;  %v828_v4 = vmul.f32 %v5890_v63, %v7216_v38  ;;  %v831_v23 = vmul.f32 %v5883_v52, %v7217_v50 }
 0x1de   : > { %v4452_v37 = vpop.eup %4451  ;;  %v6426_v51 = vmul.f32 %v4448_v34, %v6311_v2  ;;  %v2168_v12 = vadd.f32 1.0, %v4450_v45  ;;  %4471 = vpow2.f32 %v3793_v6  ;;  %v2628_v40 = vpack.c.bf16 %v2540_v9, %v2536_v18  ;;  %v1333_v27 = vpop.f32.mrb[56].mxu1 }
 0x1df   : > { %v4454_v26 = vpop.eup %4453  ;;  %v2171_v5 = vadd.f32 1.0, %v4452_v37  ;;  %4473 = vpow2.f32 %v3794_v56  ;;  %v3797_v7 = vmul.f32 -1.442695, %v6414_v24  ;;  %v1334_v41 = vadd.f32 %v1333_v27, %v6347_v1  ;;  %v1335_v25 = vpop.f32.mrb[57].mxu1 }
 0x1e0   : > { %v4456_v38 = vpop.eup %4455  ;;  %4475 = vrcp.f32 %v2168_v12  ;;  %v2172_v19 = vadd.f32 1.0, %v4454_v26  ;;  %v3798_v57 = vmul.f32 -1.442695, %v6419_v54  ;;  %3173 = vmatprep.mubr.bf16.mxu0 %v2628_v40  ;;  %v1336_v2 = vadd.f32 %v1335_v25, %v6366_v43  ;;  %v1337_v32 = vpop.f32.mrb[58].mxu1 }
 0x1e1   : > { %v4458_v42 = vpop.eup %4457  ;;  %4477 = vrcp.f32 %v2171_v5  ;;  %v2175_v49 = vadd.f32 1.0, %v4456_v38  ;;  %3174 = vmatmul.mubr.bf16.gmra.mrb[36].mxu0 %v2627_v62  ;;  %v6433_v16 = vadd.f32 %v5897_v11, %v1334_v41  ;;  %v1338_v8 = vadd.f32 %v1337_v32, %v6394_v48  ;;  %v1339_v1 = vpop.f32.mrb[59].mxu1 }
 0x1e2   : > { %v4460_v39 = vpop.eup %4459  ;;  %v2544_v44 = vmul.f32 %v4458_v42, %v6316_v30  ;;  %4479 = vrcp.f32 %v2172_v19  ;;  %v6438_v35 = vadd.f32 %v5902_v36, %v1336_v2  ;;  %v1340_v58 = vadd.f32 %v1339_v1, %v828_v4 }
 0x1e3   : > { %v4462_v43 = vpop.eup %4461  ;;  %v2547_v59 = vmul.f32 %v4460_v39, %v6322_v13  ;;  %4481 = vrcp.f32 %v2175_v49  ;;  %v3801_v53 = vmul.f32 -1.442695, %v6433_v16  ;;  %v6443_v29 = vadd.f32 %v5897_v11, %v1338_v8 }
 0x1e4   : > { %v4464_v28 = vpop.eup %4463  ;;  %v2548_v48 = vmul.f32 %v4462_v43, %v6326_v61  ;;  %4483 = vpow2.f32 %v3797_v7  ;;  %v3802_v30 = vmul.f32 -1.442695, %v6438_v35  ;;  %v6448_v3 = vadd.f32 %v5902_v36, %v1340_v58  ;;  %v7219_v58 = vld [vmem:[#allocation11_spill] sm:$0xff] }
 0x1e5   : > { %v4466_v47 = vpop.eup %4465  ;;  %4485 = vpow2.f32 %v3798_v57  ;;  %v2631_v18 = vpack.c.bf16 %v2547_v59, %v6426_v51  ;;  %v832_v13 = vmul.f32 %v5890_v63, %v7217_v50  ;;  %v835_v17 = vmul.f32 %v5883_v52, %v7218_v22 }
 0x1e6   : > { %v4468_v33 = vpop.eup %4467  ;;  %v2176_v6 = vadd.f32 1.0, %v4466_v47  ;;  %4487 = vpow2.f32 %v3801_v53  ;;  %v2632_v61 = vpack.c.bf16 %v2548_v48, %v2544_v44  ;;  %v1343_v34 = vpop.f32.mrb[60].mxu1  ;;  %v836_v9 = vmul.f32 %v5890_v63, %v7218_v22 }
 0x1e7   : > { %v4470_v56 = vpop.eup %4469  ;;  %v2179_v45 = vadd.f32 1.0, %v4468_v33  ;;  %4489 = vpow2.f32 %v3802_v30  ;;  %v3805_v62 = vmul.f32 -1.442695, %v6443_v29  ;;  %v1344_v4 = vadd.f32 %v1343_v34, %v831_v23  ;;  %v1345_v37 = vpop.f32.mrb[61].mxu1 }
 0x1e8   : > { %v4472_v51 = vpop.eup %4471  ;;  %4491 = vrcp.f32 %v2176_v6  ;;  %v2180_v50 = vadd.f32 1.0, %v4470_v56  ;;  %v3806_v52 = vmul.f32 -1.442695, %v6448_v3  ;;  %3183 = vmatprep.mubr.bf16.mxu0 %v2632_v61  ;;  %v1346_v12 = vadd.f32 %v1345_v37, %v832_v13  ;;  %v1347_v40 = vpop.f32.mrb[62].mxu1  ;;  %v7223_v61 = vld [vmem:[#allocation13_spill] sm:$0xff] }
 0x1e9   : > { %v4474_v27 = vpop.eup %4473  ;;  %4493 = vrcp.f32 %v2179_v45  ;;  %v2183_v26 = vadd.f32 1.0, %v4472_v51  ;;  %3184 = vmatmul.mubr.bf16.gmra.mrb[40].mxu0 %v2631_v18  ;;  %v6460_v63 = vadd.f32 %v5897_v11, %v1344_v4  ;;  %v1348_v5 = vadd.f32 %v1347_v40, %v835_v17  ;;  %v1349_v7 = vpop.f32.mrb[63].mxu1  ;;  %v7222_v18 = vld [vmem:[#allocation12_spill] sm:$0xff]  ;;  %v7225_v40 = vld [vmem:[#allocation17_spill] sm:$0xff] }
 0x1ea   : > { %v4476_v41 = vpop.eup %4475  ;;  %4495 = vrcp.f32 %v2180_v50  ;;  %v2184_v23 = vadd.f32 1.0, %v4474_v27  ;;  %v6463_v25 = vadd.f32 %v5902_v36, %v1346_v12  ;;  %v1350_v38 = vadd.f32 %v1349_v7, %v836_v9  ;;  %v7224_v4 = vld [vmem:[#allocation16_spill] sm:$0xff] }
 0x1eb   : > { %v4478_v19 = vpop.eup %4477  ;;  %v2551_v57 = vmul.f32 %v4464_v28, %v6342_v15  ;;  %4497 = vrcp.f32 %v2183_v26  ;;  %v3809_v2 = vmul.f32 -1.442695, %v6460_v63  ;;  %v6468_v32 = vadd.f32 %v5897_v11, %v1348_v5  ;;  %v4789_v11 = vld [vmem:[%s7092_s4] sm:$0xf] }
 0x1ec   : > { %v4480_v42 = vpop.eup %4479  ;;  %v2555_v49 = vmul.f32 %v4478_v19, %v6359_v55  ;;  %4499 = vrcp.f32 %v2184_v23  ;;  %v3810_v8 = vmul.f32 -1.442695, %v6463_v25  ;;  %v6473_v1 = vadd.f32 %v5902_v36, %v1350_v38 }
 0x1ed   : > { %v4482_v39 = vpop.eup %4481  ;;  %v2552_v44 = vmul.f32 %v4476_v41, %v6355_v10  ;;  %v2556_v15 = vmul.f32 %v4480_v42, %v6362_v60  ;;  %4501 = vpow2.f32 %v3805_v62  ;;  %v7220_v43 = vsub.s32 2, %v7219_v58 }
 0x1ee   : > { %v4484_v55 = vpop.eup %4483  ;;  %4503 = vpow2.f32 %v3806_v52  ;;  %v3813_v53 = vmul.f32 -1.442695, %v6468_v32  ;;  %v2635_v36 = vpack.c.bf16 %v2555_v49, %v2551_v57  ;;  %v1386_v28 = vpop.f32.mrb[64].mxu1  ;;  %v7221_v48 = vsub.s32 3, %v7219_v58 }
 0x1ef   : > { %v6482_v59 = vrot.slane %v4789_v11, %v7220_v43  ;;  %v4486_v60 = vpop.eup %4485  ;;  %v2187_v30 = vadd.f32 1.0, %v4484_v55  ;;  %4505 = vpow2.f32 %v3809_v2  ;;  %v2636_v47 = vpack.c.bf16 %v2556_v15, %v2552_v44  ;;  %v1388_v22 = vpop.f32.mrb[65].mxu1 }
 0x1f0   : > { %v6487_v10 = vrot.slane %v4789_v11, %v7221_v48  ;;  %v1387_v13 = vadd.f32 %v1386_v28, %v7222_v18  ;;  %v4488_v17 = vpop.eup %4487  ;;  %v2188_v33 = vadd.f32 1.0, %v4486_v60  ;;  %4507 = vpow2.f32 %v3810_v8  ;;  %v1390_v9 = vpop.f32.mrb[66].mxu1  ;;  %v7226_v11 = vld [vmem:[#allocation14_spill] sm:$0xff]  ;;  %v7227_v28 = vld [vmem:[#allocation15_spill] sm:$0xff] }
 0x1f1   : > { %v3814_v6 = vmul.f32 -1.442695, %v6473_v1  ;;  %v1389_v34 = vadd.f32 %v1388_v22, %v7223_v61  ;;  %v4490_v56 = vpop.eup %4489  ;;  %4509 = vrcp.f32 %v2187_v30  ;;  %v2191_v45 = vadd.f32 1.0, %v4488_v17  ;;  %3193 = vmatprep.mubr.bf16.mxu0 %v2636_v47  ;;  %v1392_v51 = vpop.f32.mrb[67].mxu1  ;;  %v7228_v47 = vld [vmem:[#allocation18_spill] sm:$0xff] }
 0x1f2   : > { %v6493_v62 = vadd.f32 %v6482_v59, %v1387_v13  ;;  %v1391_v37 = vadd.f32 %v1390_v9, %v7224_v4  ;;  %v4492_v50 = vpop.eup %4491  ;;  %4511 = vrcp.f32 %v2188_v33  ;;  %v2192_v52 = vadd.f32 1.0, %v4490_v56  ;;  %3194 = vmatmul.mubr.bf16.gmra.mrb[44].mxu0 %v2635_v36 }
 0x1f3   : > { %v6497_v12 = vadd.f32 %v6487_v10, %v1389_v34  ;;  %v1393_v27 = vadd.f32 %v1392_v51, %v7225_v40  ;;  %v4494_v26 = vpop.eup %4493  ;;  %v2559_v5 = vmul.f32 %v4482_v39, %v6374_v31  ;;  %4513 = vrcp.f32 %v2191_v45 }
 0x1f4   : > { %v3691_v7 = vmul.f32 -1.442695, %v6493_v62  ;;  %v6503_v41 = vadd.f32 %v6482_v59, %v1391_v37  ;;  %v4496_v23 = vpop.eup %4495  ;;  %v2563_v38 = vmul.f32 %v4494_v26, %v6385_v0  ;;  %4515 = vrcp.f32 %v2192_v52 }
 0x1f5   : > { %v3692_v19 = vmul.f32 -1.442695, %v6497_v12  ;;  %v6508_v57 = vadd.f32 %v6487_v10, %v1393_v27  ;;  %v4498_v2 = vpop.eup %4497  ;;  %v2560_v42 = vmul.f32 %v4492_v50, %v6379_v20  ;;  %v2564_v31 = vmul.f32 %v4496_v23, %v6390_v14 }
 0x1f6   : > { %4517 = vpow2.f32 %v3813_v53  ;;  %v3695_v49 = vmul.f32 -1.442695, %v6503_v41  ;;  %v4500_v8 = vpop.eup %4499  ;;  %v2639_v39 = vpack.c.bf16 %v2563_v38, %v2559_v5  ;;  %v1396_v44 = vpop.f32.mrb[68].mxu1  ;;  %v2567_v37 = vmul.f32 %v4498_v2, %v6403_v21 }
 0x1f7   : > { %4519 = vpow2.f32 %v3814_v6  ;;  %v4502_v15 = vpop.eup %4501  ;;  %v2640_v0 = vpack.c.bf16 %v2564_v31, %v2560_v42  ;;  %v1397_v58 = vadd.f32 %v1396_v44, %v7226_v11  ;;  %v1398_v43 = vpop.f32.mrb[69].mxu1  ;;  %v3696_v20 = vmul.f32 -1.442695, %v6508_v57  ;;  %v7229_v6 = vld [vmem:[#allocation19_spill] sm:$0xff] }
 0x1f8   : > { %4521 = vpow2.f32 %v3691_v7  ;;  %v4504_v55 = vpop.eup %4503  ;;  %v2195_v36 = vadd.f32 1.0, %v4502_v15  ;;  %v1399_v14 = vadd.f32 %v1398_v43, %v7227_v28  ;;  %v1400_v53 = vpop.f32.mrb[70].mxu1  ;;  %v2568_v40 = vmul.f32 %v4500_v8, %v6408_v46 }
 0x1f9   : > { %4523 = vpow2.f32 %v3692_v19  ;;  %v4506_v48 = vpop.eup %4505  ;;  %v2196_v60 = vadd.f32 1.0, %v4504_v55  ;;  %3203 = vmatprep.mubr.bf16.mxu0 %v2640_v0  ;;  %v6517_v30 = vadd.f32 %v6482_v59, %v1397_v58  ;;  %v1401_v18 = vadd.f32 %v1400_v53, %v7228_v47  ;;  %v1402_v13 = vpop.f32.mrb[71].mxu1  ;;  %v7230_v19 = vld [vmem:[#allocation20_spill] sm:$0xff]  ;;  %v7232_v0 = vld [vmem:[#allocation22_spill] sm:$0xff] }
 0x1fa   : > { %4525 = vpow2.f32 %v3695_v49  ;;  %v4508_v22 = vpop.eup %4507  ;;  %v2199_v17 = vadd.f32 1.0, %v4506_v48  ;;  %3204 = vmatmul.mubr.bf16.gmra.mrb[48].mxu0 %v2639_v39  ;;  %v6521_v33 = vadd.f32 %v6487_v10, %v1399_v14  ;;  %v1403_v61 = vadd.f32 %v1402_v13, %v7229_v6 }
 0x1fb   : > { %4527 = vrcp.f32 %v2195_v36  ;;  %v4510_v34 = vpop.eup %4509  ;;  %v2200_v9 = vadd.f32 1.0, %v4508_v22  ;;  %v3699_v56 = vmul.f32 -1.442695, %v6517_v30  ;;  %v6526_v45 = vadd.f32 %v6482_v59, %v1401_v18 }
 0x1fc   : > { %4529 = vrcp.f32 %v2196_v60  ;;  %v4512_v4 = vpop.eup %4511  ;;  %v2571_v51 = vmul.f32 %v4510_v34, %v6414_v24  ;;  %v3700_v50 = vmul.f32 -1.442695, %v6521_v33  ;;  %v6535_v21 = vadd.f32 %v6487_v10, %v1403_v61 }
 0x1fd   : > { %4531 = vrcp.f32 %v2199_v17  ;;  %v4514_v52 = vpop.eup %4513  ;;  %v2572_v27 = vmul.f32 %v4512_v4, %v6419_v54  ;;  %v3703_v26 = vmul.f32 -1.442695, %v6526_v45  ;;  %v7231_v54 = vld [vmem:[#allocation21_spill] sm:$0xff] }
 0x1fe   : > { %4533 = vrcp.f32 %v2200_v9  ;;  %v4516_v5 = vpop.eup %4515  ;;  %v2643_v7 = vpack.c.bf16 %v2571_v51, %v2567_v37  ;;  %v1406_v23 = vpop.f32.mrb[72].mxu1  ;;  %v3704_v48 = vmul.f32 -1.442695, %v6535_v21  ;;  %v2575_v17 = vmul.f32 %v4514_v52, %v6433_v16  ;;  %v7234_v52 = vld [vmem:[#allocation24_spill] sm:$0xff] }
 0x1ff   : > { %4535 = vpow2.f32 %v3696_v20  ;;  %v2644_v24 = vpack.c.bf16 %v2572_v27, %v2568_v40  ;;  %v1407_v2 = vadd.f32 %v1406_v23, %v7230_v19  ;;  %v1408_v42 = vpop.f32.mrb[73].mxu1  ;;  %v7233_v20 = vld [vmem:[#allocation23_spill] sm:$0xff]  ;;  %v2576_v9 = vmul.f32 %v4516_v5, %v6438_v35 }
 0x200   : > { %v4518_v38 = vpop.eup %4517  ;;  %4537 = vpow2.f32 %v3699_v56  ;;  %v1409_v49 = vadd.f32 %v1408_v42, %v7231_v54  ;;  %v1410_v8 = vpop.f32.mrb[74].mxu1  ;;  %v7237_v54 = vld [vmem:[#allocation27_spill] sm:$0xff] }
 0x201   : > { %v4520_v31 = vpop.eup %4519  ;;  %v2203_v46 = vadd.f32 1.0, %v4518_v38  ;;  %4539 = vpow2.f32 %v3700_v50  ;;  %3213 = vmatprep.mubr.bf16.mxu0 %v2644_v24  ;;  %v6540_v15 = vadd.f32 %v6482_v59, %v1407_v2  ;;  %v1411_v11 = vadd.f32 %v1410_v8, %v7232_v0  ;;  %v1412_v58 = vpop.f32.mrb[75].mxu1  ;;  %v7236_v24 = vld [vmem:[#allocation26_spill] sm:$0xff] }
 0x202   : > { %v4522_v39 = vpop.eup %4521  ;;  %v2204_v44 = vadd.f32 1.0, %v4520_v31  ;;  %4541 = vpow2.f32 %v3703_v26  ;;  %3214 = vmatmul.mubr.bf16.gmra.mrb[52].mxu0 %v2643_v7  ;;  %v6544_v36 = vadd.f32 %v6487_v10, %v1409_v49  ;;  %v1413_v28 = vadd.f32 %v1412_v58, %v7233_v20  ;;  %v7235_v7 = vld [vmem:[#allocation25_spill] sm:$0xff] }
 0x203   : > { %v4524_v43 = vpop.eup %4523  ;;  %4543 = vrcp.f32 %v2203_v46  ;;  %v2081_v55 = vadd.f32 1.0, %v4522_v39  ;;  %v6549_v60 = vadd.f32 %v6482_v59, %v1411_v11  ;;  %v3707_v13 = vmul.f32 -1.442695, %v6540_v15 }
 0x204   : > { %v4526_v14 = vpop.eup %4525  ;;  %4545 = vrcp.f32 %v2204_v44  ;;  %v2082_v53 = vadd.f32 1.0, %v4524_v43  ;;  %v3708_v61 = vmul.f32 -1.442695, %v6544_v36  ;;  %v6559_v50 = vadd.f32 %v6487_v10, %v1413_v28 }
 0x205   : > { %v4528_v47 = vpop.eup %4527  ;;  %4547 = vrcp.f32 %v2081_v55  ;;  %v2085_v18 = vadd.f32 1.0, %v4526_v14  ;;  %v3711_v4 = vmul.f32 -1.442695, %v6549_v60 }
 0x206   : > { %v4530_v22 = vpop.eup %4529  ;;  %v2579_v6 = vmul.f32 %v4528_v47, %v6443_v29  ;;  %4549 = vrcp.f32 %v2082_v53  ;;  %v1416_v37 = vpop.f32.mrb[76].mxu1  ;;  %v3712_v44 = vmul.f32 -1.442695, %v6559_v50 }
 0x207   : > { %v4532_v34 = vpop.eup %4531  ;;  %v2580_v56 = vmul.f32 %v4530_v22, %v6448_v3  ;;  %4551 = vrcp.f32 %v2085_v18  ;;  %v1417_v29 = vadd.f32 %v1416_v37, %v7234_v52  ;;  %v1418_v40 = vpop.f32.mrb[77].mxu1 }
 0x208   : > { %v4534_v51 = vpop.eup %4533  ;;  %4553 = vpow2.f32 %v3704_v48  ;;  %v2647_v16 = vpack.c.bf16 %v2579_v6, %v2575_v17  ;;  %v1419_v35 = vadd.f32 %v1418_v40, %v7235_v7  ;;  %v1420_v5 = vpop.f32.mrb[78].mxu1  ;;  %v2583_v28 = vmul.f32 %v4532_v34, %v6460_v63  ;;  %v7238_v63 = vld [vmem:[#allocation28_spill] sm:$0xff] }
 0x209   : > { %v4536_v27 = vpop.eup %4535  ;;  %4555 = vpow2.f32 %v3707_v13  ;;  %v2648_v26 = vpack.c.bf16 %v2580_v56, %v2576_v9  ;;  %v6564_v38 = vadd.f32 %v6482_v59, %v1417_v29  ;;  %v1421_v19 = vadd.f32 %v1420_v5, %v7236_v24  ;;  %v1422_v2 = vpop.f32.mrb[79].mxu1  ;;  %v7240_v29 = vld [vmem:[#allocation30_spill] sm:$0xff] }
 0x20a   : > { %v4538_v3 = vpop.eup %4537  ;;  %v2086_v23 = vadd.f32 1.0, %v4536_v27  ;;  %4557 = vpow2.f32 %v3708_v61  ;;  %v6568_v46 = vadd.f32 %v6487_v10, %v1419_v35  ;;  %v1423_v49 = vadd.f32 %v1422_v2, %v7237_v54  ;;  %v7241_v35 = vld [vmem:[#allocation31_spill] sm:$0xff] }
 0x20b   : > { %v4540_v42 = vpop.eup %4539  ;;  %v2089_v31 = vadd.f32 1.0, %v4538_v3  ;;  %4559 = vpow2.f32 %v3711_v4  ;;  %3223 = vmatprep.mubr.bf16.mxu0 %v2648_v26  ;;  %v6573_v0 = vadd.f32 %v6482_v59, %v1421_v19  ;;  %v3715_v43 = vmul.f32 -1.442695, %v6564_v38  ;;  %v7239_v4 = vld [vmem:[#allocation29_spill] sm:$0xff] }
 0x20c   : > { %v4542_v8 = vpop.eup %4541  ;;  %4561 = vrcp.f32 %v2086_v23  ;;  %v2090_v39 = vadd.f32 1.0, %v4540_v42  ;;  %3224 = vmatmul.mubr.bf16.gmra.mrb[56].mxu0 %v2647_v16  ;;  %v6577_v55 = vadd.f32 %v6487_v10, %v1423_v49  ;;  %v3716_v53 = vmul.f32 -1.442695, %v6568_v46 }
 0x20d   : > { %v4544_v11 = vpop.eup %4543  ;;  %4563 = vrcp.f32 %v2089_v31  ;;  %v2093_v58 = vadd.f32 1.0, %v4542_v8  ;;  %v2584_v47 = vmul.f32 %v4534_v51, %v6463_v25  ;;  %v3719_v13 = vmul.f32 -1.442695, %v6573_v0 }
 0x20e   : > { %v4546_v20 = vpop.eup %4545  ;;  %v2587_v14 = vmul.f32 %v4544_v11, %v6468_v32  ;;  %4565 = vrcp.f32 %v2090_v39  ;;  %v1426_v22 = vpop.f32.mrb[80].mxu1  ;;  %v3720_v6 = vmul.f32 -1.442695, %v6577_v55 }
 0x20f   : > { %v4548_v48 = vpop.eup %4547  ;;  %v2588_v18 = vmul.f32 %v4546_v20, %v6473_v1  ;;  %4567 = vrcp.f32 %v2093_v58  ;;  %v1427_v34 = vadd.f32 %v1426_v22, %v7238_v63  ;;  %v1428_v32 = vpop.f32.mrb[81].mxu1 }
 0x210   : > { %v4550_v17 = vpop.eup %4549  ;;  %4569 = vpow2.f32 %v3712_v44  ;;  %v2651_v61 = vpack.c.bf16 %v2587_v14, %v2583_v28  ;;  %v6588_v56 = vmul.f32 %v4548_v48, %v6493_v62  ;;  %v1429_v1 = vadd.f32 %v1428_v32, %v7239_v4  ;;  %v1430_v37 = vpop.f32.mrb[82].mxu1  ;;  %v7242_v14 = vld [vmem:[#allocation32_spill] sm:$0xff] }
 0x211   : > { %v4552_v9 = vpop.eup %4551  ;;  %4571 = vpow2.f32 %v3715_v43  ;;  %v2652_v25 = vpack.c.bf16 %v2588_v18, %v2584_v47  ;;  %v6593_v52 = vadd.f32 %v6482_v59, %v1427_v34  ;;  %v1431_v40 = vadd.f32 %v1430_v37, %v7240_v29  ;;  %v1432_v27 = vpop.f32.mrb[83].mxu1 }
 0x212   : > { %v4554_v51 = vpop.eup %4553  ;;  %v2469_v16 = vmul.f32 %v4552_v9, %v6503_v41  ;;  %4573 = vpow2.f32 %v3716_v53  ;;  %v6597_v62 = vadd.f32 %v6487_v10, %v1429_v1  ;;  %v1433_v5 = vadd.f32 %v1432_v27, %v7241_v35 }
 0x213   : > { %v4556_v26 = vpop.eup %4555  ;;  %v2094_v7 = vadd.f32 1.0, %v4554_v51  ;;  %4575 = vpow2.f32 %v3719_v13  ;;  %3233 = vmatprep.mubr.bf16.mxu0 %v2652_v25  ;;  %v3723_v2 = vmul.f32 -1.442695, %v6593_v52  ;;  %v6603_v42 = vadd.f32 %v6482_v59, %v1431_v40  ;;  %v7243_v13 = vld [vmem:[#allocation33_spill] sm:$0xff]  ;;  %v7245_v25 = vld [vmem:[#allocation35_spill] sm:$0xff] }
 0x214   : > { %v4558_v3 = vpop.eup %4557  ;;  %v2593_v23 = vpack.c.bf16 %v2469_v16, %v6588_v56  ;;  %v2097_v41 = vadd.f32 1.0, %v4556_v26  ;;  %4577 = vpow2.f32 %v3720_v6  ;;  %3234 = vmatmul.mubr.bf16.gmra.mrb[60].mxu0 %v2651_v61  ;;  %v3724_v49 = vmul.f32 -1.442695, %v6597_v62  ;;  %v7244_v61 = vld [vmem:[#allocation34_spill] sm:$0xff] }
 0x215   : > { %v4560_v24 = vpop.eup %4559  ;;  %4579 = vrcp.f32 %v2094_v7  ;;  %v2098_v19 = vadd.f32 1.0, %v4558_v3  ;;  %v6607_v8 = vadd.f32 %v6487_v10, %v1433_v5  ;;  %v2466_v44 = vmul.f32 %v4550_v17, %v6497_v12 }
 0x216   : > { %v4562_v31 = vpop.eup %4561  ;;  %4581 = vrcp.f32 %v2097_v41  ;;  %v2101_v54 = vadd.f32 1.0, %v4560_v24  ;;  %v3727_v58 = vmul.f32 -1.442695, %v6603_v42  ;;  %v1436_v43 = vpop.f32.mrb[84].mxu1 }
 0x217   : > { %v4564_v39 = vpop.eup %4563  ;;  %v2470_v11 = vmul.f32 %v4562_v31, %v6508_v57  ;;  %4583 = vrcp.f32 %v2098_v19  ;;  %v3728_v28 = vmul.f32 -1.442695, %v6607_v8  ;;  %v1437_v53 = vadd.f32 %v1436_v43, %v7242_v14  ;;  %v1438_v48 = vpop.f32.mrb[85].mxu1  ;;  %v7246_v31 = vld [vmem:[#allocation36_spill] sm:$0xff] }
 0x218   : > { %v4566_v20 = vpop.eup %4565  ;;  %4585 = vrcp.f32 %v2101_v54  ;;  %v1439_v22 = vadd.f32 %v1438_v48, %v7243_v13  ;;  %v1440_v6 = vpop.f32.mrb[86].mxu1  ;;  %v2473_v37 = vmul.f32 %v4564_v39, %v6517_v30 }
 0x219   : > { %v4568_v47 = vpop.eup %4567  ;;  %4587 = vpow2.f32 %v3723_v2  ;;  %v2594_v18 = vpack.c.bf16 %v2470_v11, %v2466_v44  ;;  %v6617_v17 = vadd.f32 %v6482_v59, %v1437_v53  ;;  %v1441_v63 = vadd.f32 %v1440_v6, %v7244_v61  ;;  %v1442_v34 = vpop.f32.mrb[87].mxu1  ;;  %v7247_v11 = vld [vmem:[#allocation37_spill] sm:$0xff] }
 0x21a   : > { %v4570_v12 = vpop.eup %4569  ;;  %v2477_v57 = vmul.f32 %v4568_v47, %v6526_v45  ;;  %4589 = vpow2.f32 %v3724_v49  ;;  %v6621_v56 = vadd.f32 %v6487_v10, %v1439_v22  ;;  %v1443_v4 = vadd.f32 %v1442_v34, %v7245_v25  ;;  %v7248_v47 = vld [vmem:[#allocation38_spill] sm:$0xff] }
 0x21b   : > { %v4572_v32 = vpop.eup %4571  ;;  %v2102_v9 = vadd.f32 1.0, %v4570_v12  ;;  %4591 = vpow2.f32 %v3727_v58  ;;  %3276 = vmatprep.mubr.bf16.mxu0 %v2594_v18  ;;  %v6626_v51 = vadd.f32 %v6482_v59, %v1441_v63  ;;  %v3731_v7 = vmul.f32 -1.442695, %v6617_v17  ;;  %v7249_v12 = vld [vmem:[#allocation39_spill] sm:$0xff] }
 0x21c   : > { %v4574_v1 = vpop.eup %4573  ;;  %v2105_v45 = vadd.f32 1.0, %v4572_v32  ;;  %4593 = vpow2.f32 %v3728_v28  ;;  %3277 = vmatmul.mubr.bf16.vlgmr.msra.gmra.mrb[0].mxu0 %v2593_v23  ;;  %v6629_v40 = vadd.f32 %v6487_v10, %v1443_v4  ;;  %v2597_v35 = vpack.c.bf16 %v2477_v57, %v2473_v37 }
 0x21d   : > { %v4576_v16 = vpop.eup %4575  ;;  %4595 = vrcp.f32 %v2102_v9  ;;  %v2106_v29 = vadd.f32 1.0, %v4574_v1  ;;  %v2474_v30 = vmul.f32 %v4566_v20, %v6521_v33  ;;  %v3732_v23 = vmul.f32 -1.442695, %v6621_v56 }
 0x21e   : > { %v4578_v27 = vpop.eup %4577  ;;  %4597 = vrcp.f32 %v2105_v45  ;;  %v2109_v26 = vadd.f32 1.0, %v4576_v16  ;;  %v1446_v41 = vpop.f32.mrb[88].mxu1  ;;  %v3735_v2 = vmul.f32 -1.442695, %v6626_v51  ;;  %v3736_v44 = vmul.f32 -1.442695, %v6629_v40 }
 0x21f   : > { %v4580_v5 = vpop.eup %4579  ;;  %4599 = vrcp.f32 %v2106_v29  ;;  %v2110_v3 = vadd.f32 1.0, %v4578_v27  ;;  %v1447_v54 = vadd.f32 %v1446_v41, %v7246_v31  ;;  %v1448_v49 = vpop.f32.mrb[89].mxu1 }
 0x220   : > { %v4582_v24 = vpop.eup %4581  ;;  %v2478_v19 = vmul.f32 %v4580_v5, %v6535_v21  ;;  %4601 = vrcp.f32 %v2109_v26  ;;  %v1449_v33 = vadd.f32 %v1448_v49, %v7247_v11  ;;  %v1450_v58 = vpop.f32.mrb[90].mxu1 }
 0x221   : > { %v4584_v39 = vpop.eup %4583  ;;  %4603 = vrcp.f32 %v2110_v3  ;;  %v6640_v28 = vadd.f32 %v6482_v59, %v1447_v54  ;;  %v1452_v21 = vpop.f32.mrb[91].mxu1  ;;  %v1451_v18 = vadd.f32 %v1450_v58, %v7248_v47  ;;  %v2481_v22 = vmul.f32 %v4582_v24, %v6540_v15 }
 0x222   : > { %v4586_v43 = vpop.eup %4585  ;;  %4605 = vpow2.f32 %v3731_v7  ;;  %v2598_v20 = vpack.c.bf16 %v2478_v19, %v2474_v30  ;;  %v6644_v48 = vadd.f32 %v6487_v10, %v1449_v33  ;;  %v1453_v57 = vadd.f32 %v1452_v21, %v7249_v12  ;;  %v7250_v7 = vld [vmem:[#allocation40_spill] sm:$0xff] }
 0x223   : > { %v4588_v14 = vpop.eup %4587  ;;  %v2485_v53 = vmul.f32 %v4586_v43, %v6549_v60  ;;  %4607 = vpow2.f32 %v3732_v23  ;;  %v3739_v60 = vmul.f32 -1.442695, %v6640_v28  ;;  %v6651_v34 = vadd.f32 %v6482_v59, %v1451_v18  ;;  %v7251_v23 = vld [vmem:[#allocation41_spill] sm:$0xff]  ;;  %v7253_v43 = vld [vmem:[#allocation43_spill] sm:$0xff] }
 0x224   : > { %v4590_v13 = vpop.eup %4589  ;;  %v2113_v6 = vadd.f32 1.0, %v4588_v14  ;;  %4609 = vpow2.f32 %v3735_v2  ;;  %3286 = vmatprep.mubr.bf16.mxu0 %v2598_v20  ;;  %v6654_v25 = vadd.f32 %v6487_v10, %v1453_v57  ;;  %v2482_v1 = vmul.f32 %v4584_v39, %v6544_v36 }
 0x225   : > { %v4592_v61 = vpop.eup %4591  ;;  %v2114_v63 = vadd.f32 1.0, %v4590_v13  ;;  %4611 = vpow2.f32 %v3736_v44  ;;  %3287 = vmatmul.mubr.bf16.gmra.mrb[4].mxu0 %v2597_v35  ;;  %v2601_v15 = vpack.c.bf16 %v2485_v53, %v2481_v22  ;;  %v3740_v45 = vmul.f32 -1.442695, %v6644_v48  ;;  %v7252_v44 = vld [vmem:[#allocation42_spill] sm:$0xff] }
 0x226   : > { %v4594_v32 = vpop.eup %4593  ;;  %4613 = vrcp.f32 %v2113_v6  ;;  %v2117_v9 = vadd.f32 1.0, %v4592_v61  ;;  %v1456_v16 = vpop.f32.mrb[92].mxu1  ;;  %v3743_v26 = vmul.f32 -1.442695, %v6651_v34  ;;  %v3744_v3 = vmul.f32 -1.442695, %v6654_v25 }
 0x227   : > { %v4596_v4 = vpop.eup %4595  ;;  %4615 = vrcp.f32 %v2114_v63  ;;  %v2118_v37 = vadd.f32 1.0, %v4594_v32  ;;  %v1457_v35 = vadd.f32 %v1456_v16, %v7250_v7  ;;  %v1458_v5 = vpop.f32.mrb[93].mxu1  ;;  %v7254_v32 = vld [vmem:[#allocation44_spill] sm:$0xff] }
 0x228   : > { %v4598_v29 = vpop.eup %4597  ;;  %v2486_v27 = vmul.f32 %v4596_v4, %v6559_v50  ;;  %4617 = vrcp.f32 %v2117_v9  ;;  %v1459_v36 = vadd.f32 %v1458_v5, %v7251_v23  ;;  %v1460_v41 = vpop.f32.mrb[94].mxu1  ;;  %v7257_v23 = vld [vmem:[#allocation47_spill] sm:$0xff] }
 0x229   : > { %v4600_v30 = vpop.eup %4599  ;;  %4619 = vrcp.f32 %v2118_v37  ;;  %v6665_v50 = vadd.f32 %v6482_v59, %v1457_v35  ;;  %v1462_v31 = vpop.f32.mrb[95].mxu1  ;;  %v1461_v11 = vadd.f32 %v1460_v41, %v7252_v44  ;;  %v2489_v14 = vmul.f32 %v4598_v29, %v6564_v38  ;;  %v7255_v37 = vld [vmem:[#allocation45_spill] sm:$0xff] }
 0x22a   : > { %v4602_v24 = vpop.eup %4601  ;;  %v2490_v19 = vmul.f32 %v4600_v30, %v6568_v46  ;;  %4621 = vpow2.f32 %v3739_v60  ;;  %v2602_v2 = vpack.c.bf16 %v2486_v27, %v2482_v1  ;;  %v6669_v39 = vadd.f32 %v6487_v10, %v1459_v36 }
 0x22b   : > { %v4604_v54 = vpop.eup %4603  ;;  %v2493_v49 = vmul.f32 %v4602_v24, %v6573_v0  ;;  %4623 = vpow2.f32 %v3740_v45  ;;  %v3747_v46 = vmul.f32 -1.442695, %v6665_v50  ;;  %v1463_v20 = vadd.f32 %v1462_v31, %v7253_v43 }
 0x22c   : > { %v4606_v33 = vpop.eup %4605  ;;  %v2494_v58 = vmul.f32 %v4604_v54, %v6577_v55  ;;  %4625 = vpow2.f32 %v3743_v26  ;;  %3296 = vmatprep.mubr.bf16.mxu0 %v2602_v2  ;;  %v6677_v0 = vadd.f32 %v6482_v59, %v1461_v11  ;;  %v3748_v12 = vmul.f32 -1.442695, %v6669_v39  ;;  %v7256_v26 = vld [vmem:[#allocation46_spill] sm:$0xff] }
 0x22d   : > { %v4608_v21 = vpop.eup %4607  ;;  %v2121_v53 = vadd.f32 1.0, %v4606_v33  ;;  %4627 = vpow2.f32 %v3744_v3  ;;  %3297 = vmatmul.mubr.bf16.gmra.mrb[8].mxu0 %v2601_v15  ;;  %v6680_v55 = vadd.f32 %v6487_v10, %v1463_v20  ;;  %v2605_v57 = vpack.c.bf16 %v2493_v49, %v2489_v14  ;;  %v7258_v14 = vld [vmem:[#allocation48_spill] sm:$0xff] }
 0x22e   : > { %v4610_v47 = vpop.eup %4609  ;;  %v2122_v18 = vadd.f32 1.0, %v4608_v21  ;;  %4629 = vpow2.f32 %v3747_v46  ;;  %v2606_v13 = vpack.c.bf16 %v2494_v58, %v2490_v19  ;;  %v1466_v38 = vpop.f32.mrb[96].mxu1  ;;  %v3751_v60 = vmul.f32 -1.442695, %v6677_v0 }
 0x22f   : > { %v4612_v22 = vpop.eup %4611  ;;  %4631 = vrcp.f32 %v2121_v53  ;;  %v2125_v6 = vadd.f32 1.0, %v4610_v47  ;;  %v1467_v9 = vadd.f32 %v1466_v38, %v7254_v32  ;;  %v1468_v15 = vpop.f32.mrb[97].mxu1  ;;  %v3752_v1 = vmul.f32 -1.442695, %v6680_v55 }
 0x230   : > { %v4614_v61 = vpop.eup %4613  ;;  %4633 = vrcp.f32 %v2122_v18  ;;  %v2126_v63 = vadd.f32 1.0, %v4612_v22  ;;  %3306 = vmatprep.mubr.bf16.mxu0 %v2606_v13  ;;  %v1469_v45 = vadd.f32 %v1468_v15, %v7255_v37  ;;  %v1470_v16 = vpop.f32.mrb[98].mxu1  ;;  %v7261_v37 = vld [vmem:[#allocation51_spill] sm:$0xff] }
 0x231   : > { %v4616_v4 = vpop.eup %4615  ;;  %4635 = vrcp.f32 %v2125_v6  ;;  %v6688_v27 = vadd.f32 %v6482_v59, %v1467_v9  ;;  %v1471_v7 = vadd.f32 %v1470_v16, %v7256_v26  ;;  %v1472_v35 = vpop.f32.mrb[99].mxu1  ;;  %v2497_v54 = vmul.f32 %v4614_v61, %v6593_v52  ;;  %v7259_v6 = vld [vmem:[#allocation49_spill] sm:$0xff] }
 0x232   : > { %v4618_v29 = vpop.eup %4617  ;;  %4637 = vrcp.f32 %v2126_v63  ;;  %v2498_v30 = vmul.f32 %v4616_v4, %v6597_v62  ;;  %v1473_v36 = vadd.f32 %v1472_v35, %v7257_v23  ;;  %v6697_v2 = vadd.f32 %v6487_v10, %v1469_v45 }
 0x233   : > { %v4620_v5 = vpop.eup %4619  ;;  %v2501_v3 = vmul.f32 %v4618_v29, %v6603_v42  ;;  %4639 = vpow2.f32 %v3748_v12  ;;  %v3755_v19 = vmul.f32 -1.442695, %v6688_v27  ;;  %v6701_v62 = vadd.f32 %v6482_v59, %v1471_v7 }
 0x234   : > { %v4622_v41 = vpop.eup %4621  ;;  %v2502_v24 = vmul.f32 %v4620_v5, %v6607_v8  ;;  %4641 = vpow2.f32 %v3751_v60  ;;  %v6704_v8 = vadd.f32 %v6487_v10, %v1473_v36  ;;  %v3756_v21 = vmul.f32 -1.442695, %v6697_v2  ;;  %v7260_v60 = vld [vmem:[#allocation50_spill] sm:$0xff] }
 0x235   : > { %v4624_v31 = vpop.eup %4623  ;;  %v2129_v49 = vadd.f32 1.0, %v4622_v41  ;;  %4643 = vpow2.f32 %v3752_v1  ;;  %3307 = vmatmul.mubr.bf16.gmra.mrb[12].mxu0 %v2605_v57  ;;  %v2609_v46 = vpack.c.bf16 %v2501_v3, %v2497_v54  ;;  %v3759_v22 = vmul.f32 -1.442695, %v6701_v62 }
 0x236   : > { %v4626_v42 = vpop.eup %4625  ;;  %v2130_v44 = vadd.f32 1.0, %v4624_v31  ;;  %4645 = vpow2.f32 %v3755_v19  ;;  %v2610_v11 = vpack.c.bf16 %v2502_v24, %v2498_v30  ;;  %v1476_v43 = vpop.f32.mrb[100].mxu1  ;;  %v3760_v61 = vmul.f32 -1.442695, %v6704_v8 }
 0x237   : > { %v4628_v33 = vpop.eup %4627  ;;  %4647 = vrcp.f32 %v2129_v49  ;;  %v2133_v58 = vadd.f32 1.0, %v4626_v42  ;;  %v1477_v53 = vadd.f32 %v1476_v43, %v7258_v14  ;;  %v1478_v47 = vpop.f32.mrb[101].mxu1  ;;  %v7262_v49 = vld [vmem:[#allocation52_spill] sm:$0xff] }
 0x238   : > { %v4630_v20 = vpop.eup %4629  ;;  %4649 = vrcp.f32 %v2130_v44  ;;  %v2134_v52 = vadd.f32 1.0, %v4628_v33  ;;  %3316 = vmatprep.mubr.bf16.mxu0 %v2610_v11  ;;  %v1479_v12 = vadd.f32 %v1478_v47, %v7259_v6  ;;  %v1480_v57 = vpop.f32.mrb[102].mxu1 }
 0x239   : > { %v4632_v18 = vpop.eup %4631  ;;  %4651 = vrcp.f32 %v2133_v58  ;;  %v2137_v13 = vadd.f32 1.0, %v4630_v20  ;;  %v6712_v63 = vadd.f32 %v6482_v59, %v1477_v53  ;;  %v1481_v32 = vadd.f32 %v1480_v57, %v7260_v60  ;;  %v1482_v9 = vpop.f32.mrb[103].mxu1  ;;  %v7264_v53 = vld [vmem:[#allocation54_spill] sm:$0xff] }
 0x23a   : > { %v4634_v38 = vpop.eup %4633  ;;  %4653 = vrcp.f32 %v2134_v52  ;;  %v2505_v4 = vmul.f32 %v4632_v18, %v6617_v17  ;;  %v6717_v1 = vadd.f32 %v6487_v10, %v1479_v12  ;;  %v1483_v45 = vadd.f32 %v1482_v9, %v7261_v37  ;;  %v7265_v12 = vld [vmem:[#allocation55_spill] sm:$0xff] }
 0x23b   : > { %v4636_v15 = vpop.eup %4635  ;;  %4655 = vrcp.f32 %v2137_v13  ;;  %v3763_v26 = vmul.f32 -1.442695, %v6712_v63  ;;  %v6723_v7 = vadd.f32 %v6482_v59, %v1481_v32  ;;  %v2506_v5 = vmul.f32 %v4634_v38, %v6621_v56 }
 0x23c   : > { %v4638_v16 = vpop.eup %4637  ;;  %v2509_v29 = vmul.f32 %v4636_v15, %v6626_v51  ;;  %4657 = vpow2.f32 %v3756_v21  ;;  %v6728_v30 = vadd.f32 %v6487_v10, %v1483_v45  ;;  %v3764_v24 = vmul.f32 -1.442695, %v6717_v1 }
 0x23d   : > { %v4640_v35 = vpop.eup %4639  ;;  %v2510_v17 = vmul.f32 %v4638_v16, %v6629_v40  ;;  %4659 = vpow2.f32 %v3759_v22  ;;  %3317 = vmatmul.mubr.bf16.gmra.mrb[16].mxu0 %v2609_v46  ;;  %v3767_v40 = vmul.f32 -1.442695, %v6723_v7  ;;  %v7263_v46 = vld [vmem:[#allocation53_spill] sm:$0xff] }
 0x23e   : > { %v4642_v3 = vpop.eup %4641  ;;  %v2138_v23 = vadd.f32 1.0, %v4640_v35  ;;  %4661 = vpow2.f32 %v3760_v61  ;;  %v2613_v51 = vpack.c.bf16 %v2509_v29, %v2505_v4  ;;  %v1486_v31 = vpop.f32.mrb[104].mxu1  ;;  %v3768_v58 = vmul.f32 -1.442695, %v6728_v30 }
 0x23f   : > { %v4644_v36 = vpop.eup %4643  ;;  %v2141_v41 = vadd.f32 1.0, %v4642_v3  ;;  %4663 = vpow2.f32 %v3763_v26  ;;  %v2614_v19 = vpack.c.bf16 %v2510_v17, %v2506_v5  ;;  %v1487_v42 = vadd.f32 %v1486_v31, %v7262_v49  ;;  %v1488_v44 = vpop.f32.mrb[105].mxu1  ;;  %v7266_v17 = vld [vmem:[#allocation56_spill] sm:$0xff] }
 0x240   : > { %v4646_v54 = vpop.eup %4645  ;;  %4665 = vrcp.f32 %v2138_v23  ;;  %v2142_v56 = vadd.f32 1.0, %v4644_v36  ;;  %v1489_v43 = vadd.f32 %v1488_v44, %v7263_v46  ;;  %v1490_v20 = vpop.f32.mrb[106].mxu1 }
 0x241   : > { %v4648_v11 = vpop.eup %4647  ;;  %4667 = vrcp.f32 %v2141_v41  ;;  %v2145_v33 = vadd.f32 1.0, %v4646_v54  ;;  %3326 = vmatprep.mubr.bf16.mxu0 %v2614_v19  ;;  %v6737_v14 = vadd.f32 %v6482_v59, %v1487_v42  ;;  %v1491_v47 = vadd.f32 %v1490_v20, %v7264_v53  ;;  %v1492_v18 = vpop.f32.mrb[107].mxu1 }
 0x242   : > { %v4650_v52 = vpop.eup %4649  ;;  %v2513_v21 = vmul.f32 %v4648_v11, %v6640_v28  ;;  %4669 = vrcp.f32 %v2142_v56  ;;  %v6742_v6 = vadd.f32 %v6487_v10, %v1489_v43  ;;  %v1493_v57 = vadd.f32 %v1492_v18, %v7265_v12 }
 0x243   : > { %v4652_v13 = vpop.eup %4651  ;;  %v2514_v22 = vmul.f32 %v4650_v52, %v6644_v48  ;;  %4671 = vrcp.f32 %v2145_v33  ;;  %v3771_v28 = vmul.f32 -1.442695, %v6737_v14  ;;  %v6748_v60 = vadd.f32 %v6482_v59, %v1491_v47 }
 0x244   : > { %v4654_v38 = vpop.eup %4653  ;;  %v2517_v61 = vmul.f32 %v4652_v13, %v6651_v34  ;;  %4673 = vpow2.f32 %v3764_v24  ;;  %v3772_v48 = vmul.f32 -1.442695, %v6742_v6  ;;  %v6753_v15 = vadd.f32 %v6487_v10, %v1493_v57 }
 0x245   : > { %v4656_v32 = vpop.eup %4655  ;;  %v2518_v9 = vmul.f32 %v4654_v38, %v6654_v25  ;;  %4675 = vpow2.f32 %v3767_v40  ;;  %3327 = vmatmul.mubr.bf16.gmra.mrb[20].mxu0 %v2613_v51  ;;  %v3775_v5 = vmul.f32 -1.442695, %v6748_v60  ;;  %v7268_v40 = vld [vmem:[#allocation59_spill] sm:$0xff] }
 0x246   : > { %v4658_v4 = vpop.eup %4657  ;;  %4677 = vpow2.f32 %v3768_v58  ;;  %v2617_v37 = vpack.c.bf16 %v2517_v61, %v2513_v21  ;;  %v6756_v45 = vmul.f32 %v4656_v32, %v6665_v50  ;;  %v1496_v26 = vpop.f32.mrb[108].mxu1  ;;  %v3776_v41 = vmul.f32 -1.442695, %v6753_v15  ;;  %v7267_v50 = vld [vmem:[#allocation57_spill] sm:$0xff]  ;;  %v7269_v58 = vld [vmem:[#allocation60_spill] sm:$0xff] }
 0x247   : > { %v4660_v34 = vpop.eup %4659  ;;  %v2146_v16 = vadd.f32 1.0, %v4658_v4  ;;  %4679 = vpow2.f32 %v3771_v28  ;;  %v2618_v29 = vpack.c.bf16 %v2518_v9, %v2514_v22  ;;  %v1497_v3 = vadd.f32 %v1496_v26, %v7266_v17  ;;  %v1498_v23 = vpop.f32.mrb[109].mxu1  ;;  %v7270_v32 = vld [vmem:[#allocation61_spill] sm:$0xff] }
 0x248   : > { %v4662_v35 = vpop.eup %4661  ;;  %v2149_v25 = vadd.f32 1.0, %v4660_v34  ;;  %4681 = vpow2.f32 %v3772_v48  ;;  %v1499_v24 = vadd.f32 %v1498_v23, %v7267_v50  ;;  %v1500_v19 = vpop.f32.mrb[110].mxu1 }
 0x249   : > { %v4664_v51 = vpop.eup %4663  ;;  %4683 = vrcp.f32 %v2146_v16  ;;  %v2150_v36 = vadd.f32 1.0, %v4662_v35  ;;  %3336 = vmatprep.mubr.bf16.mxu0 %v2618_v29  ;;  %v6763_v56 = vadd.f32 %v6482_v59, %v1497_v3  ;;  %v1501_v49 = vadd.f32 %v1500_v19, %v7268_v40  ;;  %v1502_v42 = vpop.f32.mrb[111].mxu1 }
 0x24a   : > { %v4666_v31 = vpop.eup %4665  ;;  %4685 = vrcp.f32 %v2149_v25  ;;  %v2153_v54 = vadd.f32 1.0, %v4664_v51  ;;  %v6768_v33 = vadd.f32 %v6487_v10, %v1499_v24  ;;  %v1503_v46 = vadd.f32 %v1502_v42, %v7269_v58 }
 0x24b   : > { %v4668_v44 = vpop.eup %4667  ;;  %v2522_v11 = vmul.f32 %v4666_v31, %v6669_v39  ;;  %4687 = vrcp.f32 %v2150_v36  ;;  %v3779_v52 = vmul.f32 -1.442695, %v6763_v56  ;;  %v6774_v21 = vadd.f32 %v6482_v59, %v1501_v49 }
 0x24c   : > { %v4670_v43 = vpop.eup %4669  ;;  %v2525_v20 = vmul.f32 %v4668_v44, %v6677_v0  ;;  %4689 = vrcp.f32 %v2153_v54  ;;  %v3780_v39 = vmul.f32 -1.442695, %v6768_v33  ;;  %v6779_v18 = vadd.f32 %v6487_v10, %v1503_v46 }
 0x24d   : > { %v4672_v53 = vpop.eup %4671  ;;  %v2526_v47 = vmul.f32 %v4670_v43, %v6680_v55  ;;  %4691 = vpow2.f32 %v3775_v5  ;;  %3337 = vmatmul.mubr.bf16.gmra.mrb[24].mxu0 %v2617_v37  ;;  %v3783_v55 = vmul.f32 -1.442695, %v6774_v21  ;;  %v7272_v5 = vld [vmem:[#allocation65_spill] sm:$0xff] }
 0x24e   : > { %v4674_v13 = vpop.eup %4673  ;;  %4693 = vpow2.f32 %v3776_v41  ;;  %v2621_v0 = vpack.c.bf16 %v2525_v20, %v6756_v45  ;;  %v1506_v38 = vpop.f32.mrb[112].mxu1  ;;  %v3784_v34 = vmul.f32 -1.442695, %v6779_v18  ;;  %v7271_v45 = vld [vmem:[#allocation62_spill] sm:$0xff]  ;;  %v2529_v19 = vmul.f32 %v4672_v53, %v6688_v27 }
 0x24f   : > { %v4676_v22 = vpop.eup %4675  ;;  %v2154_v12 = vadd.f32 1.0, %v4674_v13  ;;  %4695 = vpow2.f32 %v3779_v52  ;;  %v2622_v57 = vpack.c.bf16 %v2526_v47, %v2522_v11  ;;  %v1507_v9 = vadd.f32 %v1506_v38, %v7270_v32  ;;  %v1508_v48 = vpop.f32.mrb[113].mxu1  ;;  %v7273_v41 = vld [vmem:[#allocation66_spill] sm:$0xff]  ;;  %v7276_v32 = vld [vmem:[#allocation71_spill] sm:$0xff] }
 0x250   : > { %v4678_v61 = vpop.eup %4677  ;;  %v2157_v28 = vadd.f32 1.0, %v4676_v22  ;;  %4697 = vpow2.f32 %v3780_v39  ;;  %v1509_v16 = vadd.f32 %v1508_v48, %v7271_v45  ;;  %v1510_v29 = vpop.f32.mrb[114].mxu1  ;;  %v7274_v39 = vld [vmem:[#allocation67_spill] sm:$0xff]  ;;  %v7277_v45 = vld [vmem:[#allocation72_spill] sm:$0xff] }
 0x251   : > { %v4680_v4 = vpop.eup %4679  ;;  %4699 = vrcp.f32 %v2154_v12  ;;  %v2158_v37 = vadd.f32 1.0, %v4678_v61  ;;  %3346 = vmatprep.mubr.bf16.mxu0 %v2622_v57  ;;  %v6787_v25 = vadd.f32 %v6482_v59, %v1507_v9  ;;  %v1511_v17 = vadd.f32 %v1510_v29, %v7272_v5  ;;  %v1512_v3 = vpop.f32.mrb[115].mxu1 }
 0x252   : > { %v4682_v26 = vpop.eup %4681  ;;  %4701 = vrcp.f32 %v2157_v28  ;;  %v2161_v35 = vadd.f32 1.0, %v4680_v4  ;;  %v6791_v36 = vadd.f32 %v6487_v10, %v1509_v16  ;;  %v1513_v50 = vadd.f32 %v1512_v3, %v7273_v41 }
 0x253   : > { %v4684_v23 = vpop.eup %4683  ;;  %4703 = vrcp.f32 %v2158_v37  ;;  %v2162_v51 = vadd.f32 1.0, %v4682_v26  ;;  %v3787_v31 = vmul.f32 -1.442695, %v6787_v25  ;;  %v6797_v54 = vadd.f32 %v6482_v59, %v1511_v17 }
 0x254   : > { %v4686_v24 = vpop.eup %4685  ;;  %4705 = vrcp.f32 %v2161_v35  ;;  %v3788_v42 = vmul.f32 -1.442695, %v6791_v36  ;;  %v6802_v44 = vadd.f32 %v6487_v10, %v1513_v50  ;;  %v2530_v58 = vmul.f32 %v4684_v23, %v6697_v2 }
 0x255   : > { %v4688_v40 = vpop.eup %4687  ;;  %v2533_v49 = vmul.f32 %v4686_v24, %v6701_v62  ;;  %4707 = vrcp.f32 %v2162_v51  ;;  %3347 = vmatmul.mubr.bf16.gmra.mrb[28].mxu0 %v2621_v0  ;;  %v3791_v43 = vmul.f32 -1.442695, %v6797_v54 }
 0x256   : > { %v4690_v11 = vpop.eup %4689  ;;  %v2534_v27 = vmul.f32 %v4688_v40, %v6704_v8  ;;  %4709 = vpow2.f32 %v3783_v55  ;;  %v1516_v52 = vpop.f32.mrb[116].mxu1  ;;  %v3792_v2 = vmul.f32 -1.442695, %v6802_v44  ;;  %v7275_v8 = vld [vmem:[#allocation68_spill] sm:$0xff] }
 0x257   : > { %v4692_v46 = vpop.eup %4691  ;;  %4711 = vpow2.f32 %v3784_v34  ;;  %v2625_v20 = vpack.c.bf16 %v2533_v49, %v2529_v19  ;;  %v1517_v13 = vadd.f32 %v1516_v52, %v7274_v39  ;;  %v1518_v0 = vpop.f32.mrb[117].mxu1  ;;  %v2537_v26 = vmul.f32 %v4690_v11, %v6712_v63 }
 0x258   : > { %v4694_v62 = vpop.eup %4693  ;;  %v2165_v53 = vadd.f32 1.0, %v4692_v46  ;;  %4713 = vpow2.f32 %v3787_v31  ;;  %v2626_v47 = vpack.c.bf16 %v2534_v27, %v2530_v58  ;;  %v1519_v57 = vadd.f32 %v1518_v0, %v7275_v8  ;;  %v1520_v38 = vpop.f32.mrb[118].mxu1 }
 0x259   : > { %v4696_v22 = vpop.eup %4695  ;;  %v2166_v12 = vadd.f32 1.0, %v4694_v62  ;;  %4715 = vpow2.f32 %v3788_v42  ;;  %v6811_v55 = vadd.f32 %v6482_v59, %v1517_v13  ;;  %v1521_v9 = vadd.f32 %v1520_v38, %v7276_v32  ;;  %v1522_v48 = vpop.f32.mrb[119].mxu1  ;;  %v7278_v42 = vld [vmem:[#allocation73_spill] sm:$0xff] }
 0x25a   : > { %v4698_v61 = vpop.eup %4697  ;;  %4717 = vrcp.f32 %v2165_v53  ;;  %v2169_v28 = vadd.f32 1.0, %v4696_v22  ;;  %3356 = vmatprep.mubr.bf16.mxu0 %v2626_v47  ;;  %v6815_v34 = vadd.f32 %v6487_v10, %v1519_v57  ;;  %v1523_v16 = vadd.f32 %v1522_v48, %v7277_v45  ;;  %v7280_v47 = vld [vmem:[#allocation77_spill] sm:$0xff] }
 0x25b   : > { %v4700_v4 = vpop.eup %4699  ;;  %4719 = vrcp.f32 %v2166_v12  ;;  %v2170_v37 = vadd.f32 1.0, %v4698_v61  ;;  %v3795_v35 = vmul.f32 -1.442695, %v6811_v55  ;;  %v6821_v5 = vadd.f32 %v6482_v59, %v1521_v9 }
 0x25c   : > { %v4702_v29 = vpop.eup %4701  ;;  %4721 = vrcp.f32 %v2169_v28  ;;  %v3796_v23 = vmul.f32 -1.442695, %v6815_v34  ;;  %v6826_v51 = vadd.f32 %v6487_v10, %v1523_v16  ;;  %v2538_v50 = vmul.f32 %v4700_v4, %v6717_v1 }
 0x25d   : > { %v4704_v17 = vpop.eup %4703  ;;  %v2541_v3 = vmul.f32 %v4702_v29, %v6723_v7  ;;  %4723 = vrcp.f32 %v2170_v37  ;;  %3357 = vmatmul.mubr.bf16.gmra.mrb[32].mxu0 %v2625_v20  ;;  %v3799_v24 = vmul.f32 -1.442695, %v6821_v5  ;;  %v7279_v20 = vld [vmem:[#allocation74_spill] sm:$0xff] }
 0x25e   : > { %v4706_v41 = vpop.eup %4705  ;;  %v2542_v63 = vmul.f32 %v4704_v17, %v6728_v30  ;;  %4725 = vpow2.f32 %v3791_v43  ;;  %v1526_v40 = vpop.f32.mrb[120].mxu1  ;;  %v3800_v1 = vmul.f32 -1.442695, %v6826_v51 }
 0x25f   : > { %v4708_v19 = vpop.eup %4707  ;;  %4727 = vpow2.f32 %v3792_v2  ;;  %v2629_v31 = vpack.c.bf16 %v2541_v3, %v2537_v26  ;;  %v1527_v11 = vadd.f32 %v1526_v40, %v7278_v42  ;;  %v1528_v58 = vpop.f32.mrb[121].mxu1  ;;  %v7281_v2 = vld [vmem:[#allocation78_spill] sm:$0xff]  ;;  %v2545_v9 = vmul.f32 %v4706_v41, %v6737_v14 }
 0x260   : > { %v4710_v7 = vpop.eup %4709  ;;  %4729 = vpow2.f32 %v3795_v35  ;;  %v2630_v49 = vpack.c.bf16 %v2542_v63, %v2538_v50  ;;  %v1529_v30 = vadd.f32 %v1528_v58, %v7279_v20  ;;  %v1530_v43 = vpop.f32.mrb[122].mxu1  ;;  %v2546_v45 = vmul.f32 %v4708_v19, %v6742_v6 }
 0x261   : > { %v4712_v27 = vpop.eup %4711  ;;  %v2173_v46 = vadd.f32 1.0, %v4710_v7  ;;  %4731 = vpow2.f32 %v3796_v23  ;;  %v6835_v53 = vadd.f32 %v6482_v59, %v1527_v11  ;;  %v1531_v39 = vadd.f32 %v1530_v43, %v7280_v47  ;;  %v1532_v13 = vpop.f32.mrb[123].mxu1  ;;  %v7282_v23 = vld [vmem:[#allocation79_spill] sm:$0xff] }
 0x262   : > { %v4714_v52 = vpop.eup %4713  ;;  %v2174_v62 = vadd.f32 1.0, %v4712_v27  ;;  %4733 = vpow2.f32 %v3799_v24  ;;  %3366 = vmatprep.mubr.bf16.mxu0 %v2630_v49  ;;  %v6839_v12 = vadd.f32 %v6487_v10, %v1529_v30  ;;  %v1533_v8 = vadd.f32 %v1532_v13, %v7281_v2  ;;  %v7284_v49 = vld [vmem:[#allocation82_spill] sm:$0xff] }
 0x263   : > { %v4716_v0 = vpop.eup %4715  ;;  %4735 = vrcp.f32 %v2173_v46  ;;  %v2177_v22 = vadd.f32 1.0, %v4714_v52  ;;  %v3803_v61 = vmul.f32 -1.442695, %v6835_v53  ;;  %v6844_v28 = vadd.f32 %v6482_v59, %v1531_v39 }
 0x264   : > { %v4718_v57 = vpop.eup %4717  ;;  %4737 = vrcp.f32 %v2174_v62  ;;  %v2178_v38 = vadd.f32 1.0, %v4716_v0  ;;  %v3804_v4 = vmul.f32 -1.442695, %v6839_v12  ;;  %v6853_v14 = vadd.f32 %v6487_v10, %v1533_v8 }
 0x265   : > { %v4720_v32 = vpop.eup %4719  ;;  %v2549_v48 = vmul.f32 %v4718_v57, %v6748_v60  ;;  %4739 = vrcp.f32 %v2177_v22  ;;  %3367 = vmatmul.mubr.bf16.gmra.mrb[36].mxu0 %v2629_v31  ;;  %v3807_v29 = vmul.f32 -1.442695, %v6844_v28 }
 0x266   : > { %v4722_v37 = vpop.eup %4721  ;;  %v2550_v16 = vmul.f32 %v4720_v32, %v6753_v15  ;;  %4741 = vrcp.f32 %v2178_v38  ;;  %v1536_v17 = vpop.f32.mrb[124].mxu1  ;;  %v7283_v15 = vld [vmem:[#allocation80_spill] sm:$0xff]  ;;  %v3808_v52 = vmul.f32 -1.442695, %v6853_v14 }
 0x267   : > { %v4724_v26 = vpop.eup %4723  ;;  %4743 = vpow2.f32 %v3800_v1  ;;  %v2633_v35 = vpack.c.bf16 %v2549_v48, %v2545_v9  ;;  %v1537_v41 = vadd.f32 %v1536_v17, %v7282_v23  ;;  %v1538_v50 = vpop.f32.mrb[125].mxu1  ;;  %v7285_v1 = vld [vmem:[#allocation83_spill] sm:$0xff]  ;;  %v2553_v22 = vmul.f32 %v4722_v37, %v6763_v56 }
 0x268   : > { %v4726_v3 = vpop.eup %4725  ;;  %4745 = vpow2.f32 %v3803_v61  ;;  %v2634_v60 = vpack.c.bf16 %v2550_v16, %v2546_v45  ;;  %v1539_v24 = vadd.f32 %v1538_v50, %v7283_v15  ;;  %v1540_v19 = vpop.f32.mrb[126].mxu1  ;;  %v2554_v38 = vmul.f32 %v4724_v26, %v6768_v33 }
 0x269   : > { %v4728_v63 = vpop.eup %4727  ;;  %v2181_v6 = vadd.f32 1.0, %v4726_v3  ;;  %4747 = vpow2.f32 %v3804_v4  ;;  %v6858_v7 = vadd.f32 %v6482_v59, %v1537_v41  ;;  %v1541_v42 = vadd.f32 %v1540_v19, %v7284_v49  ;;  %v1542_v11 = vpop.f32.mrb[127].mxu1 }
 0x26a   : > { %v4730_v31 = vpop.eup %4729  ;;  %v2182_v40 = vadd.f32 1.0, %v4728_v63  ;;  %4749 = vpow2.f32 %v3807_v29  ;;  %3376 = vmatprep.mubr.bf16.mxu0 %v2634_v60  ;;  %v6862_v46 = vadd.f32 %v6487_v10, %v1539_v24  ;;  %v1543_v20 = vadd.f32 %v1542_v11, %v7285_v1 }
 0x26b   : > { %v4732_v58 = vpop.eup %4731  ;;  %4751 = vrcp.f32 %v2181_v6  ;;  %v2185_v27 = vadd.f32 1.0, %v4730_v31  ;;  %v6867_v62 = vadd.f32 %v6482_v59, %v1541_v42  ;;  %v3811_v13 = vmul.f32 -1.442695, %v6858_v7 }
 0x26c   : > { %v4734_v30 = vpop.eup %4733  ;;  %4753 = vrcp.f32 %v2182_v40  ;;  %v2186_v43 = vadd.f32 1.0, %v4732_v58  ;;  %v3812_v8 = vmul.f32 -1.442695, %v6862_v46  ;;  %v6877_v9 = vadd.f32 %v6487_v10, %v1543_v20 }
 0x26d   : > { %v4736_v47 = vpop.eup %4735  ;;  %4755 = vrcp.f32 %v2185_v27  ;;  %v2189_v39 = vadd.f32 1.0, %v4734_v30  ;;  %3377 = vmatmul.mubr.bf16.gmra.mrb[40].mxu0 %v2633_v35  ;;  %v3815_v61 = vmul.f32 -1.442695, %v6867_v62 }
 0x26e   : > { %v4738_v0 = vpop.eup %4737  ;;  %v2557_v2 = vmul.f32 %v4736_v47, %v6774_v21  ;;  %4757 = vrcp.f32 %v2186_v43 }
 0x26f   : > { %v4740_v57 = vpop.eup %4739  ;;  %v2558_v59 = vmul.f32 %v4738_v0, %v6779_v18  ;;  %4759 = vrcp.f32 %v2189_v39  ;;  %v3816_v18 = vmul.f32 -1.442695, %v6877_v9 }
 0x270   : > { %v4742_v32 = vpop.eup %4741  ;;  %4761 = vpow2.f32 %v3808_v52  ;;  %v2637_v48 = vpack.c.bf16 %v2557_v2, %v2553_v22  ;;  %v2561_v35 = vmul.f32 %v4740_v57, %v6787_v25 }
 0x271   : > { %v4744_v56 = vpop.eup %4743  ;;  %4763 = vpow2.f32 %v3811_v13  ;;  %v2638_v21 = vpack.c.bf16 %v2558_v59, %v2554_v38  ;;  %v2562_v60 = vmul.f32 %v4742_v32, %v6791_v36 }
 0x272   : > { %v4746_v4 = vpop.eup %4745  ;;  %v2190_v37 = vadd.f32 1.0, %v4744_v56  ;;  %4765 = vpow2.f32 %v3812_v8 }
 0x273   : > { %v4748_v45 = vpop.eup %4747  ;;  %v2193_v16 = vadd.f32 1.0, %v4746_v4  ;;  %4767 = vpow2.f32 %v3815_v61  ;;  %3386 = vmatprep.mubr.bf16.mxu0 %v2638_v21 }
 0x274   : > { %v4750_v33 = vpop.eup %4749  ;;  %4769 = vrcp.f32 %v2190_v37  ;;  %v2194_v41 = vadd.f32 1.0, %v4748_v45 }
 0x275   : > { %v4752_v29 = vpop.eup %4751  ;;  %4771 = vrcp.f32 %v2193_v16  ;;  %v2197_v26 = vadd.f32 1.0, %v4750_v33  ;;  %3387 = vmatmul.mubr.bf16.gmra.mrb[44].mxu0 %v2637_v48 }
 0x276   : > { %v4754_v10 = vpop.eup %4753  ;;  %v2565_v17 = vmul.f32 %v4752_v29, %v6797_v54 }
 0x277   : > { %v4756_v3 = vpop.eup %4755  ;;  %v2566_v23 = vmul.f32 %v4754_v10, %v6802_v44  ;;  %4773 = vrcp.f32 %v2197_v26 }
 0x278   : > { %v4758_v50 = vpop.eup %4757  ;;  %4775 = vpow2.f32 %v3816_v18  ;;  %v2641_v63 = vpack.c.bf16 %v2565_v17, %v2561_v35  ;;  %v2569_v19 = vmul.f32 %v4756_v3, %v6811_v55 }
 0x279   : > { %v4760_v6 = vpop.eup %4759  ;;  %v2642_v15 = vpack.c.bf16 %v2566_v23, %v2562_v60  ;;  %4777 = vrcp.f32 %v2194_v41  ;;  %v2570_v27 = vmul.f32 %v4758_v50, %v6815_v34 }
 0x27a   : > { %v4762_v24 = vpop.eup %4761  ;;  %v2573_v31 = vmul.f32 %v4760_v6, %v6821_v5 }
 0x27b   : > { %v4764_v25 = vpop.eup %4763  ;;  %v2198_v54 = vadd.f32 1.0, %v4762_v24  ;;  %3396 = vmatprep.mubr.bf16.mxu0 %v2642_v15 }
 0x27c   : > { %v4766_v40 = vpop.eup %4765  ;;  %v2201_v36 = vadd.f32 1.0, %v4764_v25  ;;  %v2645_v49 = vpack.c.bf16 %v2573_v31, %v2569_v19 }
 0x27d   : > { %v4768_v44 = vpop.eup %4767  ;;  %4779 = vrcp.f32 %v2198_v54  ;;  %3397 = vmatmul.mubr.bf16.gmra.mrb[48].mxu0 %v2641_v63  ;;  %v2202_v1 = vadd.f32 1.0, %v4766_v40 }
 0x27e   : > { %v4770_v42 = vpop.eup %4769  ;;  %4781 = vrcp.f32 %v2201_v36  ;;  %v2205_v11 = vadd.f32 1.0, %v4768_v44 }
 0x27f   : > { %v4772_v58 = vpop.eup %4771  ;;  %v2574_v55 = vmul.f32 %v4770_v42, %v6826_v51 }
 0x280   : > { %4783 = vrcp.f32 %v2205_v11  ;;  %v2577_v43 = vmul.f32 %v4772_v58, %v6835_v53 }
 0x281   : > { %v4774_v5 = vpop.eup %4773  ;;  %v2646_v20 = vpack.c.bf16 %v2574_v55, %v2570_v27  ;;  %4785 = vrcp.f32 %v2202_v1 }
 0x282   : > { %v4776_v30 = vpop.eup %4775  ;;  %v2581_v52 = vmul.f32 %v4774_v5, %v6844_v28 }
 0x283   : > { %v2206_v47 = vadd.f32 1.0, %v4776_v30  ;;  %3406 = vmatprep.mubr.bf16.mxu0 %v2646_v20  ;;  %v4778_v13 = vpop.eup %4777 }
 0x284   : > { %v2649_v39 = vpack.c.bf16 %v2581_v52, %v2577_v43  ;;  %v2578_v51 = vmul.f32 %v4778_v13, %v6839_v12  ;;  %v2719_v12 = vld [vmem:[%s7094_s6] sm:$0x3] }
 0x285   : > { %4787 = vrcp.f32 %v2206_v47  ;;  %3407 = vmatmul.mubr.bf16.gmra.mrb[52].mxu0 %v2645_v49 }
 0x287   : > { %v4780_v0 = vpop.eup %4779 }
 0x288   : > { %v4782_v34 = vpop.eup %4781  ;;  %v2582_v22 = vmul.f32 %v4780_v0, %v6853_v14  ;;  %v7286_v14 = vld [vmem:[#allocation84_spill] sm:$0xff] }
 0x289   : > { %v2585_v57 = vmul.f32 %v4782_v34, %v6858_v7  ;;  %v6900_v7 = vrot.slane %v2719_v12, %v7286_v14 }
 0x28a   : > { %v4784_v2 = vpop.eup %4783  ;;  %v2650_v8 = vpack.c.bf16 %v2582_v22, %v2578_v51 }
 0x28b   : > { %v2589_v53 = vmul.f32 %v4784_v2, %v6867_v62  ;;  %v4786_v28 = vpop.eup %4785  ;;  %v7287_v62 = vld [vmem:[#allocation85_spill] sm:$0xff] }
 0x28c   : > { %3416 = vmatprep.mubr.bf16.mxu0 %v2650_v8  ;;  %v2586_v61 = vmul.f32 %v4786_v28, %v6862_v46  ;;  %v6903_v56 = vrot.slane %v2719_v12, %v7287_v62 }
 0x28d   : > { %3417 = vmatmul.mubr.bf16.gmra.mrb[56].mxu0 %v2649_v39  ;;  %v2653_v38 = vpack.c.bf16 %v2589_v53, %v2585_v57 }
 0x28f   : > { %v4788_v59 = vpop.eup %4787 }
 0x290   : > { %v2590_v32 = vmul.f32 %v4788_v59, %v6877_v9 }
 0x292   : > { %v2654_v48 = vpack.c.bf16 %v2590_v32, %v2586_v61 }
 0x294   : > { %3426 = vmatprep.mubr.bf16.mxu0 %v2654_v48 }
 0x295   : > { %3427 = vmatmul.mubr.bf16.gmra.mrb[60].mxu0 %v2653_v38 }
 0x2ef   : > { %v3278_v21 = vpop.f32.mrb[0].mxu0 }
 0x2f0   : > { %v3891_v4 = vadd.f32 %v3278_v21, %v6900_v7  ;;  %v3280_v37 = vpop.f32.mrb[1].mxu0 }
 0x2f1   : > { %v3892_v46 = vadd.f32 %v3280_v37, %v6903_v56  ;;  %v3282_v9 = vpop.f32.mrb[2].mxu0 }
 0x2f2   : > { %3437 = vst [vmem:[%s6909_s30] sm:$0xff] %v3891_v4  ;;  %v3893_v45 = vadd.f32 %v3282_v9, %v6900_v7  ;;  %v3284_v16 = vpop.f32.mrb[3].mxu0 }
 0x2f3   : > { %3438 = vst [vmem:[%s6909_s30 + $0x8] sm:$0xff] %v3892_v46  ;;  %v3894_v33 = vadd.f32 %v3284_v16, %v6903_v56 }
 0x2f4   : > { %3439 = vst [vmem:[%s6909_s30 + $0x10] sm:$0xff] %v3893_v45 }
 0x2f5   : > { %3440 = vst [vmem:[%s6909_s30 + $0x18] sm:$0xff] %v3894_v33 }
 0x2f8   : > { %v3288_v18 = vpop.f32.mrb[4].mxu0 }
 0x2f9   : > { %v3895_v29 = vadd.f32 %v3288_v18, %v6900_v7  ;;  %v3290_v26 = vpop.f32.mrb[5].mxu0 }
 0x2fa   : > { %v3896_v10 = vadd.f32 %v3290_v26, %v6903_v56  ;;  %v3292_v35 = vpop.f32.mrb[6].mxu0 }
 0x2fb   : > { %3441 = vst [vmem:[%s6909_s30 + $0x20] sm:$0xff] %v3895_v29  ;;  %v3897_v17 = vadd.f32 %v3292_v35, %v6900_v7  ;;  %v3294_v3 = vpop.f32.mrb[7].mxu0 }
 0x2fc   : > { %3442 = vst [vmem:[%s6909_s30 + $0x28] sm:$0xff] %v3896_v10  ;;  %v3898_v60 = vadd.f32 %v3294_v3, %v6903_v56 }
 0x2fd   : > { %3443 = vst [vmem:[%s6909_s30 + $0x30] sm:$0xff] %v3897_v17 }
 0x2fe   : > { %3444 = vst [vmem:[%s6909_s30 + $0x38] sm:$0xff] %v3898_v60 }
 0x300   : > { %v3298_v23 = vpop.f32.mrb[8].mxu0 }
 0x301   : > { %v3899_v41 = vadd.f32 %v3298_v23, %v6900_v7  ;;  %v3300_v50 = vpop.f32.mrb[9].mxu0 }
 0x302   : > { %v3900_v63 = vadd.f32 %v3300_v50, %v6903_v56  ;;  %v3302_v6 = vpop.f32.mrb[10].mxu0 }
 0x303   : > { %3445 = vst [vmem:[%s6909_s30 + $0x40] sm:$0xff] %v3899_v41  ;;  %v3901_v15 = vadd.f32 %v3302_v6, %v6900_v7  ;;  %v3304_v24 = vpop.f32.mrb[11].mxu0 }
 0x304   : > { %3446 = vst [vmem:[%s6909_s30 + $0x48] sm:$0xff] %v3900_v63  ;;  %v3902_v19 = vadd.f32 %v3304_v24, %v6903_v56 }
 0x305   : > { %3447 = vst [vmem:[%s6909_s30 + $0x50] sm:$0xff] %v3901_v15 }
 0x306   : > { %3448 = vst [vmem:[%s6909_s30 + $0x58] sm:$0xff] %v3902_v19 }
 0x308   : > { %v3308_v31 = vpop.f32.mrb[12].mxu0 }
 0x309   : > { %v3903_v25 = vadd.f32 %v3308_v31, %v6900_v7  ;;  %v3310_v54 = vpop.f32.mrb[13].mxu0 }
 0x30a   : > { %v3904_v40 = vadd.f32 %v3310_v54, %v6903_v56  ;;  %v3312_v36 = vpop.f32.mrb[14].mxu0 }
 0x30b   : > { %3449 = vst [vmem:[%s6909_s30 + $0x60] sm:$0xff] %v3903_v25  ;;  %v3905_v49 = vadd.f32 %v3312_v36, %v6900_v7  ;;  %v3314_v44 = vpop.f32.mrb[15].mxu0 }
 0x30c   : > { %3450 = vst [vmem:[%s6909_s30 + $0x68] sm:$0xff] %v3904_v40  ;;  %v3906_v42 = vadd.f32 %v3314_v44, %v6903_v56 }
 0x30d   : > { %3451 = vst [vmem:[%s6909_s30 + $0x70] sm:$0xff] %v3905_v49 }
 0x30e   : > { %3452 = vst [vmem:[%s6909_s30 + $0x78] sm:$0xff] %v3906_v42 }
 0x310   : > { %v3318_v11 = vpop.f32.mrb[16].mxu0 }
 0x311   : > { %v3907_v58 = vadd.f32 %v3318_v11, %v6900_v7  ;;  %v3320_v27 = vpop.f32.mrb[17].mxu0 }
 0x312   : > { %v3908_v55 = vadd.f32 %v3320_v27, %v6903_v56  ;;  %v3322_v1 = vpop.f32.mrb[18].mxu0 }
 0x313   : > { %3453 = vst [vmem:[%s6909_s30 + $0x80] sm:$0xff] %v3907_v58  ;;  %v3909_v5 = vadd.f32 %v3322_v1, %v6900_v7  ;;  %v3324_v20 = vpop.f32.mrb[19].mxu0 }
 0x314   : > { %3454 = vst [vmem:[%s6909_s30 + $0x88] sm:$0xff] %v3908_v55  ;;  %v3910_v30 = vadd.f32 %v3324_v20, %v6903_v56 }
 0x315   : > { %3455 = vst [vmem:[%s6909_s30 + $0x90] sm:$0xff] %v3909_v5 }
 0x316   : > { %3456 = vst [vmem:[%s6909_s30 + $0x98] sm:$0xff] %v3910_v30 }
 0x318   : > { %v3328_v43 = vpop.f32.mrb[20].mxu0 }
 0x319   : > { %v3911_v52 = vadd.f32 %v3328_v43, %v6900_v7  ;;  %v3330_v47 = vpop.f32.mrb[21].mxu0 }
 0x31a   : > { %v3912_v39 = vadd.f32 %v3330_v47, %v6903_v56  ;;  %v3332_v13 = vpop.f32.mrb[22].mxu0 }
 0x31b   : > { %3457 = vst [vmem:[%s6909_s30 + $0xa0] sm:$0xff] %v3911_v52  ;;  %v3913_v0 = vadd.f32 %v3332_v13, %v6900_v7  ;;  %v3334_v34 = vpop.f32.mrb[23].mxu0 }
 0x31c   : > { %3458 = vst [vmem:[%s6909_s30 + $0xa8] sm:$0xff] %v3912_v39  ;;  %v3914_v51 = vadd.f32 %v3334_v34, %v6903_v56 }
 0x31d   : > { %3459 = vst [vmem:[%s6909_s30 + $0xb0] sm:$0xff] %v3913_v0 }
 0x31e   : > { %3460 = vst [vmem:[%s6909_s30 + $0xb8] sm:$0xff] %v3914_v51 }
 0x320   : > { %v3338_v22 = vpop.f32.mrb[24].mxu0 }
 0x321   : > { %v3915_v2 = vadd.f32 %v3338_v22, %v6900_v7  ;;  %v3340_v8 = vpop.f32.mrb[25].mxu0 }
 0x322   : > { %v3916_v57 = vadd.f32 %v3340_v8, %v6903_v56  ;;  %v3342_v53 = vpop.f32.mrb[26].mxu0 }
 0x323   : > { %3461 = vst [vmem:[%s6909_s30 + $0xc0] sm:$0xff] %v3915_v2  ;;  %v3917_v28 = vadd.f32 %v3342_v53, %v6900_v7  ;;  %v3344_v38 = vpop.f32.mrb[27].mxu0 }
 0x324   : > { %3462 = vst [vmem:[%s6909_s30 + $0xc8] sm:$0xff] %v3916_v57  ;;  %v3918_v59 = vadd.f32 %v3344_v38, %v6903_v56 }
 0x325   : > { %3463 = vst [vmem:[%s6909_s30 + $0xd0] sm:$0xff] %v3917_v28 }
 0x326   : > { %3464 = vst [vmem:[%s6909_s30 + $0xd8] sm:$0xff] %v3918_v59 }
 0x328   : > { %v3348_v61 = vpop.f32.mrb[28].mxu0 }
 0x329   : > { %v3919_v32 = vadd.f32 %v3348_v61, %v6900_v7  ;;  %v3350_v48 = vpop.f32.mrb[29].mxu0 }
 0x32a   : > { %v3920_v12 = vadd.f32 %v3350_v48, %v6903_v56  ;;  %v3352_v14 = vpop.f32.mrb[30].mxu0 }
 0x32b   : > { %3465 = vst [vmem:[%s6909_s30 + $0xe0] sm:$0xff] %v3919_v32  ;;  %v3921_v62 = vadd.f32 %v3352_v14, %v6900_v7  ;;  %v3354_v21 = vpop.f32.mrb[31].mxu0 }
 0x32c   : > { %3466 = vst [vmem:[%s6909_s30 + $0xe8] sm:$0xff] %v3920_v12  ;;  %v3922_v4 = vadd.f32 %v3354_v21, %v6903_v56 }
 0x32d   : > { %3467 = vst [vmem:[%s6909_s30 + $0xf0] sm:$0xff] %v3921_v62 }
 0x32e   : > { %3468 = vst [vmem:[%s6909_s30 + $0xf8] sm:$0xff] %v3922_v4 }
 0x330   : > { %v3358_v37 = vpop.f32.mrb[32].mxu0 }
 0x331   : > { %v3923_v46 = vadd.f32 %v3358_v37, %v6900_v7  ;;  %v3360_v9 = vpop.f32.mrb[33].mxu0 }
 0x332   : > { %v3924_v45 = vadd.f32 %v3360_v9, %v6903_v56  ;;  %v3362_v16 = vpop.f32.mrb[34].mxu0 }
 0x333   : > { %3469 = vst [vmem:[%s6909_s30 + $0x100] sm:$0xff] %v3923_v46  ;;  %v3925_v33 = vadd.f32 %v3362_v16, %v6900_v7  ;;  %v3364_v18 = vpop.f32.mrb[35].mxu0 }
 0x334   : > { %3470 = vst [vmem:[%s6909_s30 + $0x108] sm:$0xff] %v3924_v45  ;;  %v3926_v29 = vadd.f32 %v3364_v18, %v6903_v56 }
 0x335   : > { %3471 = vst [vmem:[%s6909_s30 + $0x110] sm:$0xff] %v3925_v33 }
 0x336   : > { %3472 = vst [vmem:[%s6909_s30 + $0x118] sm:$0xff] %v3926_v29 }
 0x338   : > { %v3368_v26 = vpop.f32.mrb[36].mxu0 }
 0x339   : > { %v3927_v10 = vadd.f32 %v3368_v26, %v6900_v7  ;;  %v3370_v35 = vpop.f32.mrb[37].mxu0 }
 0x33a   : > { %v3928_v17 = vadd.f32 %v3370_v35, %v6903_v56  ;;  %v3372_v3 = vpop.f32.mrb[38].mxu0 }
 0x33b   : > { %3473 = vst [vmem:[%s6909_s30 + $0x120] sm:$0xff] %v3927_v10  ;;  %v3929_v60 = vadd.f32 %v3372_v3, %v6900_v7  ;;  %v3374_v23 = vpop.f32.mrb[39].mxu0 }
 0x33c   : > { %3474 = vst [vmem:[%s6909_s30 + $0x128] sm:$0xff] %v3928_v17  ;;  %v3930_v41 = vadd.f32 %v3374_v23, %v6903_v56 }
 0x33d   : > { %3475 = vst [vmem:[%s6909_s30 + $0x130] sm:$0xff] %v3929_v60 }
 0x33e   : > { %3476 = vst [vmem:[%s6909_s30 + $0x138] sm:$0xff] %v3930_v41 }
 0x340   : > { %v3378_v50 = vpop.f32.mrb[40].mxu0 }
 0x341   : > { %v3931_v63 = vadd.f32 %v3378_v50, %v6900_v7  ;;  %v3380_v6 = vpop.f32.mrb[41].mxu0 }
 0x342   : > { %v3932_v15 = vadd.f32 %v3380_v6, %v6903_v56  ;;  %v3382_v24 = vpop.f32.mrb[42].mxu0 }
 0x343   : > { %3477 = vst [vmem:[%s6909_s30 + $0x140] sm:$0xff] %v3931_v63  ;;  %v3933_v19 = vadd.f32 %v3382_v24, %v6900_v7  ;;  %v3384_v31 = vpop.f32.mrb[43].mxu0 }
 0x344   : > { %3478 = vst [vmem:[%s6909_s30 + $0x148] sm:$0xff] %v3932_v15  ;;  %v3934_v25 = vadd.f32 %v3384_v31, %v6903_v56 }
 0x345   : > { %3479 = vst [vmem:[%s6909_s30 + $0x150] sm:$0xff] %v3933_v19 }
 0x346   : > { %3480 = vst [vmem:[%s6909_s30 + $0x158] sm:$0xff] %v3934_v25 }
 0x348   : > { %v3388_v54 = vpop.f32.mrb[44].mxu0 }
 0x349   : > { %v3935_v40 = vadd.f32 %v3388_v54, %v6900_v7  ;;  %v3390_v36 = vpop.f32.mrb[45].mxu0 }
 0x34a   : > { %v3936_v49 = vadd.f32 %v3390_v36, %v6903_v56  ;;  %v3392_v44 = vpop.f32.mrb[46].mxu0 }
 0x34b   : > { %3481 = vst [vmem:[%s6909_s30 + $0x160] sm:$0xff] %v3935_v40  ;;  %v3937_v42 = vadd.f32 %v3392_v44, %v6900_v7  ;;  %v3394_v11 = vpop.f32.mrb[47].mxu0 }
 0x34c   : > { %3482 = vst [vmem:[%s6909_s30 + $0x168] sm:$0xff] %v3936_v49  ;;  %v3938_v58 = vadd.f32 %v3394_v11, %v6903_v56 }
 0x34d   : > { %3483 = vst [vmem:[%s6909_s30 + $0x170] sm:$0xff] %v3937_v42 }
 0x34e   : > { %3484 = vst [vmem:[%s6909_s30 + $0x178] sm:$0xff] %v3938_v58 }
 0x350   : > { %v3398_v27 = vpop.f32.mrb[48].mxu0 }
 0x351   : > { %v3939_v55 = vadd.f32 %v3398_v27, %v6900_v7  ;;  %v3400_v1 = vpop.f32.mrb[49].mxu0 }
 0x352   : > { %v3940_v5 = vadd.f32 %v3400_v1, %v6903_v56  ;;  %v3402_v20 = vpop.f32.mrb[50].mxu0 }
 0x353   : > { %3485 = vst [vmem:[%s6909_s30 + $0x180] sm:$0xff] %v3939_v55  ;;  %v3941_v30 = vadd.f32 %v3402_v20, %v6900_v7  ;;  %v3404_v43 = vpop.f32.mrb[51].mxu0 }
 0x354   : > { %3486 = vst [vmem:[%s6909_s30 + $0x188] sm:$0xff] %v3940_v5  ;;  %v3942_v52 = vadd.f32 %v3404_v43, %v6903_v56 }
 0x355   : > { %3487 = vst [vmem:[%s6909_s30 + $0x190] sm:$0xff] %v3941_v30 }
 0x356   : > { %3488 = vst [vmem:[%s6909_s30 + $0x198] sm:$0xff] %v3942_v52 }
 0x358   : > { %v3408_v47 = vpop.f32.mrb[52].mxu0 }
 0x359   : > { %v3943_v39 = vadd.f32 %v3408_v47, %v6900_v7  ;;  %v3410_v13 = vpop.f32.mrb[53].mxu0 }
 0x35a   : > { %v3944_v0 = vadd.f32 %v3410_v13, %v6903_v56  ;;  %v3412_v34 = vpop.f32.mrb[54].mxu0 }
 0x35b   : > { %3489 = vst [vmem:[%s6909_s30 + $0x1a0] sm:$0xff] %v3943_v39  ;;  %v3945_v51 = vadd.f32 %v3412_v34, %v6900_v7  ;;  %v3414_v22 = vpop.f32.mrb[55].mxu0 }
 0x35c   : > { %3490 = vst [vmem:[%s6909_s30 + $0x1a8] sm:$0xff] %v3944_v0  ;;  %v3946_v2 = vadd.f32 %v3414_v22, %v6903_v56 }
 0x35d   : > { %3491 = vst [vmem:[%s6909_s30 + $0x1b0] sm:$0xff] %v3945_v51 }
 0x35e   : > { %3492 = vst [vmem:[%s6909_s30 + $0x1b8] sm:$0xff] %v3946_v2 }
 0x360   : > { %v3418_v8 = vpop.f32.mrb[56].mxu0 }
 0x361   : > { %v3947_v57 = vadd.f32 %v3418_v8, %v6900_v7  ;;  %v3420_v53 = vpop.f32.mrb[57].mxu0 }
 0x362   : > { %v3948_v28 = vadd.f32 %v3420_v53, %v6903_v56  ;;  %v3422_v38 = vpop.f32.mrb[58].mxu0 }
 0x363   : > { %3493 = vst [vmem:[%s6909_s30 + $0x1c0] sm:$0xff] %v3947_v57  ;;  %v3949_v59 = vadd.f32 %v3422_v38, %v6900_v7  ;;  %v3424_v61 = vpop.f32.mrb[59].mxu0 }
 0x364   : > { %3494 = vst [vmem:[%s6909_s30 + $0x1c8] sm:$0xff] %v3948_v28  ;;  %v3950_v32 = vadd.f32 %v3424_v61, %v6903_v56 }
 0x365   : > { %3495 = vst [vmem:[%s6909_s30 + $0x1d0] sm:$0xff] %v3949_v59 }
 0x366   : > { %3496 = vst [vmem:[%s6909_s30 + $0x1d8] sm:$0xff] %v3950_v32 }
 0x368   : > { %v3428_v48 = vpop.f32.mrb[60].mxu0 }
 0x369   : > { %v3951_v12 = vadd.f32 %v3428_v48, %v6900_v7  ;;  %v3430_v14 = vpop.f32.mrb[61].mxu0 }
 0x36a   : > { %v3952_v62 = vadd.f32 %v3430_v14, %v6903_v56  ;;  %v3432_v21 = vpop.f32.mrb[62].mxu0 }
 0x36b   : > { %3497 = vst [vmem:[%s6909_s30 + $0x1e0] sm:$0xff] %v3951_v12  ;;  %v3953_v4 = vadd.f32 %v3432_v21, %v6900_v7  ;;  %v3434_v37 = vpop.f32.mrb[63].mxu0 }
 0x36c   : > { %3498 = vst [vmem:[%s6909_s30 + $0x1e8] sm:$0xff] %v3952_v62  ;;  %v3954_v46 = vadd.f32 %v3434_v37, %v6903_v56 }
 0x36d   : > { %3499 = vst [vmem:[%s6909_s30 + $0x1f0] sm:$0xff] %v3953_v4 }
 0x36e   : > { %3500 = vst [vmem:[%s6909_s30 + $0x1f8] sm:$0xff] %v3954_v46 }
 0x36f   : > { %4861 = shalt.err (!%p4858_p9)
}
 0x370   : > { %s4862_s9 = scalar_lea.hbm %s7038_s10, 8192  ;;  %s4866_s30 = scalar_lea.hbm %s7095_s7, 16384 }
 0x371   : > { %p4863_p2 = scmp.ne.s32.totalorder %s7038_s10, %s4862_s9  ;;  %p4867_p11 = scmp.lt.u32.totalorder %s7038_s10, %s7095_s7 }
 0x372   : > { %p4868_p1 = scmp.lt.u32.totalorder %s4866_s30, %s4862_s9  ;;  %p4870_p6 = scmp.lt.u32.totalorder %s4862_s9, %s7038_s10 }
 0x373   : > { %p4864_p0 = pnand %p4863_p2, %p5061_p12 }
 0x374   : > { %p4869_p4 = por %p4868_p1, %p4867_p11 }
 0x375   : > { %p4865_p5 = pneg %p4864_p0 }
 0x376   : > { %p4871_p8 = por %p4870_p6, %p4869_p4 }
 0x378   : > { %p4872_p10 = pnand %p4871_p8, %p4865_p5 }
 0x37a   : > { %4875 = shalt.err (!%p4872_p10)
}
 0x37b   : > { %s4928_s17 = smov 256   ;;  %s4929_s22 = smov 16  }
 0x37c   : > { %4025 = dma.vmem_to_hbm [thread:$0]  (%p5061_p12), %s7040_s21, 8192, %s7038_s10, %s3502_s28, %s4928_s17, %s4928_s17, %s4929_s22  }
 0x37d PF: > { %s3531_s11 = sand.u32 1, %s4906_s24   ;;  %p7288_p13 = scmp.ne.s32.totalorder %s7122_s8, 0 }
 0x37e   : > { %p7289_p3 = scmp.ge.s32.totalorder %s4918_s27, 2  ;;  %s3532_s20 = scalar_lea.sflag [#allocation4], %s3531_s11 }
 0x380   : > { %p4036_p7 = pnand %p7289_p3, %p7288_p13 }
 0x382   : > { %4901 = dma.done.wait (!%p4036_p7), %s3532_s20, 8192  }
 0x383   : > { %4903 = vsyncadd (!%p4036_p7), %s3532_s20, 4294959104  ;;  %p21_p9 = scmp.ge.s32.totalorder %s5026_s13, 4   ;;  %s7290_s24 = smov %s4910_s25 }
 0x384   : > { %s7291_s25 = smov %s4914_s26  ;;  %s7292_s26 = smov %s5057_s18 }
 0x385   : > { %s7293_s27 = smov %s5026_s13  ;;  %23 = sbr.rel (!%p21_p9) target bundleno = 6 (0x6), region = 100 }
 0x38c   :  { %3537 = vsyncpa [#allocation3], 1 }
 0x38d   :  { %3539 = vsyncpa [#allocation3 + $0x1], 1 }
 0x38e   :  { %3540 = vsyncpa [#allocation6], 1 }
 0x38f   :  { %3541 = vsyncpa [#allocation4], 1 }
 0x390   :  { %3543 = vsyncpa [#allocation4 + $0x1], 1 }

</bundles_post_ra>
